<compile_context>
chip_gen: v5e
topology: v5e:2x2
jax: 0.10.0
libtpu: 0.0.40
codegen_flags: <defaults>
</compile_context>

<pallas_src>
import jax
import jax.numpy as jnp
from jax import lax
from jax.experimental import pallas as pl
from jax.experimental.pallas import tpu as pltpu


def _pick_tile_h(h: int, w: int, max_rows: int = 2048) -> int:
    """Largest divisor t of `h` such that the output tile (t*w rows) is legal.

    Legality: t*w must be a multiple of 8 (second-minor dim of the output
    block) unless the tile covers the whole image (t == h), which is always
    legal because the block dim then equals the full array dim.
    """
    best = None
    for t in range(1, h + 1):
        if h % t != 0:
            continue
        rows = t * w
        if rows > max_rows:
            continue
        if rows % 8 != 0 and t != h:
            continue
        best = t
    if best is None:
        best = h  # whole image in one tile: always layout-legal.
    return best


def _make_kernel(tile_h: int, width: int, cin_pad: int, cout: int):
    rows = tile_h * width

    def kernel(x_ref, w_ref, b_ref, o_ref):
        # x_ref: (1, H+2, W+2, Cin_pad)  bf16, full padded image of batch n (resident)
        # w_ref: (9*Cin_pad, Cout)       bf16, resident
        # b_ref: (1, Cout)               f32,  resident
        # o_ref: (1, tile_h*W, Cout)     f32
        h0 = pl.multiple_of(pl.program_id(1) * tile_h, tile_h)

        # Build the im2col tile for this output block entirely in VMEM/vregs:
        # nine shifted 3x3 taps concatenated along the channel axis -> one
        # (rows, 9*Cin_pad) lhs and a single MXU matmul (f32 accumulation
        # stays in the MXU result buffer, no VMEM accumulator RMW).
        taps = []
        for ky in range(3):
            for kx in range(3):
                tap = x_ref[0, pl.ds(h0 + ky, tile_h), pl.ds(kx, width), :]
                taps.append(tap.reshape(rows, cin_pad))
        lhs = jnp.concatenate(taps, axis=-1)                      # (rows, 9*Cin_pad) bf16

        y = jnp.dot(lhs, w_ref[...], preferred_element_type=jnp.float32)  # (rows, Cout) f32
        y = y + b_ref[...]                                        # (1, Cout) broadcasts
        o_ref[0] = jnp.maximum(y, 0.0)                            # ReLU

    return kernel


@jax.jit
def conv_relu(x_nchw, conv_w, conv_b):
    """ConvRelu forward: x (N,Cin,H,W), conv_w (Cout,Cin,3,3), conv_b (Cout,)."""
    n, cin, h, w = x_nchw.shape
    cout = conv_w.shape[0]
    cin_pad = max(8, ((cin + 7) // 8) * 8)
    tile_h = _pick_tile_h(h, w)
    rows = tile_h * w
    hp, wp = h + 2, w + 2

    # NCHW -> NHWC, cast matmul operand to bf16, zero-pad H/W by 1 and Cin to Cin_pad.
    x_nhwc = jnp.transpose(x_nchw, (0, 2, 3, 1)).astype(jnp.bfloat16)
    xp = jnp.pad(x_nhwc, ((0, 0), (1, 1), (1, 1), (0, cin_pad - cin)))

    # (Cout,Cin,3,3) -> (ky,kx,Cin_pad,Cout) -> (9*Cin_pad, Cout): K order matches
    # the in-kernel tap-concatenation order (ky-major, then kx, then channel).
    w_k = jnp.transpose(conv_w, (2, 3, 1, 0))
    w_k = jnp.pad(w_k, ((0, 0), (0, 0), (0, cin_pad - cin), (0, 0)))
    w_k = w_k.reshape(9 * cin_pad, cout).astype(jnp.bfloat16)
    bias = conv_b.astype(jnp.float32).reshape(1, cout)

    kernel = _make_kernel(tile_h, w, cin_pad, cout)

    # Realistic VMEM budget: double-buffered image / weights / output tile, plus
    # the in-kernel im2col lhs + tap temporaries, plus Mosaic internal margin.
    # Clamped to 48 MiB so we never ask for a full v7x TensorCore's 64 MiB.
    x_bytes = hp * wp * cin_pad * 2
    o_bytes = rows * cout * 4
    w_bytes = 9 * cin_pad * cout * 2 + 4096
    lhs_bytes = rows * 9 * cin_pad * 2
    need = 2 * x_bytes + 2 * o_bytes + 2 * w_bytes + 4 * lhs_bytes + (4 << 20)
    vmem_limit = int(min(48 * 2**20, max(32 * 2**20, need)))

    cost = pl.CostEstimate(
        flops=2 * n * h * w * 9 * cin * cout,
        transcendentals=0,
        bytes_accessed=n * x_bytes + w_bytes + n * h * w * cout * 4,
    )

    out_flat = pl.pallas_call(
        kernel,
        out_shape=jax.ShapeDtypeStruct((n, h * w, cout), jnp.float32),
        grid=(n, h // tile_h),
        in_specs=[
            pl.BlockSpec((1, hp, wp, cin_pad), lambda b, i: (b, 0, 0, 0)),  # resident image
            pl.BlockSpec((9 * cin_pad, cout), lambda b, i: (0, 0)),         # resident weights
            pl.BlockSpec((1, cout), lambda b, i: (0, 0)),                   # resident bias
        ],
        out_specs=pl.BlockSpec((1, rows, cout), lambda b, i: (b, i, 0)),
        compiler_params=pltpu.CompilerParams(
            dimension_semantics=("parallel", "parallel"),
            vmem_limit_bytes=vmem_limit,
        ),
        cost_estimate=cost,
    )(xp, w_k, bias)

    out_nhwc = out_flat.reshape(n, h, w, cout)   # contiguous split: free in XLA
    return jnp.transpose(out_nhwc, (0, 3, 1, 2))


if __name__ == "__main__":
    N, CIN, COUT, H, W = 2, 4, 8, 16, 16

    key = jax.random.PRNGKey(0)
    k_x, k_w, k_b = jax.random.split(key, 3)
    x = jax.random.normal(k_x, (N, CIN, H, W), dtype=jnp.float32)
    conv_w = jax.random.normal(k_w, (COUT, CIN, 3, 3), dtype=jnp.float32) * 0.1
    conv_b = jax.random.normal(k_b, (COUT,), dtype=jnp.float32) * 0.1

    out = conv_relu(x, conv_w, conv_b)
    out = jax.block_until_ready(out)

    assert out.shape == (N, COUT, H, W), out.shape
    assert bool(jnp.all(out >= 0.0)), "ReLU output must be non-negative"

    # Reference check (same bf16 operand rounding as the kernel, f32 accumulate).
    x_bf = x.astype(jnp.bfloat16).astype(jnp.float32)
    w_bf = conv_w.astype(jnp.bfloat16).astype(jnp.float32)
    ref = lax.conv_general_dilated(
        x_bf, w_bf, window_strides=(1, 1), padding=((1, 1), (1, 1)),
        dimension_numbers=("NCHW", "OIHW", "NCHW"))
    ref = jnp.maximum(ref + conv_b.reshape(1, COUT, 1, 1), 0.0)
    max_err = float(jnp.max(jnp.abs(out - ref)))
    assert bool(jnp.allclose(out, ref, atol=2e-3, rtol=2e-3)), max_err

    print("KERNEL_OK")
</pallas_src>

<mosaic_0001>
module attributes {stable_mosaic.version = 11 : i64} {
  func.func @kernel(%arg0: i32, %arg1: i32, %arg2: memref<1x18x18x8xbf16, #tpu.memory_space<vmem>>, %arg3: memref<72x8xbf16, #tpu.memory_space<vmem>>, %arg4: memref<1x8xf32, #tpu.memory_space<vmem>>, %arg5: memref<1x256x8xf32, #tpu.memory_space<vmem>>) attributes {dimension_semantics = [#tpu.dimension_semantics<parallel>, #tpu.dimension_semantics<parallel>], iteration_bounds = array<i64: 2, 1>, scalar_prefetch = 0 : i64, scratch_operands = 0 : i64, tpu.core_type = #tpu.core_type<tc>, window_params = [{transform_indices = @transform_0, window_bounds = array<i64: 1, 18, 18, 8>}, {pipeline_mode = #tpu.pipeline_mode<synchronous>, transform_indices = @transform_1, window_bounds = array<i64: 72, 8>}, {pipeline_mode = #tpu.pipeline_mode<synchronous>, transform_indices = @transform_2, window_bounds = array<i64: 1, 8>}, {transform_indices = @transform_3, window_bounds = array<i64: 1, 256, 8>}]} {
    %c16_i32 = arith.constant 16 : i32
    %0 = arith.muli %arg1, %c16_i32 : i32
    %1 = tpu.assume_multiple %0, 16 : i32
    %c0_i32 = arith.constant 0 : i32
    %2 = arith.addi %1, %c0_i32 : i32
    %c0 = arith.constant 0 : index
    %3 = arith.index_cast %2 : i32 to index
    %c0_0 = arith.constant 0 : index
    %c0_1 = arith.constant 0 : index
    %4 = vector.load %arg2[%c0, %3, %c0_0, %c0_1] : memref<1x18x18x8xbf16, #tpu.memory_space<vmem>>, vector<1x16x16x8xbf16>
    %5 = vector.shape_cast %4 : vector<1x16x16x8xbf16> to vector<16x16x8xbf16>
    %6 = vector.shape_cast %5 : vector<16x16x8xbf16> to vector<256x8xbf16>
    %c0_i32_2 = arith.constant 0 : i32
    %7 = arith.addi %1, %c0_i32_2 : i32
    %c0_3 = arith.constant 0 : index
    %8 = arith.index_cast %7 : i32 to index
    %c1 = arith.constant 1 : index
    %c0_4 = arith.constant 0 : index
    %9 = vector.load %arg2[%c0_3, %8, %c1, %c0_4] : memref<1x18x18x8xbf16, #tpu.memory_space<vmem>>, vector<1x16x16x8xbf16>
    %10 = vector.shape_cast %9 : vector<1x16x16x8xbf16> to vector<16x16x8xbf16>
    %11 = vector.shape_cast %10 : vector<16x16x8xbf16> to vector<256x8xbf16>
    %c0_i32_5 = arith.constant 0 : i32
    %12 = arith.addi %1, %c0_i32_5 : i32
    %c0_6 = arith.constant 0 : index
    %13 = arith.index_cast %12 : i32 to index
    %c2 = arith.constant 2 : index
    %c0_7 = arith.constant 0 : index
    %14 = vector.load %arg2[%c0_6, %13, %c2, %c0_7] : memref<1x18x18x8xbf16, #tpu.memory_space<vmem>>, vector<1x16x16x8xbf16>
    %15 = vector.shape_cast %14 : vector<1x16x16x8xbf16> to vector<16x16x8xbf16>
    %16 = vector.shape_cast %15 : vector<16x16x8xbf16> to vector<256x8xbf16>
    %c1_i32 = arith.constant 1 : i32
    %17 = arith.addi %1, %c1_i32 : i32
    %c0_8 = arith.constant 0 : index
    %18 = arith.index_cast %17 : i32 to index
    %c0_9 = arith.constant 0 : index
    %c0_10 = arith.constant 0 : index
    %19 = vector.load %arg2[%c0_8, %18, %c0_9, %c0_10] : memref<1x18x18x8xbf16, #tpu.memory_space<vmem>>, vector<1x16x16x8xbf16>
    %20 = vector.shape_cast %19 : vector<1x16x16x8xbf16> to vector<16x16x8xbf16>
    %21 = vector.shape_cast %20 : vector<16x16x8xbf16> to vector<256x8xbf16>
    %c1_i32_11 = arith.constant 1 : i32
    %22 = arith.addi %1, %c1_i32_11 : i32
    %c0_12 = arith.constant 0 : index
    %23 = arith.index_cast %22 : i32 to index
    %c1_13 = arith.constant 1 : index
    %c0_14 = arith.constant 0 : index
    %24 = vector.load %arg2[%c0_12, %23, %c1_13, %c0_14] : memref<1x18x18x8xbf16, #tpu.memory_space<vmem>>, vector<1x16x16x8xbf16>
    %25 = vector.shape_cast %24 : vector<1x16x16x8xbf16> to vector<16x16x8xbf16>
    %26 = vector.shape_cast %25 : vector<16x16x8xbf16> to vector<256x8xbf16>
    %c1_i32_15 = arith.constant 1 : i32
    %27 = arith.addi %1, %c1_i32_15 : i32
    %c0_16 = arith.constant 0 : index
    %28 = arith.index_cast %27 : i32 to index
    %c2_17 = arith.constant 2 : index
    %c0_18 = arith.constant 0 : index
    %29 = vector.load %arg2[%c0_16, %28, %c2_17, %c0_18] : memref<1x18x18x8xbf16, #tpu.memory_space<vmem>>, vector<1x16x16x8xbf16>
    %30 = vector.shape_cast %29 : vector<1x16x16x8xbf16> to vector<16x16x8xbf16>
    %31 = vector.shape_cast %30 : vector<16x16x8xbf16> to vector<256x8xbf16>
    %c2_i32 = arith.constant 2 : i32
    %32 = arith.addi %1, %c2_i32 : i32
    %c0_19 = arith.constant 0 : index
    %33 = arith.index_cast %32 : i32 to index
    %c0_20 = arith.constant 0 : index
    %c0_21 = arith.constant 0 : index
    %34 = vector.load %arg2[%c0_19, %33, %c0_20, %c0_21] : memref<1x18x18x8xbf16, #tpu.memory_space<vmem>>, vector<1x16x16x8xbf16>
    %35 = vector.shape_cast %34 : vector<1x16x16x8xbf16> to vector<16x16x8xbf16>
    %36 = vector.shape_cast %35 : vector<16x16x8xbf16> to vector<256x8xbf16>
    %c2_i32_22 = arith.constant 2 : i32
    %37 = arith.addi %1, %c2_i32_22 : i32
    %c0_23 = arith.constant 0 : index
    %38 = arith.index_cast %37 : i32 to index
    %c1_24 = arith.constant 1 : index
    %c0_25 = arith.constant 0 : index
    %39 = vector.load %arg2[%c0_23, %38, %c1_24, %c0_25] : memref<1x18x18x8xbf16, #tpu.memory_space<vmem>>, vector<1x16x16x8xbf16>
    %40 = vector.shape_cast %39 : vector<1x16x16x8xbf16> to vector<16x16x8xbf16>
    %41 = vector.shape_cast %40 : vector<16x16x8xbf16> to vector<256x8xbf16>
    %c2_i32_26 = arith.constant 2 : i32
    %42 = arith.addi %1, %c2_i32_26 : i32
    %c0_27 = arith.constant 0 : index
    %43 = arith.index_cast %42 : i32 to index
    %c2_28 = arith.constant 2 : index
    %c0_29 = arith.constant 0 : index
    %44 = vector.load %arg2[%c0_27, %43, %c2_28, %c0_29] : memref<1x18x18x8xbf16, #tpu.memory_space<vmem>>, vector<1x16x16x8xbf16>
    %45 = vector.shape_cast %44 : vector<1x16x16x8xbf16> to vector<16x16x8xbf16>
    %46 = vector.shape_cast %45 : vector<16x16x8xbf16> to vector<256x8xbf16>
    %47 = tpu.concatenate %6, %11, %16, %21, %26, %31, %36, %41, %46 in 1 : vector<256x8xbf16>, vector<256x8xbf16>, vector<256x8xbf16>, vector<256x8xbf16>, vector<256x8xbf16>, vector<256x8xbf16>, vector<256x8xbf16>, vector<256x8xbf16>, vector<256x8xbf16> -> vector<256x72xbf16>
    %c0_30 = arith.constant 0 : index
    %c0_31 = arith.constant 0 : index
    %48 = vector.load %arg3[%c0_30, %c0_31] : memref<72x8xbf16, #tpu.memory_space<vmem>>, vector<72x8xbf16>
    %cst = arith.constant dense<0.000000e+00> : vector<256x8xf32>
    %49 = tpu.matmul %47, %48, %cst {dimension_numbers = #tpu.dot_dimension_numbers<[1], [0], [0], [1], [0, 0, 1, 1], [], []>} : vector<256x72xbf16>, vector<72x8xbf16>, vector<256x8xf32> -> vector<256x8xf32>
    %c0_32 = arith.constant 0 : index
    %c0_33 = arith.constant 0 : index
    %50 = vector.load %arg4[%c0_32, %c0_33] : memref<1x8xf32, #tpu.memory_space<vmem>>, vector<1x8xf32>
    %51 = vector.broadcast %50 : vector<1x8xf32> to vector<256x8xf32>
    %52 = arith.addf %49, %51 : vector<256x8xf32>
    %cst_34 = arith.constant 0.000000e+00 : f32
    %53 = vector.broadcast %cst_34 : f32 to vector<256x8xf32>
    %54 = arith.maximumf %52, %53 : vector<256x8xf32>
    %c0_35 = arith.constant 0 : index
    %c0_36 = arith.constant 0 : index
    %c0_37 = arith.constant 0 : index
    %55 = vector.load %arg5[%c0_35, %c0_36, %c0_37] : memref<1x256x8xf32, #tpu.memory_space<vmem>>, vector<1x256x8xf32>
    %56 = vector.shape_cast %55 : vector<1x256x8xf32> to vector<256x8xf32>
    %57 = vector.shape_cast %54 : vector<256x8xf32> to vector<1x256x8xf32>
    tpu.vector_store %arg5[%c0_35, %c0_36, %c0_37], %57 {strides = array<i32>} : memref<1x256x8xf32, #tpu.memory_space<vmem>>, vector<1x256x8xf32>,
    return
  }
  func.func @transform_0(%arg0: i32, %arg1: i32) -> (i32, i32, i32, i32) {
    %c0_i32 = arith.constant 0 : i32
    %c0_i32_0 = arith.constant 0 : i32
    %c0_i32_1 = arith.constant 0 : i32
    %c0_i32_2 = arith.constant 0 : i32
    return %arg0, %c0_i32, %c0_i32_0, %c0_i32_1 : i32, i32, i32, i32
  }
  func.func @transform_1(%arg0: i32, %arg1: i32) -> (i32, i32) {
    %c0_i32 = arith.constant 0 : i32
    %c0_i32_0 = arith.constant 0 : i32
    %c0_i32_1 = arith.constant 0 : i32
    return %c0_i32, %c0_i32_0 : i32, i32
  }
  func.func @transform_2(%arg0: i32, %arg1: i32) -> (i32, i32) {
    %c0_i32 = arith.constant 0 : i32
    %c0_i32_0 = arith.constant 0 : i32
    %c0_i32_1 = arith.constant 0 : i32
    return %c0_i32, %c0_i32_0 : i32, i32
  }
  func.func @transform_3(%arg0: i32, %arg1: i32) -> (i32, i32, i32) {
    %c0_i32 = arith.constant 0 : i32
    %c0_i32_0 = arith.constant 0 : i32
    return %arg0, %arg1, %c0_i32 : i32, i32, i32
  }
}

</mosaic_0001>

<bundles_post_ra>
// kernel: conv_relu.1
= control target key start
LH: loop header
LB: loop body
LE: loop exit
PB: predicated region body
PF: predicated region fallthrough
CT: control target
= control target key end

     0   :  { %s3938_s12 = smov 0   ;;  %s3940_s13 = smov 0   ;;  %s5790_s0 = inlined_call_operand.vmem [shape: bf16[2,18,18,8], index: 0, kind: input, shape index: {}]   ;;  %s5791_s1 = inlined_call_operand.vmem [shape: bf16[72,8], index: 1, kind: input, shape index: {}]   ;;  %s5792_s2 = inlined_call_operand.vmem [shape: f32[1,8], index: 2, kind: input, shape index: {}]   ;;  %s5793_s3 = inlined_call_operand.vmem [shape: f32[2,256,8], index: 3, kind: output, shape index: {}]  }
   0x1   :  { %s3942_s14 = smov 0  }
   0x2 LB: > { %s25_s15 = sadd.s32 1, %s3904_s13  ;;  %p3378_p0 = scmp.ge.s32.totalorder %s3908_s14, 1  ;;  %s3908_s14 = sphi %s3942_s14, %s13_s14   ;;  %s3904_s13 = sphi %s3940_s13, %s5799_s13   ;;  %s3900_s12 = sphi %s3938_s12, %s5798_s12  }
   0x3   : > { %p27_p1 = scmp.ge.s32.totalorder %s25_s15, 2  ;;  %p151_p2 = scmp.lt.s32.totalorder %s3908_s14, 3 }
   0x5   : > { %s5801_s15 = smov (%p27_p1, %s25_s15), 0  ;;  %p152_p3 = pnand %p3378_p0, %p151_p2 }
   0x6   : > { %p179_p4 = scmp.lt.s32.totalorder (!%p152_p3), %s3900_s12, 1  ;;  %s3910_s20 = smov (!%p152_p3), 8  }
   0x7   : > { %155 = sbr.rel (%p152_p3) target bundleno = 657 (0x291), region = 32  ;;  %s3911_s21 = smov (!%p152_p3), 16  }
   0x8   : > { %s3912_s22 = smov (!%p152_p3), 24   ;;  %s3913_s23 = smov (!%p152_p3), 32  }
   0x9   : > { %s3914_s24 = smov (!%p152_p3), 40   ;;  %s3915_s25 = smov (!%p152_p3), 56  }
   0xa   : > { %s3916_s26 = smov (!%p152_p3), 48   ;;  %s3917_s27 = smov (!%p152_p3), 64  }
   0xc   : > { %s5803_s12 = smov (!%p179_p4, %s3900_s12), 1  ;;  %vm247_vm0 = vsmask.f32 3328  ;;  %vm248_vm1 = vsmask.f32 7440  ;;  %vm698_vm3 = vcmask 1042432  }
   0xd   : > { %s3852_s16 = smul.u32 216, %s5803_s12  ;;  %vm3990_vm2 = vmor %vm247_vm0, %vm248_vm1  ;;  %vm699_vm4 = vcmask 1046532   ;;  %vm2773_vm6 = vcmask 64512   ;;  %vm2822_vm7 = vcmask 130048   ;;  %vm2855_vm8 = vcmask 195584   ;;  %s3784_s17 = sshll.u32 %s5803_s12, 8 }
   0xe   : > { %vm4192_vm5 = vmor %vm698_vm3, %vm699_vm4  ;;  %vm3126_vm9 = vcmask 1043456   ;;  %vm2888_vm10 = vcmask 261120   ;;  %vm2921_vm11 = vcmask 326656   ;;  %vm2954_vm12 = vcmask 392192  }
   0xf   : > { %s3962_s19 = scalar_lea.vmem %s5790_s0, %s3852_s16  ;;  %vm2987_vm13 = vcmask 457728   ;;  %vm3020_vm14 = vcmask 523264   ;;  %vm3093_vm15 = vcmask 588800  }
  0x10   : > { %v207_v0 = vld [vmem:[%s3962_s19 + $0x30] sm:$0xf]  ;;  %v3966_v1 = vld [vmem:[%s3962_s19 + $0x34] sm:$0xf]  ;;  %v3969_v2 = vld [vmem:[%s3962_s19 + $0x38] sm:$0x1] }
  0x11   : > { %v347_v3 = vshrl.u32 %v207_v0, 16  ;;  %v350_v4 = vshll.u32 %v207_v0, 16  ;;  %v356_v5 = vshll.u32 %v3966_v1, 16  ;;  %v360_v6 = vshrl.u32 %v3966_v1, 16  ;;  %v203_v7 = vld [vmem:[%s3962_s19 + $0x18] sm:$0xf] }
  0x12   : > { %v366_v8 = vshll.u32 %v3969_v2, 16  ;;  %v3976_v9 = vld [vmem:[%s3962_s19 + $0x1c] sm:$0xf]  ;;  %v3979_v10 = vld [vmem:[%s3962_s19 + $0x20] sm:$0x1]  ;;  %v299_v11 = vshrl.u32 %v203_v7, 16 }
  0x13   : > { %v349_v12 = vrot.slane %v347_v3, 4  ;;  %v352_v13 = vrot.slane %v350_v4, 5  ;;  %v358_v14 = vrot.slane %v356_v5, 5  ;;  %v362_v15 = vrot.slane %v360_v6, 4  ;;  %v199_v16 = vld [vmem:[%s3962_s19] sm:$0xf] }
  0x14   : > { %v368_v17 = vrot.slane %v366_v8, 5  ;;  %v301_v18 = vrot.slane %v299_v11, 4  ;;  %v302_v19 = vshll.u32 %v203_v7, 16  ;;  %v308_v20 = vshll.u32 %v3976_v9, 16  ;;  %v3986_v25 = vld [vmem:[%s3962_s19 + $0x4] sm:$0xf] }
  0x15   : > { %v353_v21 = vor.u32 %v352_v13, %v349_v12  ;;  %v363_v22 = vor.u32 %v362_v15, %v358_v14  ;;  %v312_v23 = vshrl.u32 %v3976_v9, 16  ;;  %v318_v24 = vshll.u32 %v3979_v10, 16  ;;  %v3995_v36 = vld [vmem:[%s3962_s19 + $0x8] sm:$0x1]  ;;  %v209_v44 = vld [vmem:[%s3962_s19 + $0x3c] sm:$0xf] }
  0x16   : > { %v304_v27 = vrot.slane %v302_v19, 5  ;;  %v310_v28 = vrot.slane %v308_v20, 5  ;;  %v251_v29 = vshrl.u32 %v199_v16, 16  ;;  %v254_v30 = vshll.u32 %v199_v16, 16  ;;  %v4008_v56 = vld [vmem:[%s3962_s19 + $0x40] sm:$0xf] }
  0x17   : > { %v354_v31 = vrot.slane %v353_v21, 4  ;;  %v364_v32 = vrot.slane %v363_v22, 4  ;;  %v314_v33 = vrot.slane %v312_v23, 4  ;;  %v320_v34 = vrot.slane %v318_v24, 5  ;;  %v4013_v62 = vld [vmem:[%s3962_s19 + $0x44] sm:$0x1] }
  0x18   : > { %v305_v35 = vor.u32 %v304_v27, %v301_v18  ;;  %v253_v37 = vrot.slane %v251_v29, 4  ;;  %v256_v38 = vrot.slane %v254_v30, 5  ;;  %v260_v39 = vshll.u32 %v3986_v25, 16  ;;  %v205_v63 = vld [vmem:[%s3962_s19 + $0x24] sm:$0xf] }
  0x19   : > { %v359_v40 = vsel %vm3990_vm2, %v354_v31, %v358_v14  ;;  %v369_v41 = vsel %vm3990_vm2, %v364_v32, %v368_v17  ;;  %v315_v42 = vor.u32 %v314_v33, %v310_v28  ;;  %v264_v43 = vshrl.u32 %v3986_v25, 16  ;;  %v4022_v12 = vld [vmem:[%s3962_s19 + $0x28] sm:$0xf]  ;;  %v4026_v16 = vld [vmem:[%s3962_s19 + $0x2c] sm:$0x1] }
  0x1a   : > { %v2109_v45 = vunpack.c.l.b16 %v359_v40  ;;  %v2110_v46 = vunpack.c.l.b16 %v369_v41  ;;  %v306_v47 = vrot.slane %v305_v35, 4  ;;  %v257_v48 = vor.u32 %v256_v38, %v253_v37  ;;  %v201_v22 = vld [vmem:[%s3962_s19 + $0xc] sm:$0xf]  ;;  %v4036_v37 = vld [vmem:[%s3962_s19 + $0x10] sm:$0xf] }
  0x1b   : > { %v316_v49 = vrot.slane %v315_v42, 4  ;;  %v262_v50 = vrot.slane %v260_v39, 5  ;;  %v266_v51 = vrot.slane %v264_v43, 4  ;;  %v270_v52 = vshll.u32 %v3995_v36, 16  ;;  %v4039_v43 = vld [vmem:[%s3962_s19 + $0x14] sm:$0x1] }
  0x1c   : > { %v2137_v53 = vpack.c.b16 %v2110_v46, %v2109_v45  ;;  %v311_v54 = vsel %vm3990_vm2, %v306_v47, %v310_v28  ;;  %v258_v55 = vrot.slane %v257_v48, 4  ;;  %v371_v57 = vshrl.u32 %v209_v44, 16  ;;  %v215_v48 = vld [vmem:[%s3962_s19 + $0x60] sm:$0xf] }
  0x1d   : > { %v321_v58 = vsel %vm3990_vm2, %v316_v49, %v320_v34  ;;  %v2105_v59 = vunpack.c.l.b16 %v311_v54  ;;  %v267_v60 = vor.u32 %v266_v51, %v262_v50  ;;  %v272_v61 = vrot.slane %v270_v52, 5 }
  0x1e   : > { %2157 = vrot.lane.b32.xlu2 %v2137_v53, %s3910_s20  ;;  %v2106_v0 = vunpack.c.l.b16 %v321_v58  ;;  %v263_v3 = vsel %vm3990_vm2, %v258_v55, %v262_v50  ;;  %v373_v4 = vrot.slane %v371_v57, 4  ;;  %v374_v5 = vshll.u32 %v209_v44, 16 }
  0x1f   : > { %v268_v6 = vrot.slane %v267_v60, 4  ;;  %v2101_v7 = vunpack.c.l.b16 %v263_v3  ;;  %v380_v8 = vshll.u32 %v4008_v56, 16  ;;  %v384_v11 = vshrl.u32 %v4008_v56, 16 }
  0x20   : > { %v2135_v13 = vpack.c.b16 %v2106_v0, %v2105_v59  ;;  %v376_v14 = vrot.slane %v374_v5, 5  ;;  %v390_v15 = vshll.u32 %v4013_v62, 16  ;;  %v323_v17 = vshrl.u32 %v205_v63, 16 }
  0x21   : > { %v273_v18 = vsel %vm3990_vm2, %v268_v6, %v272_v61  ;;  %v382_v19 = vrot.slane %v380_v8, 5  ;;  %v386_v20 = vrot.slane %v384_v11, 4  ;;  %v326_v21 = vshll.u32 %v205_v63, 16  ;;  %v4053_v61 = vld [vmem:[%s3962_s19 + $0x64] sm:$0xf] }
  0x22   : > { %2153 = vrot.lane.b32.xlu1 %v2135_v13, %s3910_s20  ;;  %v2102_v23 = vunpack.c.l.b16 %v273_v18  ;;  %v377_v24 = vor.u32 %v376_v14, %v373_v4  ;;  %v392_v27 = vrot.slane %v390_v15, 5  ;;  %v325_v28 = vrot.slane %v323_v17, 4  ;;  %v4056_v6 = vld [vmem:[%s3962_s19 + $0x68] sm:$0x1] }
  0x23   : > { %v387_v29 = vor.u32 %v386_v20, %v382_v19  ;;  %v328_v30 = vrot.slane %v326_v21, 5  ;;  %v332_v31 = vshll.u32 %v4022_v12, 16  ;;  %v336_v32 = vshrl.u32 %v4022_v12, 16 }
  0x24   : > { %v2133_v33 = vpack.c.b16 %v2102_v23, %v2101_v7  ;;  %v378_v34 = vrot.slane %v377_v24, 4  ;;  %v342_v35 = vshll.u32 %v4026_v16, 16  ;;  %v275_v38 = vshrl.u32 %v201_v22, 16  ;;  %v213_v7 = vld [vmem:[%s3962_s19 + $0x54] sm:$0xf] }
  0x25   : > { %v388_v39 = vrot.slane %v387_v29, 4  ;;  %v329_v40 = vor.u32 %v328_v30, %v325_v28  ;;  %v334_v41 = vrot.slane %v332_v31, 5  ;;  %v338_v42 = vrot.slane %v336_v32, 4  ;;  %v4066_v23 = vld [vmem:[%s3962_s19 + $0x58] sm:$0xf] }
  0x26   : > { %2149 = vrot.lane.b32.xlu0 %v2133_v33, %s3910_s20  ;;  %v383_v44 = vsel %vm3990_vm2, %v378_v34, %v382_v19  ;;  %v344_v45 = vrot.slane %v342_v35, 5  ;;  %v277_v46 = vrot.slane %v275_v38, 4  ;;  %v278_v47 = vshll.u32 %v201_v22, 16  ;;  %v4071_v31 = vld [vmem:[%s3962_s19 + $0x5c] sm:$0x1] }
  0x27   : > { %v393_v49 = vsel %vm3990_vm2, %v388_v39, %v392_v27  ;;  %v2111_v50 = vunpack.c.l.b16 %v383_v44  ;;  %v330_v51 = vrot.slane %v329_v40, 4  ;;  %v339_v52 = vor.u32 %v338_v42, %v334_v41  ;;  %v211_v42 = vld [vmem:[%s3962_s19 + $0x48] sm:$0xf] }
  0x28   : > { %v2112_v53 = vunpack.c.l.b16 %v393_v49  ;;  %v280_v54 = vrot.slane %v278_v47, 5  ;;  %v284_v55 = vshll.u32 %v4036_v37, 16  ;;  %v288_v57 = vshrl.u32 %v4036_v37, 16 }
  0x29   : > { %v335_v58 = vsel %vm3990_vm2, %v330_v51, %v334_v41  ;;  %v340_v59 = vrot.slane %v339_v52, 4  ;;  %v294_v60 = vshll.u32 %v4039_v43, 16  ;;  %v443_v63 = vshrl.u32 %v215_v48, 16 }
  0x2a   : > { %v2138_v0 = vpack.c.b16 %v2112_v53, %v2111_v50  ;;  %v2107_v3 = vunpack.c.l.b16 %v335_v58  ;;  %v281_v4 = vor.u32 %v280_v54, %v277_v46  ;;  %v286_v5 = vrot.slane %v284_v55, 5  ;;  %v4081_v55 = vld [vmem:[%s3962_s19 + $0x4c] sm:$0xf] }
  0x2b   : > { %v345_v8 = vsel %vm3990_vm2, %v340_v59, %v344_v45  ;;  %v290_v11 = vrot.slane %v288_v57, 4  ;;  %v296_v13 = vrot.slane %v294_v60, 5  ;;  %v445_v14 = vrot.slane %v443_v63, 4  ;;  %v4086_v63 = vld [vmem:[%s3962_s19 + $0x50] sm:$0x1] }
  0x2c   : > { %2159 = vrot.lane.b32.xlu2 %v2138_v0, %s3910_s20  ;;  %v2108_v15 = vunpack.c.l.b16 %v345_v8  ;;  %v282_v17 = vrot.slane %v281_v4, 4  ;;  %v446_v18 = vshll.u32 %v215_v48, 16  ;;  %v452_v19 = vshll.u32 %v4053_v61, 16 }
  0x2d   : > { %v291_v20 = vor.u32 %v290_v11, %v286_v5  ;;  %v456_v21 = vshrl.u32 %v4053_v61, 16  ;;  %v462_v22 = vshll.u32 %v4056_v6, 16  ;;  %v419_v24 = vshrl.u32 %v213_v7, 16 }
  0x2e   : > { %v2136_v27 = vpack.c.b16 %v2108_v15, %v2107_v3  ;;  %v287_v28 = vsel %vm3990_vm2, %v282_v17, %v286_v5  ;;  %v448_v29 = vrot.slane %v446_v18, 5  ;;  %v454_v30 = vrot.slane %v452_v19, 5  ;;  %v221_v3 = vld [vmem:[%s3962_s19 + $0x84] sm:$0xf] }
  0x2f   : > { %v292_v32 = vrot.slane %v291_v20, 4  ;;  %v2103_v33 = vunpack.c.l.b16 %v287_v28  ;;  %v458_v34 = vrot.slane %v456_v21, 4  ;;  %v464_v35 = vrot.slane %v462_v22, 5  ;;  %v4098_v28 = vld [vmem:[%s3962_s19 + $0x88] sm:$0xf] }
  0x30   : > { %2155 = vrot.lane.b32.xlu1 %v2136_v27, %s3910_s20  ;;  %v449_v38 = vor.u32 %v448_v29, %v445_v14  ;;  %v421_v39 = vrot.slane %v419_v24, 4  ;;  %v422_v40 = vshll.u32 %v213_v7, 16  ;;  %v428_v41 = vshll.u32 %v4066_v23, 16  ;;  %v4101_v29 = vld [vmem:[%s3962_s19 + $0x8c] sm:$0x1] }
  0x31   : > { %v297_v44 = vsel %vm3990_vm2, %v292_v32, %v296_v13  ;;  %v459_v45 = vor.u32 %v458_v34, %v454_v30  ;;  %v432_v46 = vshrl.u32 %v4066_v23, 16  ;;  %v438_v47 = vshll.u32 %v4071_v31, 16 }
  0x32   : > { %v2104_v48 = vunpack.c.l.b16 %v297_v44  ;;  %v450_v49 = vrot.slane %v449_v38, 4  ;;  %v424_v50 = vrot.slane %v422_v40, 5  ;;  %v430_v51 = vrot.slane %v428_v41, 5 }
  0x33   : > { %v460_v52 = vrot.slane %v459_v45, 4  ;;  %v434_v53 = vrot.slane %v432_v46, 4  ;;  %v440_v54 = vrot.slane %v438_v47, 5  ;;  %v395_v57 = vshrl.u32 %v211_v42, 16 }
  0x34   : > { %v2134_v58 = vpack.c.b16 %v2104_v48, %v2103_v33  ;;  %v455_v59 = vsel %vm3990_vm2, %v450_v49, %v454_v30  ;;  %v425_v60 = vor.u32 %v424_v50, %v421_v39  ;;  %v398_v0 = vshll.u32 %v211_v42, 16  ;;  %v4113_v50 = vld [vmem:[%s3962_s19 + $0x7c] sm:$0xf] }
  0x35   : > { %v465_v4 = vsel %vm3990_vm2, %v460_v52, %v464_v35  ;;  %v2117_v5 = vunpack.c.l.b16 %v455_v59  ;;  %v435_v7 = vor.u32 %v434_v53, %v430_v51  ;;  %v397_v8 = vrot.slane %v395_v57, 4  ;;  %v219_v35 = vld [vmem:[%s3962_s19 + $0x78] sm:$0xf] }
  0x36   : > { %2151 = vrot.lane.b32.xlu0 %v2134_v58, %s3910_s20  ;;  %v2118_v11 = vunpack.c.l.b16 %v465_v4  ;;  %v426_v13 = vrot.slane %v425_v60, 4  ;;  %v400_v14 = vrot.slane %v398_v0, 5  ;;  %v404_v15 = vshll.u32 %v4081_v55, 16  ;;  %v4116_v58 = vld [vmem:[%s3962_s19 + $0x80] sm:$0x1] }
  0x37   : > { %v436_v17 = vrot.slane %v435_v7, 4  ;;  %v408_v18 = vshrl.u32 %v4081_v55, 16  ;;  %v414_v19 = vshll.u32 %v4086_v63, 16  ;;  %v515_v20 = vshrl.u32 %v221_v3, 16  ;;  %v217_v4 = vld [vmem:[%s3962_s19 + $0x6c] sm:$0xf] }
  0x38   : > { %v2141_v21 = vpack.c.b16 %v2118_v11, %v2117_v5  ;;  %v431_v22 = vsel %vm3990_vm2, %v426_v13, %v430_v51  ;;  %v401_v24 = vor.u32 %v400_v14, %v397_v8  ;;  %v406_v27 = vrot.slane %v404_v15, 5 }
  0x39   : > { %v441_v30 = vsel %vm3990_vm2, %v436_v17, %v440_v54  ;;  %v2115_v32 = vunpack.c.l.b16 %v431_v22  ;;  %v410_v33 = vrot.slane %v408_v18, 4  ;;  %v416_v34 = vrot.slane %v414_v19, 5 }
  0x3a   : > { %2165 = vrot.lane.b32.xlu2 %v2141_v21, %s3910_s20  ;;  %v2116_v38 = vunpack.c.l.b16 %v441_v30  ;;  %v402_v39 = vrot.slane %v401_v24, 4  ;;  %v517_v40 = vrot.slane %v515_v20, 4  ;;  %v518_v41 = vshll.u32 %v221_v3, 16  ;;  %v4126_v21 = vld [vmem:[%s3962_s19 + $0x70] sm:$0xf] }
  0x3b   : > { %v411_v42 = vor.u32 %v410_v33, %v406_v27  ;;  %v524_v44 = vshll.u32 %v4098_v28, 16  ;;  %v528_v45 = vshrl.u32 %v4098_v28, 16  ;;  %v534_v46 = vshll.u32 %v4101_v29, 16  ;;  %v4131_v33 = vld [vmem:[%s3962_s19 + $0x74] sm:$0x1] }
  0x3c   : > { %v2140_v47 = vpack.c.b16 %v2116_v38, %v2115_v32  ;;  %v407_v48 = vsel %vm3990_vm2, %v402_v39, %v406_v27  ;;  %v520_v49 = vrot.slane %v518_v41, 5  ;;  %v491_v51 = vshrl.u32 %v219_v35, 16 }
  0x3d   : > { %v412_v52 = vrot.slane %v411_v42, 4  ;;  %v2113_v53 = vunpack.c.l.b16 %v407_v48  ;;  %v526_v54 = vrot.slane %v524_v44, 5  ;;  %v530_v57 = vrot.slane %v528_v45, 4 }
  0x3e   : > { %2163 = vrot.lane.b32.xlu1 %v2140_v47, %s3910_s20  ;;  %v521_v59 = vor.u32 %v520_v49, %v517_v40  ;;  %v536_v60 = vrot.slane %v534_v46, 5  ;;  %v493_v0 = vrot.slane %v491_v51, 4  ;;  %v494_v3 = vshll.u32 %v219_v35, 16 }
  0x3f   : > { %v417_v5 = vsel %vm3990_vm2, %v412_v52, %v416_v34  ;;  %v531_v7 = vor.u32 %v530_v57, %v526_v54  ;;  %v500_v8 = vshll.u32 %v4113_v50, 16  ;;  %v504_v11 = vshrl.u32 %v4113_v50, 16  ;;  %v227_v34 = vld [vmem:[%s3962_s19 + $0xa8] sm:$0xf]  ;;  %v4143_v57 = vld [vmem:[%s3962_s19 + $0xac] sm:$0xf] }
  0x40   : > { %v2114_v13 = vunpack.c.l.b16 %v417_v5  ;;  %v522_v14 = vrot.slane %v521_v59, 4  ;;  %v496_v15 = vrot.slane %v494_v3, 5  ;;  %v510_v17 = vshll.u32 %v4116_v58, 16  ;;  %v4146_v59 = vld [vmem:[%s3962_s19 + $0xb0] sm:$0x1] }
  0x41   : > { %v532_v18 = vrot.slane %v531_v7, 4  ;;  %v502_v19 = vrot.slane %v500_v8, 5  ;;  %v506_v20 = vrot.slane %v504_v11, 4  ;;  %v467_v22 = vshrl.u32 %v217_v4, 16  ;;  %v225_v5 = vld [vmem:[%s3962_s19 + $0x9c] sm:$0xf] }
  0x42   : > { %v2139_v24 = vpack.c.b16 %v2114_v13, %v2113_v53  ;;  %v527_v27 = vsel %vm3990_vm2, %v522_v14, %v526_v54  ;;  %v497_v30 = vor.u32 %v496_v15, %v493_v0  ;;  %v512_v32 = vrot.slane %v510_v17, 5 }
  0x43   : > { %v537_v35 = vsel %vm3990_vm2, %v532_v18, %v536_v60  ;;  %v2123_v38 = vunpack.c.l.b16 %v527_v27  ;;  %v507_v39 = vor.u32 %v506_v20, %v502_v19  ;;  %v469_v40 = vrot.slane %v467_v22, 4 }
  0x44   : > { %2161 = vrot.lane.b32.xlu0 %v2139_v24, %s3910_s20  ;;  %v2124_v41 = vunpack.c.l.b16 %v537_v35  ;;  %v498_v42 = vrot.slane %v497_v30, 4  ;;  %v470_v44 = vshll.u32 %v217_v4, 16  ;;  %v476_v45 = vshll.u32 %v4126_v21, 16  ;;  %v4156_v24 = vld [vmem:[%s3962_s19 + $0xa0] sm:$0xf] }
  0x45   : > { %v508_v46 = vrot.slane %v507_v39, 4  ;;  %v480_v47 = vshrl.u32 %v4126_v21, 16  ;;  %v486_v48 = vshll.u32 %v4131_v33, 16  ;;  %v587_v49 = vshrl.u32 %v227_v34, 16 }
  0x46   : > { %v2144_v51 = vpack.c.b16 %v2124_v41, %v2123_v38  ;;  %v503_v52 = vsel %vm3990_vm2, %v498_v42, %v502_v19  ;;  %v472_v53 = vrot.slane %v470_v44, 5  ;;  %v478_v54 = vrot.slane %v476_v45, 5  ;;  %v223_v44 = vld [vmem:[%s3962_s19 + $0x90] sm:$0xf] }
  0x47   : > { %v513_v60 = vsel %vm3990_vm2, %v508_v46, %v512_v32  ;;  %v2121_v0 = vunpack.c.l.b16 %v503_v52  ;;  %v482_v3 = vrot.slane %v480_v47, 4  ;;  %v488_v4 = vrot.slane %v486_v48, 5 }
  0x48   : > { %2171 = vrot.lane.b32.xlu2 %v2144_v51, %s3910_s20  ;;  %v2122_v7 = vunpack.c.l.b16 %v513_v60  ;;  %v473_v8 = vor.u32 %v472_v53, %v469_v40  ;;  %v589_v11 = vrot.slane %v587_v49, 4  ;;  %v590_v13 = vshll.u32 %v227_v34, 16  ;;  %v4162_v40 = vld [vmem:[%s3962_s19 + $0xa4] sm:$0x1] }
  0x49   : > { %v483_v14 = vor.u32 %v482_v3, %v478_v54  ;;  %v596_v15 = vshll.u32 %v4143_v57, 16  ;;  %v600_v17 = vshrl.u32 %v4143_v57, 16  ;;  %v606_v18 = vshll.u32 %v4146_v59, 16 }
  0x4a   : > { %v2143_v19 = vpack.c.b16 %v2122_v7, %v2121_v0  ;;  %v474_v20 = vrot.slane %v473_v8, 4  ;;  %v592_v22 = vrot.slane %v590_v13, 5  ;;  %v563_v27 = vshrl.u32 %v225_v5, 16  ;;  %v4176_v13 = vld [vmem:[%s3962_s19 + $0x98] sm:$0x1] }
  0x4b   : > { %v484_v30 = vrot.slane %v483_v14, 4  ;;  %v598_v32 = vrot.slane %v596_v15, 5  ;;  %v602_v35 = vrot.slane %v600_v17, 4  ;;  %v608_v38 = vrot.slane %v606_v18, 5 }
  0x4c   : > { %2169 = vrot.lane.b32.xlu1 %v2143_v19, %s3910_s20  ;;  %v479_v34 = vsel %vm3990_vm2, %v474_v20, %v478_v54  ;;  %v593_v39 = vor.u32 %v592_v22, %v589_v11  ;;  %v565_v41 = vrot.slane %v563_v27, 4  ;;  %v566_v42 = vshll.u32 %v225_v5, 16  ;;  %v4173_v11 = vld [vmem:[%s3962_s19 + $0x94] sm:$0xf] }
  0x4d   : > { %v489_v45 = vsel %vm3990_vm2, %v484_v30, %v488_v4  ;;  %v2119_v46 = vunpack.c.l.b16 %v479_v34  ;;  %v603_v47 = vor.u32 %v602_v35, %v598_v32  ;;  %v572_v48 = vshll.u32 %v4156_v24, 16  ;;  %v635_v34 = vld [vmem:[%s3962_s19 + $0xc] sm:$0xe] }
  0x4e   : > { %v2120_v49 = vunpack.c.l.b16 %v489_v45  ;;  %v594_v51 = vrot.slane %v593_v39, 4  ;;  %v568_v52 = vrot.slane %v566_v42, 5  ;;  %v576_v53 = vshrl.u32 %v4156_v24, 16 }
  0x4f   : > { %v604_v54 = vrot.slane %v603_v47, 4  ;;  %v574_v60 = vrot.slane %v572_v48, 5  ;;  %v582_v0 = vshll.u32 %v4162_v40, 16  ;;  %v539_v3 = vshrl.u32 %v223_v44, 16 }
  0x50   : > { %v2142_v5 = vpack.c.b16 %v2120_v49, %v2119_v46  ;;  %v599_v4 = vsel %vm3990_vm2, %v594_v51, %v598_v32  ;;  %v569_v7 = vor.u32 %v568_v52, %v565_v41  ;;  %v578_v8 = vrot.slane %v576_v53, 4  ;;  %v634_v49 = vld [vmem:[%s3962_s19] sm:$0xe] }
  0x51   : > { %v609_v14 = vsel %vm3990_vm2, %v604_v54, %v608_v38  ;;  %v2129_v15 = vunpack.c.l.b16 %v599_v4  ;;  %v584_v17 = vrot.slane %v582_v0, 5  ;;  %v541_v18 = vrot.slane %v539_v3, 4 }
  0x52   : > { %2167 = vrot.lane.b32.xlu0 %v2142_v5, %s3910_s20  ;;  %v2130_v19 = vunpack.c.l.b16 %v609_v14  ;;  %v570_v20 = vrot.slane %v569_v7, 4  ;;  %v579_v22 = vor.u32 %v578_v8, %v574_v60  ;;  %v542_v27 = vshll.u32 %v223_v44, 16 }
  0x53   : > { %v548_v30 = vshll.u32 %v4173_v11, 16  ;;  %v552_v32 = vshrl.u32 %v4173_v11, 16  ;;  %v558_v35 = vshll.u32 %v4176_v13, 16  ;;  %v3383_v52 = vrot.slane %v635_v34, 9 }
  0x54   : > { %v2147_v39 = vpack.c.b16 %v2130_v19, %v2129_v15  ;;  %v575_v38 = vsel %vm3990_vm2, %v570_v20, %v574_v60  ;;  %v580_v41 = vrot.slane %v579_v22, 4  ;;  %v544_v42 = vrot.slane %v542_v27, 5  ;;  %v229_v19 = vld [vmem:[%s3962_s19 + $0xb4] sm:$0xf] }
  0x55   : > { %v2127_v45 = vunpack.c.l.b16 %v575_v38  ;;  %v550_v46 = vrot.slane %v548_v30, 5  ;;  %v554_v47 = vrot.slane %v552_v32, 4  ;;  %v560_v48 = vrot.slane %v558_v35, 5  ;;  %v4216_v35 = vld [vmem:[%s3962_s19 + $0xbc] sm:$0x1] }
  0x56   : > { %2177 = vrot.lane.b32.xlu2 %v2147_v39, %s3910_s20  ;;  %v585_v44 = vsel %vm3990_vm2, %v580_v41, %v584_v17  ;;  %v545_v51 = vor.u32 %v544_v42, %v541_v18  ;;  %v710_v0 = vrot.slane %v4036_v37, 5  ;;  %v713_v3 = vrot.slane %v4039_v43, 5 }
  0x57   : > { %v2128_v53 = vunpack.c.l.b16 %v585_v44  ;;  %v555_v54 = vor.u32 %v554_v47, %v550_v46  ;;  %v3382_v4 = vrot.slane %v634_v49, 9  ;;  %v703_v7 = vrot.slane %v3986_v25, 5  ;;  %v4208_v25 = vld [vmem:[%s3962_s19 + $0xb8] sm:$0xf] }
  0x58   : > { %v546_v5 = vrot.slane %v545_v51, 4  ;;  %v706_v8 = vrot.slane %v3995_v36, 5  ;;  %v711_v17 = vsel %vm4192_vm5, %v3383_v52, %v710_v0  ;;  %v712_v18 = vrot.slane %v710_v0, 4 }
  0x59   : > { %v2146_v14 = vpack.c.b16 %v2128_v53, %v2127_v45  ;;  %v556_v15 = vrot.slane %v555_v54, 4  ;;  %v2183_v37 = vunpack.c.l.b16 %v711_v17  ;;  %v704_v43 = vsel %vm4192_vm5, %v3382_v4, %v703_v7  ;;  %v637_v53 = vld [vmem:[%s3962_s19 + $0x24] sm:$0xe]  ;;  %v636_v4 = vld [vmem:[%s3962_s19 + $0x18] sm:$0xe] }
  0x5a   : > { %v551_v20 = vsel %vm3990_vm2, %v546_v5, %v550_v46  ;;  %v705_v22 = vrot.slane %v703_v7, 4  ;;  %v714_v30 = vsel %vm4192_vm5, %v712_v18, %v713_v3  ;;  %v2181_v32 = vunpack.c.l.b16 %v704_v43 }
  0x5b   : > { %2175 = vrot.lane.b32.xlu1 %v2146_v14, %s3910_s20  ;;  %v561_v36 = vsel %vm3990_vm2, %v556_v15, %v560_v48  ;;  %v2125_v27 = vunpack.c.l.b16 %v551_v20  ;;  %v2184_v39 = vunpack.c.l.b16 %v714_v30  ;;  %v611_v41 = vshrl.u32 %v229_v19, 16  ;;  %v638_v48 = vld [vmem:[%s3962_s19 + $0x30] sm:$0xe] }
  0x5c   : > { %v2126_v34 = vunpack.c.l.b16 %v561_v36  ;;  %v707_v38 = vsel %vm4192_vm5, %v705_v22, %v706_v8  ;;  %v614_v45 = vshll.u32 %v229_v19, 16  ;;  %v620_v46 = vshll.u32 %v4208_v25, 16 }
  0x5d   : > { %v2182_v42 = vunpack.c.l.b16 %v707_v38  ;;  %v624_v47 = vshrl.u32 %v4208_v25, 16  ;;  %v2214_v44 = vpack.c.b16 %v2184_v39, %v2183_v37  ;;  %v613_v51 = vrot.slane %v611_v41, 4 }
  0x5e   : > { %v2145_v49 = vpack.c.b16 %v2126_v34, %v2125_v27  ;;  %v630_v52 = vshll.u32 %v4216_v35, 16  ;;  %v616_v0 = vrot.slane %v614_v45, 5  ;;  %v622_v3 = vrot.slane %v620_v46, 5  ;;  %v641_v45 = vld [vmem:[%s3962_s19 + $0x54] sm:$0xe] }
  0x5f   : > { %v2213_v54 = vpack.c.b16 %v2182_v42, %v2181_v32  ;;  %v626_v5 = vrot.slane %v624_v47, 4  ;;  %2231 = vrot.lane.b32.xlu2 %v2214_v44, %s3911_s21  ;;  %v3386_v8 = vrot.slane %v638_v48, 9  ;;  %v731_v14 = vrot.slane %v3966_v1, 5 }
  0x60   : > { %2173 = vrot.lane.b32.xlu0 %v2145_v49, %s3910_s20  ;;  %v632_v7 = vrot.slane %v630_v52, 5  ;;  %v734_v15 = vrot.slane %v3969_v2, 5  ;;  %v617_v17 = vor.u32 %v616_v0, %v613_v51  ;;  %v3385_v19 = vrot.slane %v637_v53, 9 }
  0x61   : > { %v627_v18 = vor.u32 %v626_v5, %v622_v3  ;;  %v724_v20 = vrot.slane %v4022_v12, 5  ;;  %v732_v37 = vsel %vm4192_vm5, %v3386_v8, %v731_v14  ;;  %v733_v43 = vrot.slane %v731_v14, 4  ;;  %v639_v5 = vld [vmem:[%s3962_s19 + $0x3c] sm:$0xe] }
  0x62   : > { %v727_v22 = vrot.slane %v4026_v16, 5  ;;  %v3384_v36 = vrot.slane %v636_v4, 9  ;;  %v618_v27 = vrot.slane %v617_v17, 4  ;;  %v2189_v1 = vunpack.c.l.b16 %v732_v37 }
  0x63   : > { %2229 = vrot.lane.b32.xlu1 %v2213_v54, %s3911_s21  ;;  %v628_v30 = vrot.slane %v627_v18, 4  ;;  %v725_v2 = vsel %vm4192_vm5, %v3385_v19, %v724_v20  ;;  %v735_v12 = vsel %vm4192_vm5, %v733_v43, %v734_v15  ;;  %v726_v32 = vrot.slane %v724_v20, 4  ;;  %v644_v18 = vld [vmem:[%s3962_s19 + $0x78] sm:$0xe] }
  0x64   : > { %v2187_v34 = vunpack.c.l.b16 %v725_v2  ;;  %v717_v39 = vrot.slane %v3976_v9, 5  ;;  %v623_v16 = vsel %vm3990_vm2, %v618_v27, %v622_v3  ;;  %v2190_v41 = vunpack.c.l.b16 %v735_v12  ;;  %v640_v9 = vld [vmem:[%s3962_s19 + $0x48] sm:$0xe] }
  0x65   : > { %v633_v38 = vsel %vm3990_vm2, %v628_v30, %v632_v7  ;;  %v720_v42 = vrot.slane %v3979_v10, 5  ;;  %v2131_v46 = vunpack.c.l.b16 %v623_v16  ;;  %v728_v48 = vsel %vm4192_vm5, %v726_v32, %v727_v22  ;;  %v643_v30 = vld [vmem:[%s3962_s19 + $0x6c] sm:$0xe] }
  0x66   : > { %v2132_v47 = vunpack.c.l.b16 %v633_v38  ;;  %v718_v49 = vsel %vm4192_vm5, %v3384_v36, %v717_v39  ;;  %v2217_v44 = vpack.c.b16 %v2190_v41, %v2189_v1  ;;  %v2188_v51 = vunpack.c.l.b16 %v728_v48 }
  0x67   : > { %v719_v52 = vrot.slane %v717_v39, 4  ;;  %v2185_v53 = vunpack.c.l.b16 %v718_v49  ;;  %v3389_v0 = vrot.slane %v641_v45, 9  ;;  %v752_v3 = vrot.slane %v4066_v23, 5 }
  0x68   : > { %v2148_v54 = vpack.c.b16 %v2132_v47, %v2131_v46  ;;  %v755_v10 = vrot.slane %v4071_v31, 5  ;;  %2237 = vrot.lane.b32.xlu2 %v2217_v44, %s3911_s21  ;;  %v2216_v4 = vpack.c.b16 %v2188_v51, %v2187_v34  ;;  %v3388_v8 = vrot.slane %v640_v9, 9 }
  0x69   : > { %v721_v7 = vsel %vm4192_vm5, %v719_v52, %v720_v42  ;;  %v745_v14 = vrot.slane %v4081_v55, 5  ;;  %v753_v17 = vsel %vm4192_vm5, %v3389_v0, %v752_v3  ;;  %v754_v23 = vrot.slane %v752_v3, 4  ;;  %v642_v42 = vld [vmem:[%s3962_s19 + $0x60] sm:$0xe]  ;;  %v646_v3 = vld [vmem:[%s3962_s19 + $0x90] sm:$0xe] }
  0x6a   : > { %2179 = vrot.lane.b32.xlu0 %v2148_v54, %s3910_s20  ;;  %v2186_v15 = vunpack.c.l.b16 %v721_v7  ;;  %v748_v31 = vrot.slane %v4086_v63, 5  ;;  %v2195_v19 = vunpack.c.l.b16 %v753_v17  ;;  %v3387_v43 = vrot.slane %v639_v5, 9  ;;  %s5654_s20 = scalar_lea.vmem %s5793_s3, %s3784_s17 }
  0x6b   : > { %2235 = vrot.lane.b32.xlu1 %v2216_v4, %s3911_s21  ;;  %v746_v20 = vsel %vm4192_vm5, %v3388_v8, %v745_v14  ;;  %v747_v37 = vrot.slane %v745_v14, 4  ;;  %v756_v22 = vsel %vm4192_vm5, %v754_v23, %v755_v10  ;;  %v738_v27 = vrot.slane %v4008_v56, 5 }
  0x6c   : > { %v2215_v55 = vpack.c.b16 %v2186_v15, %v2185_v53  ;;  %v2193_v36 = vunpack.c.l.b16 %v746_v20  ;;  %v2196_v1 = vunpack.c.l.b16 %v756_v22  ;;  %v741_v2 = vrot.slane %v4013_v62, 5  ;;  %v645_v15 = vld [vmem:[%s3962_s19 + $0x84] sm:$0xe] }
  0x6d   : > { %v749_v63 = vsel %vm4192_vm5, %v747_v37, %v748_v31  ;;  %v3392_v12 = vrot.slane %v644_v18, 9  ;;  %v739_v34 = vsel %vm4192_vm5, %v3387_v43, %v738_v27  ;;  %v740_v39 = vrot.slane %v738_v27, 4 }
  0x6e   : > { %v2194_v32 = vunpack.c.l.b16 %v749_v63  ;;  %v773_v16 = vrot.slane %v4113_v50, 5  ;;  %v2220_v38 = vpack.c.b16 %v2196_v1, %v2195_v19  ;;  %v776_v41 = vrot.slane %v4116_v58, 5  ;;  %v647_v58 = vld [vmem:[%s3962_s19 + $0x9c] sm:$0xe] }
  0x6f   : > { %v3391_v56 = vrot.slane %v643_v30, 9  ;;  %v742_v46 = vsel %vm4192_vm5, %v740_v39, %v741_v2  ;;  %v2191_v48 = vunpack.c.l.b16 %v739_v34  ;;  %v766_v50 = vrot.slane %v4126_v21, 5 }
  0x70   : > { %v2219_v45 = vpack.c.b16 %v2194_v32, %v2193_v36  ;;  %v774_v62 = vsel %vm4192_vm5, %v3392_v12, %v773_v16  ;;  %v775_v47 = vrot.slane %v773_v16, 4  ;;  %2243 = vrot.lane.b32.xlu2 %v2220_v38, %s3911_s21  ;;  %v769_v9 = vrot.slane %v4131_v33, 5  ;;  %v649_v36 = vld [vmem:[%s3962_s19 + $0xb4] sm:$0xe] }
  0x71   : > { %v2201_v49 = vunpack.c.l.b16 %v774_v62  ;;  %v2192_v44 = vunpack.c.l.b16 %v742_v46  ;;  %v3390_v52 = vrot.slane %v642_v42, 9  ;;  %v759_v53 = vrot.slane %v4053_v61, 5 }
  0x72   : > { %2233 = vrot.lane.b32.xlu0 %v2215_v55, %s3911_s21  ;;  %v777_v51 = vsel %vm4192_vm5, %v775_v47, %v776_v41  ;;  %v767_v0 = vsel %vm4192_vm5, %v3391_v56, %v766_v50  ;;  %v768_v21 = vrot.slane %v766_v50, 4  ;;  %v762_v33 = vrot.slane %v4056_v6, 5 }
  0x73   : > { %2241 = vrot.lane.b32.xlu1 %v2219_v45, %s3911_s21  ;;  %v2202_v54 = vunpack.c.l.b16 %v777_v51  ;;  %v2199_v10 = vunpack.c.l.b16 %v767_v0  ;;  %v761_v5 = vrot.slane %v759_v53, 4  ;;  %v3395_v4 = vrot.slane %v647_v58, 9 }
  0x74   : > { %v770_v8 = vsel %vm4192_vm5, %v768_v21, %v769_v9  ;;  %v760_v61 = vsel %vm4192_vm5, %v3390_v52, %v759_v53  ;;  %v794_v14 = vrot.slane %v4156_v24, 5  ;;  %v2218_v17 = vpack.c.b16 %v2192_v44, %v2191_v48  ;;  %v648_v48 = vld [vmem:[%s3962_s19 + $0xa8] sm:$0xe]  ;;  %v3801_v52 = vld [vmem:[%s3962_s19 + $0xc] sm:$0xff] }
  0x75   : > { %v2223_v7 = vpack.c.b16 %v2202_v54, %v2201_v49  ;;  %v2200_v23 = vunpack.c.l.b16 %v770_v8  ;;  %v797_v31 = vrot.slane %v4162_v40, 5  ;;  %v3394_v6 = vrot.slane %v646_v3, 9  ;;  %v3804_v3 = vld [vmem:[%s3962_s19 + $0x30] sm:$0xff] }
  0x76   : > { %v763_v18 = vsel %vm4192_vm5, %v761_v5, %v762_v33  ;;  %v795_v19 = vsel %vm4192_vm5, %v3395_v4, %v794_v14  ;;  %v796_v20 = vrot.slane %v794_v14, 4  ;;  %v787_v37 = vrot.slane %v4173_v11, 5  ;;  %v3803_v5 = vld [vmem:[%s3962_s19 + $0x24] sm:$0xff]  ;;  %v4355_v8 = vld [vmem:[%s3962_s19 + $0x70] sm:$0xf]  ;;  %v3807_v14 = vld [vmem:[%s3962_s19 + $0x54] sm:$0xff] }
  0x77   : > { %v2222_v43 = vpack.c.b16 %v2200_v23, %v2199_v10  ;;  %v2197_v55 = vunpack.c.l.b16 %v760_v61  ;;  %v790_v22 = vrot.slane %v4176_v13, 5  ;;  %v3393_v24 = vrot.slane %v645_v15, 9  ;;  %v3400_v61 = vld [vmem:[%s3962_s19 + $0x18] sm:$0xf]  ;;  %v4360_v23 = vld [vmem:[%s3962_s19 + $0x1c] sm:$0xf] }
  0x78   : > { %2249 = vrot.lane.b32.xlu2 %v2223_v7, %s3911_s21  ;;  %v798_v40 = vsel %vm4192_vm5, %v796_v20, %v797_v31  ;;  %v2207_v27 = vunpack.c.l.b16 %v795_v19  ;;  %v788_v30 = vsel %vm4192_vm5, %v3394_v6, %v787_v37  ;;  %v789_v1 = vrot.slane %v787_v37, 4  ;;  %v4341_v21 = vpop.permute.xlu2 %2157  ;;  %v3414_v7 = vld [vmem:[%s3962_s19 + $0x6c] sm:$0xf]  ;;  %v3802_v31 = vld [vmem:[%s3962_s19 + $0x18] sm:$0xff] }
  0x79   : > { %v2198_v63 = vunpack.c.l.b16 %v763_v18  ;;  %v2208_v11 = vunpack.c.l.b16 %v798_v40  ;;  %v780_v2 = vrot.slane %v4098_v28, 5  ;;  %v783_v13 = vrot.slane %v4101_v29, 5  ;;  %v3806_v6 = vld [vmem:[%s3962_s19 + $0x48] sm:$0xff]  ;;  %v4370_v40 = vld [vmem:[%s3962_s19 + $0x74] sm:$0x1] }
  0x7a   : > { %2239 = vrot.lane.b32.xlu0 %v2218_v17, %s3911_s21  ;;  %v791_v12 = vsel %vm4192_vm5, %v789_v1, %v790_v22  ;;  %v2205_v32 = vunpack.c.l.b16 %v788_v30  ;;  %v3397_v34 = vrot.slane %v649_v36, 9  ;;  %v808_v39 = vrot.slane %v4208_v25, 5  ;;  %v3398_v36 = vld [vmem:[%s3962_s19 + $0xc] sm:$0xf]  ;;  %v4373_v1 = vld [vmem:[%s3962_s19 + $0x20] sm:$0x1] }
  0x7b   : > { %2247 = vrot.lane.b32.xlu1 %v2222_v43, %s3911_s21  ;;  %v2206_v16 = vunpack.c.l.b16 %v791_v12  ;;  %v781_v38 = vsel %vm4192_vm5, %v3393_v24, %v780_v2  ;;  %v782_v41 = vrot.slane %v780_v2, 4  ;;  %v811_v56 = vrot.slane %v4216_v35, 5 }
  0x7c   : > { %v2226_v28 = vpack.c.b16 %v2208_v11, %v2207_v27  ;;  %v2203_v42 = vunpack.c.l.b16 %v781_v38  ;;  %v810_v29 = vrot.slane %v808_v39, 4  ;;  %v2221_v45 = vpack.c.b16 %v2198_v63, %v2197_v55  ;;  %v3790_v38 = vld [vmem:[%s3962_s19 + $0x3c] sm:$0xff] }
  0x7d   : > { %v784_v46 = vsel %vm4192_vm5, %v782_v41, %v783_v13  ;;  %v2225_v62 = vpack.c.b16 %v2206_v16, %v2205_v32  ;;  %v801_v25 = vrot.slane %v4143_v57, 5  ;;  %v809_v49 = vsel %vm4192_vm5, %v3397_v34, %v808_v39  ;;  %v4379_v39 = vld [vmem:[%s3962_s19 + $0x10] sm:$0xf] }
  0x7e   : > { %v2204_v47 = vunpack.c.l.b16 %v784_v46  ;;  %v812_v50 = vsel %vm4192_vm5, %v810_v29, %v811_v56  ;;  %v3396_v9 = vrot.slane %v648_v48, 9  ;;  %v2211_v58 = vunpack.c.l.b16 %v809_v49  ;;  %v3789_v16 = vld [vmem:[%s3962_s19 + $0x30] sm:$0xff]  ;;  %v3805_v49 = vld [vmem:[%s3962_s19 + $0x3c] sm:$0xff] }
  0x7f   : > { %v2212_v44 = vunpack.c.l.b16 %v812_v50  ;;  %v803_v51 = vrot.slane %v801_v25, 4  ;;  %v804_v57 = vrot.slane %v4146_v59, 5  ;;  %v1058_v15 = vshrl.u32 %v3414_v7, 16  ;;  %v3810_v50 = vld [vmem:[%s3962_s19 + $0x78] sm:$0xff] }
  0x80   : > { %2255 = vrot.lane.b32.xlu2 %v2226_v28, %s3911_s21  ;;  %v2224_v35 = vpack.c.b16 %v2204_v47, %v2203_v42  ;;  %v802_v54 = vsel %vm4192_vm5, %v3396_v9, %v801_v25  ;;  %v1061_v17 = vshll.u32 %v3414_v7, 16  ;;  %v1067_v18 = vshll.u32 %v4355_v8, 16 }
  0x81   : > { %v2228_v53 = vpack.c.b16 %v2212_v44, %v2211_v58  ;;  %v805_v0 = vsel %vm4192_vm5, %v803_v51, %v804_v57  ;;  %v2209_v59 = vunpack.c.l.b16 %v802_v54  ;;  %v1071_v19 = vshrl.u32 %v4355_v8, 16  ;;  %v3787_v44 = vld [vmem:[%s3962_s19 + $0x18] sm:$0xff]  ;;  %v3785_v51 = vld [vmem:[%s3962_s19] sm:$0xff] }
  0x82   : > { %2245 = vrot.lane.b32.xlu0 %v2221_v45, %s3911_s21  ;;  %v2210_v33 = vunpack.c.l.b16 %v805_v0  ;;  %v890_v20 = vshrl.u32 %v3400_v61, 16  ;;  %v893_v37 = vshll.u32 %v3400_v61, 16  ;;  %v1060_v43 = vrot.slane %v1058_v15, 4  ;;  %v3793_v45 = vld [vmem:[%s3962_s19 + $0x60] sm:$0xff]  ;;  %v4396_v0 = vld [vmem:[%s3962_s19 + $0x14] sm:$0x1] }
  0x83   : > { %2253 = vrot.lane.b32.xlu1 %v2225_v62, %s3911_s21  ;;  %v1063_v55 = vrot.slane %v1061_v17, 5  ;;  %v899_v22 = vshll.u32 %v4360_v23, 16  ;;  %v903_v24 = vshrl.u32 %v4360_v23, 16  ;;  %v1069_v27 = vrot.slane %v1067_v18, 5  ;;  %v3422_v17 = vld [vmem:[%s3962_s19 + $0x9c] sm:$0xf] }
  0x84   : > { %v2227_v10 = vpack.c.b16 %v2210_v33, %v2209_v59  ;;  %v1073_v30 = vrot.slane %v1071_v19, 4  ;;  %v1077_v11 = vshll.u32 %v4370_v40, 16  ;;  %v892_v2 = vrot.slane %v890_v20, 4  ;;  %v4423_v19 = vld [vmem:[%s3962_s19 + $0xa0] sm:$0xf]  ;;  %v3796_v20 = vld [vmem:[%s3962_s19 + $0x84] sm:$0xff] }
  0x85   : > { %v1064_v63 = vor.u32 %v1063_v55, %v1060_v43  ;;  %v895_v12 = vrot.slane %v893_v37, 5  ;;  %v901_v32 = vrot.slane %v899_v22, 5  ;;  %v905_v34 = vrot.slane %v903_v24, 4  ;;  %v4434_v22 = vld [vmem:[%s3962_s19 + $0xa4] sm:$0x1] }
  0x86   : > { %v4350_v4 = vpop.permute.xlu2 %2159  ;;  %v1074_v13 = vor.u32 %v1073_v30, %v1069_v27  ;;  %v1079_v28 = vrot.slane %v1077_v11, 5  ;;  %v909_v42 = vshll.u32 %v4373_v1, 16  ;;  %v866_v29 = vshrl.u32 %v3398_v36, 16  ;;  %v3454_v11 = vld [vmem:[%s3962_s19 + $0x6c] sm:$0xe] }
  0x87   : > { %v1065_v56 = vrot.slane %v1064_v63, 4  ;;  %v896_v47 = vor.u32 %v895_v12, %v892_v2  ;;  %v906_v48 = vor.u32 %v905_v34, %v901_v32  ;;  %v869_v25 = vshll.u32 %v3398_v36, 16  ;;  %v3458_v63 = vld [vmem:[%s3962_s19 + $0x9c] sm:$0xe] }
  0x88   : > { %2325 = vrot.lane.b32.xlu2 %v3801_v52, %s3912_s22  ;;  %v1075_v62 = vrot.slane %v1074_v13, 4  ;;  %v868_v9 = vrot.slane %v866_v29, 4  ;;  %v875_v58 = vshll.u32 %v4379_v39, 16  ;;  %v4400_v59 = vsel %vm2773_vm6, %v3789_v16, %v4341_v21  ;;  %v3788_v13 = vld [vmem:[%s3962_s19 + $0x24] sm:$0xff] }
  0x89   : > { %v1070_v57 = vsel %vm3990_vm2, %v1065_v56, %v1069_v27  ;;  %v907_v54 = vrot.slane %v906_v48, 4  ;;  %v4404_v33 = vsel %vm2773_vm6, %v3790_v38, %v4350_v4  ;;  %v879_v7 = vshrl.u32 %v4379_v39, 16  ;;  %v3813_v38 = vld [vmem:[%s3962_s19 + $0x9c] sm:$0xff] }
  0x8a   : > { %2251 = vrot.lane.b32.xlu0 %v2224_v35, %s3911_s21  ;;  %v911_v35 = vrot.slane %v909_v42, 5  ;;  %v1080_v52 = vsel %vm3990_vm2, %v1075_v62, %v1079_v28  ;;  %v877_v15 = vrot.slane %v875_v58, 5  ;;  %v4417_v4 = vunpack.c.l.b16 %v1070_v57 }
  0x8b   : > { %2259 = vrot.lane.b32.xlu1 %v2228_v53, %s3911_s21  ;;  %v897_v53 = vrot.slane %v896_v47, 4  ;;  %v885_v18 = vshll.u32 %v4396_v0, 16  ;;  %v881_v55 = vrot.slane %v879_v7, 4  ;;  %v1399_v24 = vrot.slane %v4423_v19, 5 }
  0x8c   : > { %v912_v21 = vsel %vm3990_vm2, %v907_v54, %v911_v35  ;;  %v1154_v2 = vshrl.u32 %v3422_v17, 16  ;;  %v1402_v16 = vrot.slane %v4434_v22, 5  ;;  %v3470_v42 = vrot.slane %v3454_v11, 9 }
  0x8d   : > { %v4440_v27 = vunpack.c.l.b16 %v912_v21  ;;  %v882_v12 = vor.u32 %v881_v55, %v877_v15  ;;  %v1401_v34 = vrot.slane %v1399_v24, 4  ;;  %v887_v28 = vrot.slane %v885_v18, 5 }
  0x8e   : > { %v1371_v29 = vrot.slane %v4355_v8, 5  ;;  %v1157_v57 = vshll.u32 %v3422_v17, 16  ;;  %v1163_v21 = vshll.u32 %v4423_v19, 16  ;;  %v4483_v17 = vld [vmem:[%s3962_s19 + $0x7c] sm:$0xf]  ;;  %v1173_v18 = vshll.u32 %v4434_v22, 16 }
  0x8f   : > { %v883_v47 = vrot.slane %v882_v12, 4  ;;  %v1679_v22 = vshll.u32 %v4483_v17, 16 }
  0x90   : > { %2331 = vrot.lane.b32.xlu2 %v3804_v3, %s3912_s22  ;;  %v3809_v3 = vld [vmem:[%s3962_s19 + $0x6c] sm:$0xff]  ;;  %v4463_v8 = vsel %vm4192_vm5, %v3470_v42, %v1371_v29  ;;  %v1373_v35 = vrot.slane %v1371_v29, 4  ;;  %v3502_v42 = vld [vmem:[%s3962_s19 + $0xa8] sm:$0xf]  ;;  %v3815_v29 = vld [vmem:[%s3962_s19 + $0xb4] sm:$0xff] }
  0x91   : > { %v888_v54 = vsel %vm3990_vm2, %v883_v47, %v887_v28  ;;  %v2453_v7 = vunpack.c.l.b16 %v4463_v8  ;;  %v1681_v47 = vrot.slane %v1679_v22, 5  ;;  %v3792_v8 = vld [vmem:[%s3962_s19 + $0x54] sm:$0xff] }
  0x92   : > { %2257 = vrot.lane.b32.xlu0 %v2227_v10, %s3911_s21 }
  0x93   : > { %2329 = vrot.lane.b32.xlu1 %v3803_v5, %s3912_s22  ;;  %v871_v5 = vrot.slane %v869_v25, 5  ;;  %v1403_v25 = vsel %vm4192_vm5, %v1401_v34, %v1402_v16  ;;  %v3811_v34 = vld [vmem:[%s3962_s19 + $0x84] sm:$0xff] }
  0x94   : > { %v2154_v41 = vpop.permute.xlu1 %2153  ;;  %v2166_v46 = vpop.permute.xlu2 %2165 }
  0x95   : > { %v4409_v61 = vsel %vm2773_vm6, %v3793_v45, %v2166_v46  ;;  %v4428_v37 = vsel %vm2773_vm6, %v3787_v44, %v2154_v41  ;;  %v3808_v45 = vld [vmem:[%s3962_s19 + $0x60] sm:$0xff] }
  0x98   : > { %2337 = vrot.lane.b32.xlu2 %v3807_v14, %s3912_s22  ;;  %v2150_v10 = vpop.permute.xlu0 %2149  ;;  %v902_v14 = vsel %vm3990_vm2, %v897_v53, %v901_v32  ;;  %v3474_v32 = vrot.slane %v3458_v63, 9  ;;  %v3786_v53 = vld [vmem:[%s3962_s19 + $0xc] sm:$0xff] }
  0x99   : > { %v4431_v43 = vsel %vm2773_vm6, %v3785_v51, %v2150_v10  ;;  %v4438_v36 = vunpack.c.l.b16 %v902_v14  ;;  %v1156_v51 = vrot.slane %v1154_v2, 4  ;;  %v2462_v10 = vunpack.c.l.b16 %v1403_v25  ;;  %v3816_v2 = vld [vmem:[%s3962_s19 + $0xc0] sm:$0xff] }
  0x9a   : > { %2327 = vrot.lane.b32.xlu0 %v3802_v31, %s3912_s22  ;;  %v4419_v31 = vunpack.c.l.b16 %v1080_v52  ;;  %v1400_v48 = vsel %vm4192_vm5, %v3474_v32, %v1399_v24  ;;  %v3494_v52 = vld [vmem:[%s3962_s19 + $0x78] sm:$0xf]  ;;  %v1159_v14 = vrot.slane %v1157_v57, 5 }
  0x9b   : > { %2335 = vrot.lane.b32.xlu1 %v3806_v6, %s3912_s22  ;;  %v872_v6 = vor.u32 %v871_v5, %v868_v9  ;;  %v1374_v9 = vrot.slane %v4370_v40, 5  ;;  %v2390_v44 = vpack.c.b16 %v4440_v27, %v4438_v36  ;;  %v2461_v40 = vunpack.c.l.b16 %v1400_v48  ;;  %v3799_v48 = vld [vmem:[%s3962_s19 + $0xa8] sm:$0xff]  ;;  %v3795_v36 = vld [vmem:[%s3962_s19 + $0x78] sm:$0xff] }
  0x9c   : > { %v2397_v56 = vpack.c.b16 %v4419_v31, %v4417_v4  ;;  %v1670_v55 = vshrl.u32 %v3494_v52, 16  ;;  %v1673_v24 = vshll.u32 %v3494_v52, 16  ;;  %v1160_v63 = vor.u32 %v1159_v14, %v1156_v51  ;;  %v3450_v4 = vld [vmem:[%s3962_s19 + $0x3c] sm:$0xe] }
  0x9d   : > { %v873_v30 = vrot.slane %v872_v6, 4  ;;  %v1375_v6 = vsel %vm4192_vm5, %v1373_v35, %v1374_v9  ;;  %v4508_v35 = vpack.c.b16 %v2462_v10, %v2461_v40  ;;  %v1983_v10 = vrot.slane %v4483_v17, 5 }
  0x9e   : > { %v1672_v12 = vrot.slane %v1670_v55, 4  ;;  %v1675_v32 = vrot.slane %v1673_v24, 5  ;;  %v2454_v16 = vunpack.c.l.b16 %v1375_v6  ;;  %v3538_v6 = vld [vmem:[%s3962_s19 + $0xa8] sm:$0xe] }
  0x9f   : > { %v878_v62 = vsel %vm3990_vm2, %v873_v30, %v877_v15  ;;  %v1167_v15 = vshrl.u32 %v4423_v19, 16  ;;  %v4492_v30 = vunpack.c.l.b16 %v888_v54  ;;  %v1165_v19 = vrot.slane %v1163_v21, 5 }
  0xa0   : > { %2343 = vrot.lane.b32.xlu2 %v3810_v50, %s3912_s22  ;;  %v1766_v54 = vshrl.u32 %v3502_v42, 16  ;;  %v4513_v14 = vpack.c.b16 %v2454_v16, %v2453_v7 }
  0xa1   : > { %v1169_v11 = vrot.slane %v1167_v15, 4  ;;  %v4516_v15 = vld [vmem:[%s3962_s19 + $0xb0] sm:$0x1] }
  0xa2   : > { %2333 = vrot.lane.b32.xlu0 %v3805_v49, %s3912_s22  ;;  %v2156_v41 = vpop.permute.xlu1 %2155  ;;  %v2172_v46 = vpop.permute.xlu2 %2171  ;;  %v3812_v49 = vld [vmem:[%s3962_s19 + $0x90] sm:$0xff]  ;;  %v2014_v7 = vrot.slane %v4516_v15, 5 }
  0xa3   : > { %2341 = vrot.lane.b32.xlu1 %v3809_v3, %s3912_s22  ;;  %v4459_v50 = vsel %vm2773_vm6, %v3796_v20, %v2172_v46  ;;  %v4467_v58 = vsel %vm2773_vm6, %v3788_v13, %v2156_v41  ;;  %v4476_v3 = vunpack.c.l.b16 %v878_v62  ;;  %v4490_v20 = vld [vmem:[%s3962_s19 + $0x80] sm:$0x1]  ;;  %v1683_v41 = vshrl.u32 %v4483_v17, 16 }
  0xa4   : > { %v1689_v28 = vshll.u32 %v4490_v20, 16  ;;  %v1175_v46 = vrot.slane %v1173_v18, 5  ;;  %v1676_v62 = vor.u32 %v1675_v32, %v1672_v12  ;;  %v1986_v16 = vrot.slane %v4490_v20, 5 }
  0xa5   : > { %v1685_v51 = vrot.slane %v1683_v41, 4 }
  0xa6   : > { %v1677_v57 = vrot.slane %v1676_v62, 4  ;;  %v1691_v52 = vrot.slane %v1689_v28, 5 }
  0xa7   : > { %v1686_v21 = vor.u32 %v1685_v51, %v1681_v47 }
  0xa8   : > { %2349 = vrot.lane.b32.xlu2 %v3813_v38, %s3912_s22  ;;  %v2152_v5 = vpop.permute.xlu0 %2151  ;;  %v1170_v38 = vor.u32 %v1169_v11, %v1165_v19  ;;  %v3534_v11 = vld [vmem:[%s3962_s19 + $0x78] sm:$0xe] }
  0xa9   : > { %v4496_v13 = vsel %vm2773_vm6, %v3786_v53, %v2152_v5  ;;  %v3503_v53 = vld [vmem:[%s3962_s19 + $0xac] sm:$0xf]  ;;  %v1769_v5 = vshll.u32 %v3502_v42, 16  ;;  %v1687_v12 = vrot.slane %v1686_v21, 4  ;;  %v3550_v17 = vrot.slane %v3534_v11, 9 }
  0xaa   : > { %2339 = vrot.lane.b32.xlu0 %v3808_v45, %s3912_s22  ;;  %v1161_v45 = vrot.slane %v1160_v63, 4  ;;  %v1171_v9 = vrot.slane %v1170_v38, 4  ;;  %v2011_v40 = vrot.slane %v3503_v53, 5  ;;  %v3554_v63 = vrot.slane %v3538_v6, 9  ;;  %v3814_v38 = vld [vmem:[%s3962_s19 + $0xa8] sm:$0xff] }
  0xab   : > { %2347 = vrot.lane.b32.xlu1 %v3812_v49, %s3912_s22  ;;  %v2389_v49 = vpack.c.b16 %v4492_v30, %v4476_v3  ;;  %v1692_v28 = vsel %vm3990_vm2, %v1687_v12, %v1691_v52  ;;  %v1775_v52 = vshll.u32 %v3503_v53, 16  ;;  %v1779_v21 = vshrl.u32 %v3503_v53, 16  ;;  %v4561_v6 = vld [vmem:[%s3962_s19 + $0x40] sm:$0xf] }
  0xac   : > { %v1166_v55 = vsel %vm3990_vm2, %v1161_v45, %v1165_v19  ;;  %v1176_v24 = vsel %vm3990_vm2, %v1171_v9, %v1175_v46  ;;  %v2013_v32 = vrot.slane %v2011_v40, 4  ;;  %v1985_v19 = vrot.slane %v1983_v10, 4  ;;  %v3791_v9 = vld [vmem:[%s3962_s19 + $0x48] sm:$0xff] }
  0xad   : > { %v4545_v45 = vunpack.c.l.b16 %v1166_v55  ;;  %v4547_v46 = vunpack.c.l.b16 %v1176_v24  ;;  %v4566_v55 = vld [vmem:[%s3962_s19 + $0x44] sm:$0x1]  ;;  %v1343_v31 = vrot.slane %v4561_v6, 5  ;;  %v1777_v53 = vrot.slane %v1775_v52, 5 }
  0xae   : > { %v2015_v42 = vsel %vm4192_vm5, %v2013_v32, %v2014_v7  ;;  %v1987_v62 = vsel %vm4192_vm5, %v1985_v19, %v1986_v16  ;;  %v1781_v24 = vrot.slane %v1779_v21, 4  ;;  %v3446_v7 = vld [vmem:[%s3962_s19 + $0xc] sm:$0xe]  ;;  %v1346_v12 = vrot.slane %v4566_v55, 5 }
  0xaf   : > { %v2718_v51 = vunpack.c.l.b16 %v2015_v42  ;;  %v975_v3 = vshrl.u32 %v4561_v6, 16  ;;  %v981_v30 = vshll.u32 %v4566_v55, 16 }
  0xb0   : > { %v2178_v25 = vpop.permute.xlu2 %2177  ;;  %2355 = vrot.lane.b32.xlu2 %v3816_v2, %s3912_s22  ;;  %v2164_v18 = vpop.permute.xlu1 %2163  ;;  %v1682_v2 = vsel %vm3990_vm2, %v1677_v57, %v1681_v47  ;;  %v4553_v47 = vunpack.c.l.b16 %v1692_v28  ;;  %v1782_v27 = vor.u32 %v1781_v24, %v1777_v53  ;;  %v3462_v28 = vrot.slane %v3446_v7, 9 }
  0xb1   : > { %v4530_v22 = vsel %vm2773_vm6, %v3799_v48, %v2178_v25  ;;  %v4537_v41 = vsel %vm2773_vm6, %v3792_v8, %v2164_v18  ;;  %v4549_v20 = vunpack.c.l.b16 %v1682_v2  ;;  %v1768_v25 = vrot.slane %v1766_v54, 4 }
  0xb2   : > { %2345 = vrot.lane.b32.xlu0 %v3811_v34, %s3912_s22  ;;  %v2012_v34 = vsel %vm4192_vm5, %v3554_v63, %v2011_v40  ;;  %v1771_v8 = vrot.slane %v1769_v5, 5  ;;  %v2710_v5 = vunpack.c.l.b16 %v1987_v62  ;;  %v1785_v18 = vshll.u32 %v4516_v15, 16 }
  0xb3   : > { %2353 = vrot.lane.b32.xlu1 %v3815_v29, %s3912_s22  ;;  %v1984_v29 = vsel %vm4192_vm5, %v3550_v17, %v1983_v10  ;;  %v2717_v48 = vunpack.c.l.b16 %v2012_v34  ;;  %v3466_v63 = vrot.slane %v3450_v4, 9  ;;  %v2401_v15 = vpack.c.b16 %v4547_v46, %v4545_v45  ;;  %v3406_v17 = vld [vmem:[%s3962_s19 + $0x3c] sm:$0xf] }
  0xb4   : > { %v2709_v57 = vunpack.c.l.b16 %v1984_v29  ;;  %v1772_v10 = vor.u32 %v1771_v8, %v1768_v25  ;;  %v1345_v2 = vrot.slane %v1343_v31, 4  ;;  %v2653_v19 = vpack.c.b16 %v4553_v47, %v4549_v20  ;;  %v3798_v46 = vld [vmem:[%s3962_s19 + $0x9c] sm:$0xff] }
  0xb5   : > { %v1787_v16 = vrot.slane %v1785_v18, 5  ;;  %v4594_v42 = vpack.c.b16 %v2718_v51, %v2717_v48  ;;  %v1783_v25 = vrot.slane %v1782_v27, 4  ;;  %v965_v52 = vshll.u32 %v3406_v17, 16 }
  0xb6   : > { %v2162_v40 = vpop.permute.xlu0 %2161  ;;  %v1773_v11 = vrot.slane %v1772_v10, 4  ;;  %v4596_v29 = vpack.c.b16 %v2710_v5, %v2709_v57  ;;  %v1318_v48 = vrot.slane %v4396_v0, 5  ;;  %v971_v51 = vshll.u32 %v4561_v6, 16  ;;  %v3478_v57 = vld [vmem:[%s3962_s19 + $0x18] sm:$0xf] }
  0xb7   : > { %v4583_v32 = vsel %vm2773_vm6, %v3791_v9, %v2162_v40  ;;  %v962_v9 = vshrl.u32 %v3406_v17, 16  ;;  %v1788_v21 = vsel %vm3990_vm2, %v1783_v25, %v1787_v16  ;;  %v967_v40 = vrot.slane %v965_v52, 5  ;;  %v4654_v52 = vld [vmem:[%s3962_s19 + $0x50] sm:$0x1] }
  0xb8   : > { %2421 = vrot.lane.b32.xlu2 %v2397_v56, %s3913_s23  ;;  %v1778_v62 = vsel %vm3990_vm2, %v1773_v11, %v1777_v53  ;;  %v973_v10 = vrot.slane %v971_v51, 5  ;;  %v1478_v53 = vshrl.u32 %v3478_v57, 16  ;;  %v4636_v24 = vunpack.c.l.b16 %v1788_v21 }
  0xb9   : > { %v2232_v54 = vpop.permute.xlu2 %2231  ;;  %v4620_v5 = vunpack.c.l.b16 %v1778_v62  ;;  %v1958_v45 = vrot.slane %v4654_v52, 5 }
  0xba   : > { %2351 = vrot.lane.b32.xlu0 %v3814_v38, %s3912_s22  ;;  %v4576_v56 = vsel %vm2822_vm7, %v4496_v13, %v2232_v54  ;;  %v1315_v13 = vrot.slane %v4379_v39, 5  ;;  %v1347_v38 = vsel %vm4192_vm5, %v1345_v2, %v1346_v12  ;;  %v964_v54 = vrot.slane %v962_v9, 4  ;;  %v3486_v12 = vld [vmem:[%s3962_s19 + $0x48] sm:$0xf] }
  0xbb   : > { %2407 = vrot.lane.b32.xlu1 %v2390_v44, %s3913_s23  ;;  %v1344_v44 = vsel %vm4192_vm5, %v3466_v63, %v1343_v31  ;;  %v2446_v8 = vunpack.c.l.b16 %v1347_v38  ;;  %v977_v63 = vrot.slane %v975_v3, 4  ;;  %v1480_v11 = vrot.slane %v1478_v53, 4 }
  0xbc   : > { %v2445_v39 = vunpack.c.l.b16 %v1344_v44  ;;  %v1317_v47 = vrot.slane %v1315_v13, 4  ;;  %v968_v31 = vor.u32 %v967_v40, %v964_v54  ;;  %v983_v44 = vrot.slane %v981_v30, 5 }
  0xbd   : > { %v978_v27 = vor.u32 %v977_v63, %v973_v10 }
  0xbe   : > { %v2170_v34 = vpop.permute.xlu1 %2169  ;;  %v4631_v4 = vpack.c.b16 %v2446_v8, %v2445_v39  ;;  %v1319_v6 = vsel %vm4192_vm5, %v1317_v47, %v1318_v48  ;;  %v969_v7 = vrot.slane %v968_v31, 4  ;;  %v4650_v39 = vld [vmem:[%s3962_s19 + $0x4c] sm:$0xf]  ;;  %v1574_v47 = vshrl.u32 %v3486_v12, 16 }
  0xbf   : > { %v4603_v20 = vsel %vm2773_vm6, %v3795_v36, %v2170_v34  ;;  %v3829_v36 = vld [vmem:[%s3962_s19 + $0xa8] sm:$0xff]  ;;  %v2438_v38 = vunpack.c.l.b16 %v1319_v6  ;;  %v979_v8 = vrot.slane %v978_v27, 4  ;;  %v1577_v48 = vshll.u32 %v3486_v12, 16  ;;  %v3825_v12 = vld [vmem:[%s3962_s19 + $0x78] sm:$0xff] }
  0xc0   : > { %2509 = vrot.lane.b32.xlu2 %v4508_v35, %s3914_s24  ;;  %v4616_v35 = vsel %vm4192_vm5, %v3462_v28, %v1315_v13  ;;  %v3794_v34 = vld [vmem:[%s3962_s19 + $0x6c] sm:$0xff]  ;;  %v974_v28 = vsel %vm3990_vm2, %v969_v7, %v973_v10  ;;  %v1955_v54 = vrot.slane %v4650_v39, 5 }
  0xc1   : > { %v2437_v55 = vunpack.c.l.b16 %v4616_v35  ;;  %v4660_v51 = vunpack.c.l.b16 %v974_v28  ;;  %v3530_v35 = vld [vmem:[%s3962_s19 + $0x48] sm:$0xe] }
  0xc2   : > { %2405 = vrot.lane.b32.xlu0 %v2389_v49, %s3913_s23  ;;  %v2238_v0 = vpop.permute.xlu2 %2237  ;;  %v4625_v49 = vld [vmem:[%s3962_s19 + $0x1c] sm:$0xf]  ;;  %v3546_v3 = vrot.slane %v3530_v35, 9  ;;  %v1957_v53 = vrot.slane %v1955_v54, 4  ;;  %v3455_v35 = vld [vmem:[%s3962_s19 + $0x78] sm:$0xe] }
  0xc3   : > { %2501 = vrot.lane.b32.xlu1 %v4513_v14, %s3914_s24  ;;  %v4629_v18 = vsel %vm2822_vm7, %v4400_v59, %v2238_v0  ;;  %v4634_v14 = vld [vmem:[%s3962_s19 + $0x20] sm:$0x1]  ;;  %v1481_v59 = vshll.u32 %v3478_v57, 16  ;;  %v1487_v2 = vshll.u32 %v4625_v49, 16  ;;  %v1491_v13 = vshrl.u32 %v4625_v49, 16 }
  0xc4   : > { %v1497_v17 = vshll.u32 %v4634_v14, 16  ;;  %v2168_v16 = vpop.permute.xlu0 %2167  ;;  %v984_v0 = vsel %vm3990_vm2, %v979_v8, %v983_v44  ;;  %v1956_v7 = vsel %vm4192_vm5, %v3546_v3, %v1955_v54  ;;  %v1959_v27 = vsel %vm4192_vm5, %v1957_v53, %v1958_v45  ;;  %v3797_v54 = vld [vmem:[%s3962_s19 + $0x90] sm:$0xff] }
  0xc5   : > { %v1483_v62 = vrot.slane %v1481_v59, 5  ;;  %v1489_v25 = vrot.slane %v1487_v2, 5  ;;  %v1493_v9 = vrot.slane %v1491_v13, 4  ;;  %v4674_v30 = vunpack.c.l.b16 %v984_v0 }
  0xc6   : > { %v1499_v21 = vrot.slane %v1497_v17, 5  ;;  %v1927_v59 = vrot.slane %v4625_v49, 5  ;;  %v4680_v2 = vsel %vm2773_vm6, %v3794_v34, %v2168_v16  ;;  %v4689_v44 = vpack.c.b16 %v2438_v38, %v2437_v55 }
  0xc7   : > { %v1484_v57 = vor.u32 %v1483_v62, %v1480_v11  ;;  %v1494_v10 = vor.u32 %v1493_v9, %v1489_v25  ;;  %v2701_v17 = vunpack.c.l.b16 %v1956_v7  ;;  %v2702_v49 = vunpack.c.l.b16 %v1959_v27  ;;  %v4728_v7 = vld [vmem:[%s3962_s19 + $0x80] sm:$0x1] }
  0xc8   : > { %2677 = vrot.lane.b32.xlu2 %v2653_v19, %s3915_s25  ;;  %v3526_v19 = vld [vmem:[%s3962_s19 + $0x18] sm:$0xe]  ;;  %v1929_v28 = vrot.slane %v1927_v59, 4  ;;  %v1930_v62 = vrot.slane %v4634_v14, 5  ;;  %v2393_v55 = vpack.c.b16 %v4674_v30, %v4660_v51  ;;  %v1579_v8 = vrot.slane %v1577_v48, 5 }
  0xc9   : > { %v1485_v31 = vrot.slane %v1484_v57, 4  ;;  %v1495_v63 = vrot.slane %v1494_v10, 4  ;;  %v3542_v11 = vrot.slane %v3526_v19, 9  ;;  %v4716_v48 = vpack.c.b16 %v2702_v49, %v2701_v17  ;;  %v3424_v10 = vld [vmem:[%s3962_s19 + $0xa8] sm:$0xf] }
  0xca   : > { %2429 = vrot.lane.b32.xlu0 %v2401_v15, %s3913_s23  ;;  %v2244_v40 = vpop.permute.xlu2 %2243  ;;  %v1931_v14 = vsel %vm4192_vm5, %v1929_v28, %v1930_v62  ;;  %v1593_v0 = vshll.u32 %v4654_v52, 16  ;;  %v4745_v49 = vld [vmem:[%s3962_s19 + $0xb0] sm:$0x1]  ;;  %v3416_v28 = vld [vmem:[%s3962_s19 + $0x78] sm:$0xf] }
  0xcb   : > { %2605 = vrot.lane.b32.xlu1 %v3829_v36, %s3916_s26  ;;  %v4672_v15 = vsel %vm2822_vm7, %v4537_v41, %v2244_v40  ;;  %v2657_v41 = vpack.c.b16 %v4636_v24, %v4620_v5  ;;  %v1490_v36 = vsel %vm3990_vm2, %v1485_v31, %v1489_v25  ;;  %v1500_v13 = vsel %vm3990_vm2, %v1495_v63, %v1499_v21 }
  0xcc   : > { %v1928_v16 = vsel %vm4192_vm5, %v3542_v11, %v1927_v59  ;;  %v4703_v38 = vunpack.c.l.b16 %v1490_v36  ;;  %v1576_v25 = vrot.slane %v1574_v47, 4  ;;  %v4706_v57 = vunpack.c.l.b16 %v1500_v13 }
  0xcd   : > { %v2176_v6 = vpop.permute.xlu1 %2175  ;;  %v1583_v21 = vshll.u32 %v4650_v39, 16  ;;  %v2693_v19 = vunpack.c.l.b16 %v1928_v16  ;;  %v2694_v53 = vunpack.c.l.b16 %v1931_v14  ;;  %v1595_v63 = vrot.slane %v1593_v0, 5 }
  0xce   : > { %v4694_v34 = vsel %vm2773_vm6, %v3798_v46, %v2176_v6  ;;  %v1580_v40 = vor.u32 %v1579_v8, %v1576_v25  ;;  %v4725_v46 = vld [vmem:[%s3962_s19 + $0x7c] sm:$0xf]  ;;  %v1381_v59 = vrot.slane %v4728_v7, 5  ;;  %v1178_v36 = vshrl.u32 %v3424_v10, 16 }
  0xcf   : > { %v1378_v52 = vrot.slane %v4725_v46, 5  ;;  %v2645_v13 = vpack.c.b16 %v4706_v57, %v4703_v38  ;;  %v1181_v16 = vshll.u32 %v3424_v10, 16 }
  0xd0   : > { %2765 = vrot.lane.b32.xlu2 %v4594_v42, %s3917_s27  ;;  %v1587_v42 = vshrl.u32 %v4650_v39, 16  ;;  %v1585_v39 = vrot.slane %v1583_v21, 5  ;;  %v1581_v6 = vrot.slane %v1580_v40, 4  ;;  %v1180_v8 = vrot.slane %v1178_v36, 4 }
  0xd1   : > { %v1380_v17 = vrot.slane %v1378_v52, 4  ;;  %v4762_v21 = vpack.c.b16 %v2694_v53, %v2693_v19 }
  0xd2   : > { %2597 = vrot.lane.b32.xlu0 %v3825_v12, %s3916_s26  ;;  %v2174_v9 = vpop.permute.xlu0 %2173  ;;  %v2250_v47 = vpop.permute.xlu2 %2249  ;;  %v1589_v45 = vrot.slane %v1587_v42, 4  ;;  %v4737_v12 = vld [vmem:[%s3962_s19 + $0xac] sm:$0xf]  ;;  %v1197_v42 = vshll.u32 %v4745_v49, 16 }
  0xd3   : > { %2757 = vrot.lane.b32.xlu1 %v4596_v29, %s3917_s27  ;;  %v4722_v3 = vsel %vm2822_vm7, %v4603_v20, %v2250_v47  ;;  %v3471_v29 = vrot.slane %v3455_v35, 9  ;;  %v4740_v27 = vsel %vm2773_vm6, %v3797_v54, %v2174_v9  ;;  %v1382_v38 = vsel %vm4192_vm5, %v1380_v17, %v1381_v59  ;;  %v3821_v59 = vld [vmem:[%s3962_s19 + $0x48] sm:$0xff] }
  0xd4   : > { %v1590_v20 = vor.u32 %v1589_v45, %v1585_v39  ;;  %v1183_v9 = vrot.slane %v1181_v16, 5  ;;  %v1187_v57 = vshll.u32 %v4737_v12, 16  ;;  %v1191_v14 = vshrl.u32 %v4737_v12, 16  ;;  %v3459_v45 = vld [vmem:[%s3962_s19 + $0xa8] sm:$0xe] }
  0xd5   : > { %v2230_v31 = vpop.permute.xlu1 %2229  ;;  %v1379_v25 = vsel %vm4192_vm5, %v3471_v29, %v1378_v52  ;;  %v1082_v35 = vshrl.u32 %v3416_v28, 16  ;;  %v1199_v53 = vrot.slane %v1197_v42, 5  ;;  %v1085_v52 = vshll.u32 %v3416_v28, 16 }
  0xd6   : > { %v4733_v11 = vsel %vm2822_vm7, %v4431_v43, %v2230_v31  ;;  %v1586_v43 = vsel %vm3990_vm2, %v1581_v6, %v1585_v39  ;;  %v1591_v62 = vrot.slane %v1590_v20, 4  ;;  %v1184_v40 = vor.u32 %v1183_v9, %v1180_v8 }
  0xd7   : > { %v4769_v47 = vunpack.c.l.b16 %v1586_v43  ;;  %v1189_v0 = vrot.slane %v1187_v57, 5  ;;  %v1193_v10 = vrot.slane %v1191_v14, 4  ;;  %v2455_v19 = vunpack.c.l.b16 %v1379_v25 }
  0xd8   : > { %2493 = vrot.lane.b32.xlu2 %v4631_v4, %s3914_s24  ;;  %v1596_v4 = vsel %vm3990_vm2, %v1591_v62, %v1595_v63  ;;  %v2456_v39 = vunpack.c.l.b16 %v1382_v38  ;;  %v1084_v6 = vrot.slane %v1082_v35, 4  ;;  %v1091_v20 = vshll.u32 %v4725_v46, 16  ;;  %v3800_v62 = vld [vmem:[%s3962_s19 + $0xb4] sm:$0xff]  ;;  %v3535_v35 = vld [vmem:[%s3962_s19 + $0x84] sm:$0xe] }
  0xd9   : > { %v1194_v31 = vor.u32 %v1193_v10, %v1189_v0  ;;  %v1101_v16 = vshll.u32 %v4728_v7, 16  ;;  %v3475_v43 = vrot.slane %v3459_v45, 9  ;;  %v1406_v9 = vrot.slane %v4737_v12, 5 }
  0xda   : > { %2685 = vrot.lane.b32.xlu0 %v2657_v41, %s3915_s25  ;;  %v2256_v54 = vpop.permute.xlu2 %2255  ;;  %v4775_v41 = vunpack.c.l.b16 %v1596_v4  ;;  %v4789_v25 = vpack.c.b16 %v2456_v39, %v2455_v19  ;;  %v1093_v8 = vrot.slane %v1091_v20, 5  ;;  %v1409_v7 = vrot.slane %v4745_v49, 5 }
  0xdb   : > { %2485 = vrot.lane.b32.xlu1 %v4689_v44, %s3914_s24  ;;  %v4773_v24 = vsel %vm2822_vm7, %v4694_v34, %v2256_v54  ;;  %v1185_v44 = vrot.slane %v1184_v40, 4  ;;  %v1095_v34 = vshrl.u32 %v4725_v46, 16  ;;  %v1195_v17 = vrot.slane %v1194_v31, 4  ;;  %v3504_v31 = vld [vmem:[%s3962_s19 + $0xb4] sm:$0xf] }
  0xdc   : > { %v2180_v5 = vpop.permute.xlu0 %2179  ;;  %v1103_v42 = vrot.slane %v1101_v16, 5  ;;  %v1407_v12 = vsel %vm4192_vm5, %v3475_v43, %v1406_v9  ;;  %v1408_v49 = vrot.slane %v1406_v9, 4  ;;  %v3551_v51 = vrot.slane %v3535_v35, 9 }
  0xdd   : > { %v2236_v29 = vpop.permute.xlu1 %2235  ;;  %v1190_v36 = vsel %vm3990_vm2, %v1185_v44, %v1189_v0  ;;  %v1097_v28 = vrot.slane %v1095_v34, 4  ;;  %v1200_v46 = vsel %vm3990_vm2, %v1195_v17, %v1199_v53  ;;  %v2463_v44 = vunpack.c.l.b16 %v1407_v12  ;;  %v4831_v53 = vld [vmem:[%s3962_s19 + $0xb8] sm:$0xf]  ;;  %v3519_v34 = vld [vmem:[%s3962_s19 + $0x8c] sm:$0x1] }
  0xde   : > { %v4780_v63 = vsel %vm2822_vm7, %v4467_v58, %v2236_v29  ;;  %v1087_v58 = vrot.slane %v1085_v52, 5  ;;  %v4794_v38 = vunpack.c.l.b16 %v1190_v36  ;;  %v4802_v57 = vunpack.c.l.b16 %v1200_v46 }
  0xdf   : > { %v1098_v4 = vor.u32 %v1097_v28, %v1093_v8  ;;  %v1410_v29 = vsel %vm4192_vm5, %v1408_v49, %v1409_v7  ;;  %v2649_v36 = vpack.c.b16 %v4775_v41, %v4769_v47  ;;  %v1993_v43 = vrot.slane %v3519_v34, 5  ;;  %v3496_v28 = vld [vmem:[%s3962_s19 + $0x84] sm:$0xf] }
  0xe0   : > { %2661 = vrot.lane.b32.xlu2 %v2645_v13, %s3915_s25  ;;  %v1088_v14 = vor.u32 %v1087_v58, %v1084_v6  ;;  %v4805_v13 = vld [vmem:[%s3962_s19 + $0x88] sm:$0xf]  ;;  %v2464_v20 = vunpack.c.l.b16 %v1410_v29  ;;  %v2402_v17 = vpack.c.b16 %v4802_v57, %v4794_v38  ;;  %v1793_v58 = vshll.u32 %v3504_v31, 16 }
  0xe1   : > { %v1990_v30 = vrot.slane %v4805_v13, 5  ;;  %v1099_v19 = vrot.slane %v1098_v4, 4  ;;  %v1803_v47 = vshrl.u32 %v4831_v53, 16  ;;  %v1694_v35 = vshrl.u32 %v3496_v28, 16 }
  0xe2   : > { %2413 = vrot.lane.b32.xlu0 %v2393_v55, %s3913_s23  ;;  %v2326_v54 = vpop.permute.xlu2 %2325  ;;  %v4813_v55 = vsel %vm2773_vm6, %v3800_v62, %v2180_v5  ;;  %v1089_v10 = vrot.slane %v1088_v14, 4  ;;  %v1790_v62 = vshrl.u32 %v3504_v31, 16  ;;  %v4862_v38 = vpack.c.b16 %v2464_v20, %v2463_v44 }
  0xe3   : > { %2589 = vrot.lane.b32.xlu1 %v3821_v59, %s3916_s26  ;;  %v4817_v0 = vsel %vm2855_vm8, %v4733_v11, %v2326_v54  ;;  %v4827_v5 = vsel %vm4192_vm5, %v3551_v51, %v1990_v30  ;;  %v3817_v11 = vld [vmem:[%s3962_s19 + $0x18] sm:$0xff]  ;;  %v1104_v52 = vsel %vm3990_vm2, %v1099_v19, %v1103_v42  ;;  %v1992_v16 = vrot.slane %v1990_v30, 4 }
  0xe4   : > { %v2234_v40 = vpop.permute.xlu0 %2233  ;;  %v4844_v59 = vld [vmem:[%s3962_s19 + $0xbc] sm:$0x1]  ;;  %v4856_v46 = vunpack.c.l.b16 %v1104_v52  ;;  %v2711_v9 = vunpack.c.l.b16 %v4827_v5  ;;  %v1792_v7 = vrot.slane %v1790_v62, 4  ;;  %v1795_v57 = vrot.slane %v1793_v58, 5 }
  0xe5   : > { %v4821_v39 = vsel %vm2822_vm7, %v4428_v37, %v2234_v40  ;;  %v2242_v45 = vpop.permute.xlu1 %2241  ;;  %v1094_v37 = vsel %vm3990_vm2, %v1089_v10, %v1093_v8  ;;  %v1799_v8 = vshll.u32 %v4831_v53, 16  ;;  %v1809_v41 = vshll.u32 %v4844_v59, 16  ;;  %v3447_v10 = vld [vmem:[%s3962_s19 + $0x18] sm:$0xe] }
  0xe6   : > { %v4836_v6 = vsel %vm2822_vm7, %v4583_v32, %v2242_v45  ;;  %v4850_v32 = vunpack.c.l.b16 %v1094_v37  ;;  %v1994_v4 = vsel %vm4192_vm5, %v1992_v16, %v1993_v43  ;;  %v1805_v42 = vrot.slane %v1803_v47, 4 }
  0xe7   : > { %v1801_v14 = vrot.slane %v1799_v8, 5  ;;  %v1697_v54 = vshll.u32 %v3496_v28, 16  ;;  %v1796_v51 = vor.u32 %v1795_v57, %v1792_v7  ;;  %v1811_v30 = vrot.slane %v1809_v41, 5  ;;  %v3408_v8 = vld [vmem:[%s3962_s19 + $0x48] sm:$0xf] }
  0xe8   : > { %2749 = vrot.lane.b32.xlu2 %v4716_v48, %s3917_s27  ;;  %v1703_v40 = vshll.u32 %v4805_v13, 16  ;;  %v1696_v29 = vrot.slane %v1694_v35, 4  ;;  %v1713_v20 = vshll.u32 %v3519_v34, 16  ;;  %v3463_v16 = vrot.slane %v3447_v10, 9  ;;  %v4914_v35 = vld [vmem:[%s3962_s19 + $0x50] sm:$0x1] }
  0xe9   : > { %v1806_v45 = vor.u32 %v1805_v42, %v1801_v14  ;;  %v1699_v44 = vrot.slane %v1697_v54, 5  ;;  %v2712_v43 = vunpack.c.l.b16 %v1994_v4  ;;  %v1322_v58 = vrot.slane %v4360_v23, 5 }
  0xea   : > { %2581 = vrot.lane.b32.xlu0 %v3817_v11, %s3916_s26  ;;  %v2332_v48 = vpop.permute.xlu2 %2331  ;;  %v1705_v31 = vrot.slane %v1703_v40, 5  ;;  %v1707_v11 = vshrl.u32 %v4805_v13, 16  ;;  %v1325_v28 = vrot.slane %v4373_v1, 5  ;;  %v1715_v41 = vrot.slane %v1713_v20, 5 }
  0xeb   : > { %2741 = vrot.lane.b32.xlu1 %v4762_v21, %s3917_s27  ;;  %v4870_v49 = vsel %vm2855_vm8, %v4780_v63, %v2332_v48  ;;  %v1797_v63 = vrot.slane %v1796_v51, 4  ;;  %v1807_v37 = vrot.slane %v1806_v45, 4  ;;  %v1700_v52 = vor.u32 %v1699_v44, %v1696_v29  ;;  %v3830_v51 = vld [vmem:[%s3962_s19 + $0xb4] sm:$0xff]  ;;  %v3826_v29 = vld [vmem:[%s3962_s19 + $0x84] sm:$0xff] }
  0xec   : > { %v2240_v12 = vpop.permute.xlu0 %2239  ;;  %v1709_v62 = vrot.slane %v1707_v11, 4  ;;  %v1324_v7 = vrot.slane %v1322_v58, 4  ;;  %v986_v1 = vshrl.u32 %v3408_v8, 16  ;;  %v4909_v4 = vpack.c.b16 %v2712_v43, %v2711_v9  ;;  %v3539_v9 = vld [vmem:[%s3962_s19 + $0xb4] sm:$0xe] }
  0xed   : > { %v4876_v21 = vsel %vm2822_vm7, %v4404_v33, %v2240_v12  ;;  %v2248_v19 = vpop.permute.xlu1 %2247  ;;  %v1802_v33 = vsel %vm3990_vm2, %v1797_v63, %v1801_v14  ;;  %v1812_v13 = vsel %vm3990_vm2, %v1807_v37, %v1811_v30  ;;  %v1701_v34 = vrot.slane %v1700_v52, 4 }
  0xee   : > { %v4880_v5 = vsel %vm2822_vm7, %v4680_v2, %v2248_v19  ;;  %v2398_v2 = vpack.c.b16 %v4856_v46, %v4850_v32  ;;  %v4895_v47 = vunpack.c.l.b16 %v1802_v33  ;;  %v1710_v23 = vor.u32 %v1709_v62, %v1705_v31  ;;  %v4903_v46 = vld [vmem:[%s3962_s19 + $0x4c] sm:$0xf] }
  0xef   : > { %v4898_v57 = vunpack.c.l.b16 %v1812_v13  ;;  %v1323_v32 = vsel %vm4192_vm5, %v3463_v16, %v1322_v58  ;;  %v1326_v30 = vsel %vm4192_vm5, %v1324_v7, %v1325_v28  ;;  %v1005_v11 = vshll.u32 %v4914_v35, 16  ;;  %v3451_v16 = vld [vmem:[%s3962_s19 + $0x48] sm:$0xe] }
  0xf0   : > { %2503 = vrot.lane.b32.xlu2 %v4789_v25, %s3914_s24  ;;  %v1711_v42 = vrot.slane %v1710_v23, 4  ;;  %v2439_v45 = vunpack.c.l.b16 %v1323_v32  ;;  %v2440_v37 = vunpack.c.l.b16 %v1326_v30  ;;  %v3555_v20 = vrot.slane %v3539_v9, 9  ;;  %v4968_v30 = vld [vmem:[%s3962_s19 + $0x28] sm:$0xf] }
  0xf1   : > { %v2658_v44 = vpack.c.b16 %v4898_v57, %v4895_v47  ;;  %v2021_v28 = vrot.slane %v4844_v59, 5  ;;  %v3467_v7 = vrot.slane %v3451_v16, 9  ;;  %v4996_v16 = vld [vmem:[%s3962_s19 + $0x5c] sm:$0x1] }
  0xf2   : > { %2669 = vrot.lane.b32.xlu0 %v2649_v36, %s3915_s25  ;;  %v2338_v25 = vpop.permute.xlu2 %2337  ;;  %v989_v36 = vshll.u32 %v3408_v8, 16  ;;  %v1716_v19 = vsel %vm3990_vm2, %v1711_v42, %v1715_v41  ;;  %v1007_v8 = vrot.slane %v1005_v11, 5  ;;  %v4956_v59 = vpack.c.b16 %v2440_v37, %v2439_v45 }
  0xf3   : > { %2431 = vrot.lane.b32.xlu1 %v2402_v17, %s3913_s23  ;;  %v4907_v48 = vsel %vm2855_vm8, %v4836_v6, %v2338_v25  ;;  %v1706_v17 = vsel %vm3990_vm2, %v1701_v34, %v1705_v31  ;;  %v988_v6 = vrot.slane %v986_v1, 4  ;;  %v999_v31 = vshrl.u32 %v4903_v46, 16 }
  0xf4   : > { %v2246_v14 = vpop.permute.xlu0 %2245  ;;  %v991_v40 = vrot.slane %v989_v36, 5  ;;  %v4939_v43 = vunpack.c.l.b16 %v1706_v17  ;;  %v4941_v33 = vunpack.c.l.b16 %v1716_v19  ;;  %v1350_v25 = vrot.slane %v4903_v46, 5 }
  0xf5   : > { %v4918_v54 = vsel %vm2822_vm7, %v4409_v61, %v2246_v14  ;;  %v2254_v12 = vpop.permute.xlu1 %2253  ;;  %v995_v61 = vshll.u32 %v4903_v46, 16  ;;  %v1001_v58 = vrot.slane %v999_v31, 4  ;;  %v1353_v14 = vrot.slane %v4914_v35, 5  ;;  %v4976_v35 = vld [vmem:[%s3962_s19 + $0x2c] sm:$0x1] }
  0xf6   : > { %v4926_v10 = vsel %vm2822_vm7, %v4740_v27, %v2254_v12  ;;  %v992_v63 = vor.u32 %v991_v40, %v988_v6  ;;  %v2018_v27 = vrot.slane %v4831_v53, 5  ;;  %v1352_v9 = vrot.slane %v1350_v25, 4 }
  0xf7   : > { %v997_v52 = vrot.slane %v995_v61, 5  ;;  %v1351_v61 = vsel %vm4192_vm5, %v3467_v7, %v1350_v25 }
  0xf8   : > { %2607 = vrot.lane.b32.xlu2 %v3830_v51, %s3916_s26  ;;  %v993_v62 = vrot.slane %v992_v63, 4  ;;  %v2019_v13 = vsel %vm4192_vm5, %v3555_v20, %v2018_v27  ;;  %v2020_v34 = vrot.slane %v2018_v27, 4  ;;  %v1937_v63 = vrot.slane %v4976_v35, 5 }
  0xf9   : > { %v1002_v41 = vor.u32 %v1001_v58, %v997_v52  ;;  %v2719_v51 = vunpack.c.l.b16 %v2019_v13  ;;  %v1354_v31 = vsel %vm4192_vm5, %v1352_v9, %v1353_v14  ;;  %v3426_v14 = vld [vmem:[%s3962_s19 + $0xb4] sm:$0xf] }
  0xfa   : > { %2423 = vrot.lane.b32.xlu0 %v2398_v2, %s3913_s23  ;;  %v2344_v53 = vpop.permute.xlu2 %2343  ;;  %v998_v23 = vsel %vm3990_vm2, %v993_v62, %v997_v52  ;;  %v3527_v2 = vld [vmem:[%s3962_s19 + $0x24] sm:$0xe]  ;;  %v2022_v36 = vsel %vm4192_vm5, %v2020_v34, %v2021_v28  ;;  %v2654_v52 = vpack.c.b16 %v4941_v33, %v4939_v43  ;;  %v2448_v33 = vunpack.c.l.b16 %v1354_v31 }
  0xfb   : > { %2599 = vrot.lane.b32.xlu1 %v3826_v29, %s3916_s26  ;;  %v4954_v1 = vsel %vm2855_vm8, %v4880_v5, %v2344_v53  ;;  %v1003_v42 = vrot.slane %v1002_v41, 4  ;;  %v4965_v12 = vunpack.c.l.b16 %v998_v23  ;;  %v3488_v5 = vld [vmem:[%s3962_s19 + $0x54] sm:$0xf]  ;;  %v2720_v40 = vunpack.c.l.b16 %v2022_v36 }
  0xfc   : > { %v2252_v32 = vpop.permute.xlu0 %2251  ;;  %v3543_v19 = vrot.slane %v3527_v2, 9  ;;  %v1934_v29 = vrot.slane %v4968_v30, 5  ;;  %v1598_v11 = vshrl.u32 %v3488_v5, 16  ;;  %v1601_v37 = vshll.u32 %v3488_v5, 16 }
  0xfd   : > { %v4963_v17 = vsel %vm2822_vm7, %v4459_v50, %v2252_v32  ;;  %v2260_v46 = vpop.permute.xlu1 %2259  ;;  %v4979_v50 = vld [vmem:[%s3962_s19 + $0x58] sm:$0xf]  ;;  %v1008_v45 = vsel %vm3990_vm2, %v1003_v42, %v1007_v8  ;;  %v5001_v58 = vpack.c.b16 %v2720_v40, %v2719_v51  ;;  %v2447_v8 = vunpack.c.l.b16 %v1351_v61 }
  0xfe   : > { %v4973_v6 = vsel %vm2822_vm7, %v4813_v55, %v2260_v46  ;;  %v2368_v55 = vunpack.c.l.b16 %v1008_v45  ;;  %v1935_v20 = vsel %vm4192_vm5, %v3543_v19, %v1934_v29  ;;  %v1936_v27 = vrot.slane %v1934_v29, 4  ;;  %v5031_v29 = vld [vmem:[%s3962_s19 + $0xb8] sm:$0xf] }
  0xff   : > { %v1607_v62 = vshll.u32 %v4979_v50, 16  ;;  %v1600_v13 = vrot.slane %v1598_v11, 4  ;;  %v1603_v34 = vrot.slane %v1601_v37, 5  ;;  %v2695_v7 = vunpack.c.l.b16 %v1935_v20 }
 0x100   : > { %2759 = vrot.lane.b32.xlu2 %v4909_v4, %s3917_s27  ;;  %v3480_v4 = vld [vmem:[%s3962_s19 + $0x24] sm:$0xf]  ;;  %v1938_v28 = vsel %vm4192_vm5, %v1936_v27, %v1937_v63  ;;  %v2394_v41 = vpack.c.b16 %v2368_v55, %v4965_v12  ;;  %v1617_v2 = vshll.u32 %v4996_v16, 16  ;;  %v1511_v19 = vshll.u32 %v4968_v30, 16 }
 0x101   : > { %v1609_v53 = vrot.slane %v1607_v62, 5  ;;  %v1604_v25 = vor.u32 %v1603_v34, %v1600_v13  ;;  %v1502_v32 = vshrl.u32 %v3480_v4, 16  ;;  %v1505_v36 = vshll.u32 %v3480_v4, 16 }
 0x102   : > { %2511 = vrot.lane.b32.xlu0 %v4862_v38, %s3914_s24  ;;  %v2350_v43 = vpop.permute.xlu2 %2349  ;;  %v1611_v38 = vshrl.u32 %v4979_v50, 16  ;;  %v2696_v42 = vunpack.c.l.b16 %v1938_v28  ;;  %v1619_v51 = vrot.slane %v1617_v2, 5  ;;  %v5027_v45 = vpack.c.b16 %v2448_v33, %v2447_v8  ;;  %v3418_v28 = vld [vmem:[%s3962_s19 + $0x84] sm:$0xf]  ;;  %v5060_v2 = vld [vmem:[%s3962_s19 + $0x88] sm:$0xf] }
 0x103   : > { %2687 = vrot.lane.b32.xlu1 %v2658_v44, %s3915_s25  ;;  %v1605_v12 = vrot.slane %v1604_v25, 4  ;;  %v1504_v40 = vrot.slane %v1502_v32, 4  ;;  %v1507_v9 = vrot.slane %v1505_v36, 5  ;;  %v1515_v61 = vshrl.u32 %v4968_v30, 16  ;;  %v3818_v36 = vld [vmem:[%s3962_s19 + $0x24] sm:$0xff] }
 0x104   : > { %v2258_v23 = vpop.permute.xlu0 %2257  ;;  %v1613_v44 = vrot.slane %v1611_v38, 4  ;;  %v1513_v31 = vrot.slane %v1511_v19, 5  ;;  %v1521_v11 = vshll.u32 %v4976_v35, 16  ;;  %v1205_v20 = vshll.u32 %v3426_v14, 16 }
 0x105   : > { %v5015_v47 = vsel %vm2822_vm7, %v4530_v22, %v2258_v23  ;;  %v2330_v57 = vpop.permute.xlu1 %2329  ;;  %v5025_v22 = vsel %vm2855_vm8, %v4926_v10, %v2350_v43  ;;  %v1508_v55 = vor.u32 %v1507_v9, %v1504_v40  ;;  %v5037_v10 = vpack.c.b16 %v2696_v42, %v2695_v7  ;;  %v5051_v43 = vld [vmem:[%s3962_s19 + $0xbc] sm:$0x1]  ;;  %v3822_v23 = vld [vmem:[%s3962_s19 + $0x54] sm:$0xff] }
 0x106   : > { %v5020_v46 = vsel %vm2855_vm8, %v4821_v39, %v2330_v57  ;;  %v1614_v5 = vor.u32 %v1613_v44, %v1609_v53  ;;  %v1202_v39 = vshrl.u32 %v3426_v14, 16  ;;  %v1610_v30 = vsel %vm3990_vm2, %v1605_v12, %v1609_v53 }
 0x107   : > { %v1517_v37 = vrot.slane %v1515_v61, 4  ;;  %v1211_v35 = vshll.u32 %v5031_v29, 16  ;;  %v1509_v34 = vrot.slane %v1508_v55, 4  ;;  %v1207_v33 = vrot.slane %v1205_v20, 5 }
 0x108   : > { %2487 = vrot.lane.b32.xlu2 %v4956_v59, %s3914_s24  ;;  %v1615_v63 = vrot.slane %v1614_v5, 4  ;;  %v1204_v62 = vrot.slane %v1202_v39, 4  ;;  %v5066_v57 = vunpack.c.l.b16 %v1610_v30  ;;  %v1221_v42 = vshll.u32 %v5051_v43, 16  ;;  %v5075_v5 = vld [vmem:[%s3962_s19 + $0x8c] sm:$0x1] }
 0x109   : > { %v1518_v4 = vor.u32 %v1517_v37, %v1513_v31  ;;  %v1213_v7 = vrot.slane %v1211_v35, 5  ;;  %v1106_v12 = vshrl.u32 %v3418_v28, 16  ;;  %v1109_v40 = vshll.u32 %v3418_v28, 16  ;;  %v3531_v37 = vld [vmem:[%s3962_s19 + $0x54] sm:$0xe] }
 0x10a   : > { %2679 = vrot.lane.b32.xlu0 %v2654_v52, %s3915_s25  ;;  %v2356_v59 = vpop.permute.xlu2 %2355  ;;  %v1620_v27 = vsel %vm3990_vm2, %v1615_v63, %v1619_v51  ;;  %v1215_v52 = vshrl.u32 %v5031_v29, 16  ;;  %v1514_v51 = vsel %vm3990_vm2, %v1509_v34, %v1513_v31  ;;  %v1119_v9 = vshrl.u32 %v5060_v2, 16 }
 0x10b   : > { %2415 = vrot.lane.b32.xlu1 %v2394_v41, %s3913_s23  ;;  %v5048_v13 = vsel %vm2855_vm8, %v4973_v6, %v2356_v59  ;;  %v1523_v41 = vrot.slane %v1521_v11, 5  ;;  %v5068_v44 = vunpack.c.l.b16 %v1620_v27  ;;  %v1519_v32 = vrot.slane %v1518_v4, 4 }
 0x10c   : > { %v2328_v8 = vpop.permute.xlu0 %2327  ;;  %v1217_v25 = vrot.slane %v1215_v52, 4  ;;  %v1223_v63 = vrot.slane %v1221_v42, 5  ;;  %v1108_v55 = vrot.slane %v1106_v12, 4  ;;  %v1111_v31 = vrot.slane %v1109_v40, 5 }
 0x10d   : > { %v5056_v53 = vsel %vm2855_vm8, %v4576_v56, %v2328_v8  ;;  %v2336_v38 = vpop.permute.xlu1 %2335  ;;  %v1208_v56 = vor.u32 %v1207_v33, %v1204_v62  ;;  %v1524_v19 = vsel %vm3990_vm2, %v1519_v32, %v1523_v41  ;;  %v1121_v30 = vrot.slane %v1119_v9, 4  ;;  %v3460_v33 = vld [vmem:[%s3962_s19 + $0xb4] sm:$0xe] }
 0x10e   : > { %v5064_v6 = vsel %vm2855_vm8, %v4876_v21, %v2336_v38  ;;  %v1218_v14 = vor.u32 %v1217_v25, %v1213_v7  ;;  %v1115_v21 = vshll.u32 %v5060_v2, 16  ;;  %v2650_v59 = vpack.c.b16 %v5068_v44, %v5066_v57 }
 0x10f   : > { %v1209_v61 = vrot.slane %v1208_v56, 4  ;;  %v5095_v52 = vunpack.c.l.b16 %v1514_v51  ;;  %v5097_v8 = vunpack.c.l.b16 %v1524_v19  ;;  %v1112_v34 = vor.u32 %v1111_v31, %v1108_v55 }
 0x110   : > { %2591 = vrot.lane.b32.xlu2 %v3822_v23, %s3916_s26  ;;  %v1219_v39 = vrot.slane %v1218_v14, 4  ;;  %v1117_v11 = vrot.slane %v1115_v21, 5  ;;  %v3547_v41 = vrot.slane %v3531_v37, 9  ;;  %v1965_v14 = vrot.slane %v4996_v16, 5 }
 0x111   : > { %v1214_v27 = vsel %vm3990_vm2, %v1209_v61, %v1213_v7  ;;  %v1962_v7 = vrot.slane %v4979_v50, 5  ;;  %v1113_v44 = vrot.slane %v1112_v34, 4  ;;  %v3476_v42 = vrot.slane %v3460_v33, 9  ;;  %v3506_v61 = vld [vmem:[%s3962_s19 + $0xc0] sm:$0xf] }
 0x112   : > { %2767 = vrot.lane.b32.xlu0 %v5001_v58, %s3917_s27  ;;  %v5086_v20 = vpop.permute.xlu2 %2421  ;;  %v1224_v62 = vsel %vm3990_vm2, %v1219_v39, %v1223_v63  ;;  %v1125_v58 = vshll.u32 %v5075_v5, 16  ;;  %v1122_v4 = vor.u32 %v1121_v30, %v1117_v11  ;;  %v2385_v25 = vunpack.c.l.b16 %v1214_v27  ;;  %v5145_v34 = vld [vmem:[%s3962_s19 + $0xc8] sm:$0x1] }
 0x113   : > { %2583 = vrot.lane.b32.xlu1 %v3818_v36, %s3916_s26  ;;  %v2386_v57 = vunpack.c.l.b16 %v1224_v62  ;;  %v1963_v36 = vsel %vm4192_vm5, %v3547_v41, %v1962_v7  ;;  %v1964_v56 = vrot.slane %v1962_v7, 4  ;;  %v1118_v12 = vsel %vm3990_vm2, %v1113_v44, %v1117_v11 }
 0x114   : > { %v2334_v35 = vpop.permute.xlu0 %2333  ;;  %v1127_v23 = vrot.slane %v1125_v58, 5  ;;  %v1123_v32 = vrot.slane %v1122_v4, 4  ;;  %v2703_v50 = vunpack.c.l.b16 %v1963_v36  ;;  %v1413_v40 = vrot.slane %v5031_v29, 5  ;;  %v3498_v4 = vld [vmem:[%s3962_s19 + $0x90] sm:$0xf] }
 0x115   : > { %v5102_v28 = vsel %vm2855_vm8, %v4629_v18, %v2334_v35  ;;  %v5104_v38 = vpop.permute.xlu1 %2341  ;;  %v3456_v18 = vld [vmem:[%s3962_s19 + $0x84] sm:$0xe]  ;;  %v2377_v21 = vunpack.c.l.b16 %v1118_v12  ;;  %v1966_v19 = vsel %vm4192_vm5, %v1964_v56, %v1965_v14  ;;  %v1416_v16 = vrot.slane %v5051_v43, 5 }
 0x116   : > { %v1128_v51 = vsel %vm3990_vm2, %v1123_v32, %v1127_v23  ;;  %v2704_v39 = vunpack.c.l.b16 %v1966_v19  ;;  %v1414_v63 = vsel %vm4192_vm5, %v3476_v42, %v1413_v40  ;;  %v1415_v29 = vrot.slane %v1413_v40, 4  ;;  %v3061_v40 = vld [vmem:[%s5791_s1 + $0x20] sm:$0xf] }
 0x117   : > { %v2378_v9 = vunpack.c.l.b16 %v1128_v51  ;;  %v3472_v55 = vrot.slane %v3456_v18, 9  ;;  %v2403_v43 = vpack.c.b16 %v2386_v57, %v2385_v25  ;;  %v1385_v11 = vrot.slane %v5060_v2, 5 }
 0x118   : > { %2743 = vrot.lane.b32.xlu2 %v5037_v10, %s3917_s27  ;;  %v2646_v10 = vpack.c.b16 %v5097_v8, %v5095_v52  ;;  %v1417_v27 = vsel %vm4192_vm5, %v1415_v29, %v1416_v16  ;;  %v2465_v62 = vunpack.c.l.b16 %v1414_v63  ;;  %v1814_v58 = vshrl.u32 %v3506_v61, 16 }
 0x119   : > { %v2399_v37 = vpack.c.b16 %v2378_v9, %v2377_v21  ;;  %v2466_v8 = vunpack.c.l.b16 %v1417_v27  ;;  %v1386_v2 = vsel %vm4192_vm5, %v3472_v55, %v1385_v11  ;;  %v5152_v23 = vpack.c.b16 %v2704_v39, %v2703_v50  ;;  %v3827_v27 = vld [vmem:[%s3962_s19 + $0x90] sm:$0xff] }
 0x11a   : > { %2495 = vrot.lane.b32.xlu0 %v5027_v45, %s3914_s24  ;;  %v5129_v31 = vpop.permute.xlu2 %2509  ;;  %v1388_v45 = vrot.slane %v5075_v5, 5  ;;  %v1387_v5 = vrot.slane %v1385_v11, 4  ;;  %v1816_v41 = vrot.slane %v1814_v58, 4  ;;  %v1817_v7 = vshll.u32 %v3506_v61, 16 }
 0x11b   : > { %2671 = vrot.lane.b32.xlu1 %v2650_v59, %s3915_s25  ;;  %v5136_v59 = vld [vmem:[%s3962_s19 + $0xc4] sm:$0xf]  ;;  %v2457_v57 = vunpack.c.l.b16 %v1386_v2  ;;  %v2483_v36 = vpack.c.b16 %v2466_v8, %v2465_v62  ;;  %v1833_v14 = vshll.u32 %v5145_v34, 16  ;;  %v1718_v42 = vshrl.u32 %v3498_v4, 16 }
 0x11c   : > { %v2340_v30 = vpop.permute.xlu0 %2339  ;;  %v1389_v25 = vsel %vm4192_vm5, %v1387_v5, %v1388_v45  ;;  %v1823_v44 = vshll.u32 %v5136_v59, 16  ;;  %v1827_v32 = vshrl.u32 %v5136_v59, 16  ;;  %v1819_v56 = vrot.slane %v1817_v7, 5 }
 0x11d   : > { %v5140_v35 = vsel %vm2855_vm8, %v4672_v15, %v2340_v30  ;;  %v2348_v52 = vpop.permute.xlu1 %2347  ;;  %v5155_v15 = vld [vmem:[%s3962_s19 + $0x94] sm:$0xf]  ;;  %v1721_v51 = vshll.u32 %v3498_v4, 16  ;;  %v2458_v21 = vunpack.c.l.b16 %v1389_v25  ;;  %v1835_v19 = vrot.slane %v1833_v14, 5 }
 0x11e   : > { %v5150_v33 = vsel %vm2855_vm8, %v4963_v17, %v2348_v52  ;;  %v5163_v17 = vld [vmem:[%s3962_s19 + $0x98] sm:$0x1]  ;;  %v1825_v18 = vrot.slane %v1823_v44, 5  ;;  %v1829_v12 = vrot.slane %v1827_v32, 4  ;;  %v1727_v50 = vshll.u32 %v5155_v15, 16 }
 0x11f   : > { %v1820_v9 = vor.u32 %v1819_v56, %v1816_v41  ;;  %v1720_v16 = vrot.slane %v1718_v42, 4  ;;  %v1723_v63 = vrot.slane %v1721_v51, 5  ;;  %v1731_v55 = vshrl.u32 %v5155_v15, 16  ;;  %v3402_v41 = vld [vmem:[%s3962_s19 + $0x24] sm:$0xf]  ;;  %v3836_v51 = vld [vmem:[%s5791_s1 + $0x18] sm:$0xff] }
 0x120   : > { %2433 = vrot.lane.b32.xlu2 %v2403_v43, %s3913_s23  ;;  %v1830_v39 = vor.u32 %v1829_v12, %v1825_v18  ;;  %v1729_v29 = vrot.slane %v1727_v50, 5  ;;  %v1737_v45 = vshll.u32 %v5163_v17, 16  ;;  %v5191_v32 = vld [vmem:[%s3962_s19 + $0x28] sm:$0xf]  ;;  %v5193_v56 = vpack.c.b16 %v2458_v21, %v2457_v57  ;;  %v5197_v42 = vld [vmem:[%s3962_s19 + $0x2c] sm:$0x1] }
 0x121   : > { %v1821_v11 = vrot.slane %v1820_v9, 4  ;;  %v1724_v58 = vor.u32 %v1723_v63, %v1720_v16  ;;  %v1733_v52 = vrot.slane %v1731_v55, 4  ;;  %v914_v50 = vshrl.u32 %v3402_v41, 16 }
 0x122   : > { %2663 = vrot.lane.b32.xlu0 %v2646_v10, %s3915_s25  ;;  %v5172_v61 = vpop.permute.xlu2 %2677  ;;  %v3083_v10 = vunpack.c.l.b16 %v3061_v40  ;;  %v1831_v62 = vrot.slane %v1830_v39, 4  ;;  %v1739_v5 = vrot.slane %v1737_v45, 5  ;;  %v917_v57 = vshll.u32 %v3402_v41, 16  ;;  %v3540_v40 = vld [vmem:[%s3962_s19 + $0xc0] sm:$0xe] }
 0x123   : > { %2425 = vrot.lane.b32.xlu1 %v2399_v37, %s3913_s23  ;;  %v1826_v2 = vsel %vm3990_vm2, %v1821_v11, %v1825_v18  ;;  %v1725_v25 = vrot.slane %v1724_v58, 4  ;;  %v1734_v44 = vor.u32 %v1733_v52, %v1729_v29  ;;  %v927_v16 = vshrl.u32 %v5191_v32, 16 }
 0x124   : > { %v2346_v43 = vpop.permute.xlu0 %2345  ;;  %v3088_v4 = vpack.c.b16 %v3083_v10, %v3083_v10  ;;  %v2641_v7 = vunpack.c.l.b16 %v1826_v2  ;;  %v919_v55 = vrot.slane %v917_v57, 5  ;;  %v2025_v2 = vrot.slane %v5136_v59, 5 }
 0x125   : > { %v5178_v30 = vsel %vm2855_vm8, %v4722_v3, %v2346_v43  ;;  %v2354_v37 = vpop.permute.xlu1 %2353  ;;  %v1836_v3 = vsel %vm3990_vm2, %v1831_v62, %v1835_v19  ;;  %v1730_v18 = vsel %vm3990_vm2, %v1725_v25, %v1729_v29  ;;  %v1735_v12 = vrot.slane %v1734_v44, 4 }
 0x126   : > { %v5183_v8 = vsel %vm2855_vm8, %v5015_v47, %v2354_v37  ;;  %v2642_v47 = vunpack.c.l.b16 %v1836_v3  ;;  %v3128_v14 = vsel %vm3126_vm9, %v3088_v4, 0  ;;  %v2633_v9 = vunpack.c.l.b16 %v1730_v18 }
 0x127   : > { %3838 = vmatpush.bf16.msra.mxu2 %v3128_v14  ;;  %3839 = vmatpush.bf16.msra.mxu3 %v3128_v14  ;;  %v923_v19 = vshll.u32 %v5191_v32, 16  ;;  %v1740_v63 = vsel %vm3990_vm2, %v1735_v12, %v1739_v5  ;;  %v916_v29 = vrot.slane %v914_v50, 4  ;;  %v933_v43 = vshll.u32 %v5197_v42, 16  ;;  %v3835_v5 = vld [vmem:[%s5791_s1 + $0x10] sm:$0xff] }
 0x128   : > { %2601 = vrot.lane.b32.xlu2 %v3827_v27, %s3916_s26  ;;  %v2659_v21 = vpack.c.b16 %v2642_v47, %v2641_v7  ;;  %3133 = vmatpush.bf16.msra.mxu0 %v3128_v14  ;;  %v2634_v11 = vunpack.c.l.b16 %v1740_v63  ;;  %v929_v10 = vrot.slane %v927_v16, 4  ;;  %v3556_v37 = vrot.slane %v3540_v40, 9  ;;  %v3536_v27 = vld [vmem:[%s3962_s19 + $0x90] sm:$0xe]  ;;  %v3452_v7 = vld [vmem:[%s3962_s19 + $0x54] sm:$0xe] }
 0x129   : > { %v925_v45 = vrot.slane %v923_v19, 5  ;;  %3837 = vmatpush.bf16.msra.mxu1 %v3128_v14  ;;  %v920_v58 = vor.u32 %v919_v55, %v916_v29  ;;  %v935_v52 = vrot.slane %v933_v43, 5  ;;  %v2027_v59 = vrot.slane %v2025_v2, 4 }
 0x12a   : > { %2751 = vrot.lane.b32.xlu0 %v5152_v23, %s3917_s27  ;;  %v5211_v39 = vpop.permute.xlu2 %2765  ;;  %v2655_v41 = vpack.c.b16 %v2634_v11, %v2633_v9  ;;  %v2026_v44 = vsel %vm4192_vm5, %v3556_v37, %v2025_v2  ;;  %v3552_v47 = vrot.slane %v3536_v27, 9  ;;  %v2873_v14 = vsel %vm2855_vm8, %v4918_v54, %v5104_v38  ;;  %v3834_v54 = vld [vmem:[%s5791_s1 + $0x8] sm:$0xff]  ;;  %v3831_v2 = vld [vmem:[%s3962_s19 + $0xc0] sm:$0xff] }
 0x12b   : > { %2513 = vrot.lane.b32.xlu1 %v2483_v36, %s3914_s24  ;;  %3841 = vmatpush.bf16.msra.mxu2 %v3836_v51  ;;  %v930_v3 = vor.u32 %v929_v10, %v925_v45  ;;  %v921_v25 = vrot.slane %v920_v58, 4  ;;  %v2721_v18 = vunpack.c.l.b16 %v2026_v44  ;;  %v1997_v12 = vrot.slane %v5155_v15, 5  ;;  %v3448_v15 = vld [vmem:[%s3962_s19 + $0x24] sm:$0xe]  ;;  %v3410_v10 = vld [vmem:[%s3962_s19 + $0x54] sm:$0xf] }
 0x12c   : > { %v2352_v23 = vpop.permute.xlu0 %2351  ;;  %3842 = vmatpush.bf16.msra.mxu3 %v3836_v51  ;;  %3134 = vmatpush.bf16.msra.mxu0 %v3836_v51  ;;  %v2000_v57 = vrot.slane %v5163_v17, 5  ;;  %v3468_v38 = vrot.slane %v3452_v7, 9  ;;  %v5254_v17 = vld [vmem:[%s3962_s19 + $0x58] sm:$0xf]  ;;  %v2906_v43 = vsel %vm2888_vm10, %v2873_v14, %v5086_v20  ;;  %v3464_v11 = vrot.slane %v3448_v15, 9  ;;  %v3833_v20 = vld [vmem:[%s5791_s1] sm:$0xff] }
 0x12d   : > { %v5219_v36 = vsel %vm2855_vm8, %v4773_v24, %v2352_v23  ;;  %v2408_v62 = vpop.permute.xlu1 %2407  ;;  %v2028_v24 = vrot.slane %v5145_v34, 5  ;;  %3840 = vmatpush.bf16.msra.mxu1 %v3836_v51  ;;  %v926_v34 = vsel %vm3990_vm2, %v921_v25, %v925_v45  ;;  %v1998_v9 = vsel %vm4192_vm5, %v3552_v47, %v1997_v12  ;;  %v3482_v15 = vld [vmem:[%s3962_s19 + $0x30] sm:$0xf] }
 0x12e   : > { %v5227_v4 = vsel %vm2888_vm10, %v5056_v53, %v2408_v62  ;;  %v931_v53 = vrot.slane %v930_v3, 4  ;;  %v2361_v40 = vunpack.c.l.b16 %v926_v34  ;;  %v1999_v63 = vrot.slane %v1997_v12, 4 }
 0x12f   : > { %v2029_v50 = vsel %vm4192_vm5, %v2027_v59, %v2028_v24  ;;  %3844 = vmatpush.bf16.msra.mxu2 %v3835_v5  ;;  %v1357_v29 = vrot.slane %v5254_v17, 5  ;;  %v1329_v45 = vrot.slane %v5191_v32, 5  ;;  %v2713_v58 = vunpack.c.l.b16 %v1998_v9  ;;  %v5296_v9 = vld [vmem:[%s3962_s19 + $0x34] sm:$0xf] }
 0x130   : > { %2689 = vrot.lane.b32.xlu2 %v2659_v21, %s3915_s25  ;;  %v936_v51 = vsel %vm3990_vm2, %v931_v53, %v935_v52  ;;  %v2722_v21 = vunpack.c.l.b16 %v2029_v50  ;;  %3845 = vmatpush.bf16.msra.mxu3 %v3835_v5  ;;  %v2001_v62 = vsel %vm4192_vm5, %v1999_v63, %v2000_v57  ;;  %v1332_v25 = vrot.slane %v5197_v42, 5 }
 0x131   : > { %v2362_v16 = vunpack.c.l.b16 %v936_v51  ;;  %3135 = vmatpush.bf16.msra.mxu0 %v3835_v5  ;;  %3843 = vmatpush.bf16.msra.mxu1 %v3835_v5  ;;  %v1358_v52 = vsel %vm4192_vm5, %v3468_v38, %v1357_v29  ;;  %v2714_v3 = vunpack.c.l.b16 %v2001_v62  ;;  %v1359_v32 = vrot.slane %v1357_v29, 4 }
 0x132   : > { %2505 = vrot.lane.b32.xlu0 %v5193_v56, %s3914_s24  ;;  %v5257_v19 = vpop.permute.xlu2 %2493  ;;  %v5260_v56 = vld [vmem:[%s3962_s19 + $0x5c] sm:$0x1]  ;;  %v2449_v5 = vunpack.c.l.b16 %v1358_v52  ;;  %v1330_v24 = vsel %vm4192_vm5, %v3464_v11, %v1329_v45  ;;  %v1331_v7 = vrot.slane %v1329_v45, 4  ;;  %v1010_v44 = vshrl.u32 %v3410_v10, 16  ;;  %v5303_v45 = vld [vmem:[%s3962_s19 + $0x38] sm:$0x1] }
 0x133   : > { %2681 = vrot.lane.b32.xlu1 %v2655_v41, %s3915_s25  ;;  %v1360_v23 = vrot.slane %v5260_v56, 5  ;;  %v2391_v27 = vpack.c.b16 %v2362_v16, %v2361_v40  ;;  %3847 = vmatpush.bf16.msra.mxu2 %v3834_v54  ;;  %v2739_v41 = vpack.c.b16 %v2722_v21, %v2721_v18  ;;  %v2441_v14 = vunpack.c.l.b16 %v1330_v24  ;;  %v3532_v52 = vld [vmem:[%s3962_s19 + $0x60] sm:$0xe] }
 0x134   : > { %v5263_v55 = vpop.permute.xlu0 %2405  ;;  %3848 = vmatpush.bf16.msra.mxu3 %v3834_v54  ;;  %v1013_v53 = vshll.u32 %v3410_v10, 16  ;;  %v1333_v12 = vsel %vm4192_vm5, %v1331_v7, %v1332_v25  ;;  %v1012_v42 = vrot.slane %v1010_v44, 4  ;;  %v1019_v34 = vshll.u32 %v5254_v17, 16  ;;  %v3528_v7 = vld [vmem:[%s3962_s19 + $0x30] sm:$0xe] }
 0x135   : > { %v2502_v37 = vpop.permute.xlu1 %2501  ;;  %3136 = vmatpush.bf16.msra.mxu0 %v3834_v54  ;;  %v1361_v47 = vsel %vm4192_vm5, %v1359_v32, %v1360_v23  ;;  %3846 = vmatpush.bf16.msra.mxu1 %v3834_v54  ;;  %v2442_v50 = vunpack.c.l.b16 %v1333_v12  ;;  %v1023_v38 = vshrl.u32 %v5254_v17, 16  ;;  %v1029_v54 = vshll.u32 %v5260_v56, 16 }
 0x136   : > { %v5282_v59 = vsel %vm2921_vm11, %v2906_v43, %v2502_v37  ;;  %v2450_v18 = vunpack.c.l.b16 %v1361_v47  ;;  %v1015_v57 = vrot.slane %v1013_v53, 5  ;;  %v2735_v51 = vpack.c.b16 %v2714_v3, %v2713_v58  ;;  %v5317_v53 = vld [vmem:[%s3962_s19 + $0x68] sm:$0x1] }
 0x137   : > { %3850 = vmatpush.bf16.msra.mxu2 %v3833_v20  ;;  %v1021_v21 = vrot.slane %v1019_v34, 5  ;;  %v2471_v63 = vpack.c.b16 %v2442_v50, %v2441_v14  ;;  %v1025_v43 = vrot.slane %v1023_v38, 4  ;;  %v1031_v11 = vrot.slane %v1029_v54, 5  ;;  %v3491_v14 = vld [vmem:[%s3962_s19 + $0x64] sm:$0xf] }
 0x138   : > { %2409 = vrot.lane.b32.xlu2 %v2391_v27, %s3913_s23  ;;  %3851 = vmatpush.bf16.msra.mxu3 %v3833_v20  ;;  %v2475_v40 = vpack.c.b16 %v2450_v18, %v2449_v5  ;;  %v1016_v29 = vor.u32 %v1015_v57, %v1012_v42  ;;  %v1526_v10 = vshrl.u32 %v3482_v15, 16  ;;  %v1529_v37 = vshll.u32 %v3482_v15, 16 }
 0x139   : > { %3137 = vmatpush.bf16.msra.mxu0 %v3833_v20  ;;  %3849 = vmatpush.bf16.msra.mxu1 %v3833_v20  ;;  %v1026_v62 = vor.u32 %v1025_v43, %v1021_v21  ;;  %v1535_v58 = vshll.u32 %v5296_v9, 16  ;;  %v1545_v24 = vshll.u32 %v5303_v45, 16  ;;  %v1969_v42 = vrot.slane %v3491_v14, 5 }
 0x13a   : > { %2609 = vrot.lane.b32.xlu0 %v3831_v2, %s3916_s26  ;;  %v5300_v56 = vpop.permute.xlu2 %2661  ;;  %v1017_v27 = vrot.slane %v1016_v29, 4  ;;  %v1528_v20 = vrot.slane %v1526_v10, 4  ;;  %v1531_v2 = vrot.slane %v1529_v37, 5  ;;  %v1972_v34 = vrot.slane %v5317_v53, 5  ;;  %v3490_v10 = vld [vmem:[%s3962_s19 + $0x60] sm:$0xf] }
 0x13b   : > { %2769 = vrot.lane.b32.xlu1 %v2739_v41, %s3917_s27  ;;  %v1539_v41 = vshrl.u32 %v5296_v9, 16  ;;  %v1027_v32 = vrot.slane %v1026_v62, 4  ;;  %v1537_v5 = vrot.slane %v1535_v58, 5  ;;  %v1547_v12 = vrot.slane %v1545_v24, 5 }
 0x13c   : > { %v2430_v16 = vpop.permute.xlu0 %2429  ;;  %v1022_v3 = vsel %vm3990_vm2, %v1017_v27, %v1021_v21  ;;  %v1532_v44 = vor.u32 %v1531_v2, %v1528_v20  ;;  %v3544_v54 = vrot.slane %v3528_v7, 9  ;;  %v1971_v21 = vrot.slane %v1969_v42, 4  ;;  %v3457_v7 = vld [vmem:[%s3962_s19 + $0x90] sm:$0xe] }
 0x13d   : > { %v2914_v17 = vsel %vm2888_vm10, %v5025_v22, %v2430_v16  ;;  %v2606_v23 = vpop.permute.xlu1 %2605  ;;  %v2369_v25 = vunpack.c.l.b16 %v1022_v3  ;;  %v1541_v47 = vrot.slane %v1539_v41, 4  ;;  %v1032_v18 = vsel %vm3990_vm2, %v1027_v32, %v1031_v11 }
 0x13e   : > { %v2947_v22 = vsel %vm2921_vm11, %v2914_v17, %v5129_v31  ;;  %v3548_v31 = vrot.slane %v3532_v52, 9  ;;  %v2370_v50 = vunpack.c.l.b16 %v1032_v18  ;;  %v1533_v57 = vrot.slane %v1532_v44, 4  ;;  %v3823_v52 = vld [vmem:[%s3962_s19 + $0x60] sm:$0xff]  ;;  %v5353_v18 = vld [vmem:[%s3962_s19 + $0x94] sm:$0xf] }
 0x13f   : > { %v1542_v38 = vor.u32 %v1541_v47, %v1537_v5  ;;  %v2980_v15 = vsel %vm2954_vm12, %v2947_v22, %v2606_v23  ;;  %v1941_v16 = vrot.slane %v5296_v9, 5  ;;  %v1944_v11 = vrot.slane %v5303_v45, 5 }
 0x140   : > { %2497 = vrot.lane.b32.xlu2 %v2475_v40, %s3914_s24  ;;  %v2395_v23 = vpack.c.b16 %v2370_v50, %v2369_v25  ;;  %v1973_v62 = vsel %vm4192_vm5, %v1971_v21, %v1972_v34  ;;  %v1622_v41 = vshrl.u32 %v3490_v10, 16  ;;  %v1625_v32 = vshll.u32 %v3490_v10, 16  ;;  %v5357_v50 = vld [vmem:[%s3962_s19 + $0x98] sm:$0x1]  ;;  %v3819_v10 = vld [vmem:[%s3962_s19 + $0x30] sm:$0xff] }
 0x141   : > { %v1543_v17 = vrot.slane %v1542_v38, 4  ;;  %v1942_v45 = vsel %vm4192_vm5, %v3544_v54, %v1941_v16  ;;  %v2706_v20 = vunpack.c.l.b16 %v1973_v62  ;;  %v1943_v2 = vrot.slane %v1941_v16, 4 }
 0x142   : > { %2761 = vrot.lane.b32.xlu0 %v2735_v51, %s3917_s27  ;;  %v1970_v51 = vsel %vm4192_vm5, %v3548_v31, %v1969_v42  ;;  %v5338_v9 = vpop.permute.xlu2 %2749  ;;  %v2697_v3 = vunpack.c.l.b16 %v1942_v45  ;;  %v1635_v24 = vshrl.u32 %v3491_v14, 16  ;;  %v1624_v47 = vrot.slane %v1622_v41, 4 }
 0x143   : > { %2489 = vrot.lane.b32.xlu1 %v2471_v63, %s3914_s24  ;;  %v1538_v63 = vsel %vm3990_vm2, %v1533_v57, %v1537_v5  ;;  %v1548_v58 = vsel %vm3990_vm2, %v1543_v17, %v1547_v12  ;;  %v2705_v22 = vunpack.c.l.b16 %v1970_v51  ;;  %v1631_v5 = vshll.u32 %v3491_v14, 16  ;;  %v3428_v51 = vld [vmem:[%s3962_s19 + $0xc0] sm:$0xf]  ;;  %v5365_v17 = vld [vmem:[%s3962_s19 + $0xc4] sm:$0xf] }
 0x144   : > { %v2598_v40 = vpop.permute.xlu0 %2597  ;;  %v2617_v27 = vunpack.c.l.b16 %v1538_v63  ;;  %v1945_v44 = vsel %vm4192_vm5, %v1943_v2, %v1944_v11  ;;  %v1641_v31 = vshll.u32 %v5317_v53, 16  ;;  %v1627_v42 = vrot.slane %v1625_v32, 5 }
 0x145   : > { %v2972_v29 = vsel %vm2954_vm12, %v5282_v59, %v2598_v40  ;;  %v2758_v43 = vpop.permute.xlu1 %2757  ;;  %v2698_v12 = vunpack.c.l.b16 %v1945_v44  ;;  %v1633_v34 = vrot.slane %v1631_v5, 5  ;;  %v1637_v14 = vrot.slane %v1635_v24, 4 }
 0x146   : > { %v3005_v37 = vsel %vm2987_vm13, %v2972_v29, %v5172_v61  ;;  %v2618_v61 = vunpack.c.l.b16 %v1548_v58  ;;  %v2731_v38 = vpack.c.b16 %v2706_v20, %v2705_v22  ;;  %v3473_v54 = vrot.slane %v3457_v7, 9  ;;  %v5374_v58 = vld [vmem:[%s3962_s19 + $0xc8] sm:$0x1]  ;;  %v3420_v20 = vld [vmem:[%s3962_s19 + $0x90] sm:$0xf] }
 0x147   : > { %v3038_v59 = vsel %vm3020_vm14, %v3005_v37, %v2758_v43  ;;  %v1392_v40 = vrot.slane %v5353_v18, 5  ;;  %v1395_v53 = vrot.slane %v5357_v50, 5  ;;  %v1628_v29 = vor.u32 %v1627_v42, %v1624_v47 }
 0x148   : > { %3774 = vmatmul.msk.bf16.vlgmr.msra.gmra.mxu2 %vm3093_vm15, %v3038_v59  ;;  %v2647_v25 = vpack.c.b16 %v2618_v61, %v2617_v27  ;;  %v1638_v43 = vor.u32 %v1637_v14, %v1633_v34  ;;  %v1643_v63 = vrot.slane %v1641_v31, 5  ;;  %v1229_v45 = vshll.u32 %v3428_v51, 16 }
 0x149   : > { %v1393_v37 = vsel %vm4192_vm5, %v3473_v54, %v1392_v40  ;;  %v1394_v27 = vrot.slane %v1392_v40, 4  ;;  %v1629_v62 = vrot.slane %v1628_v29, 4  ;;  %v1239_v61 = vshrl.u32 %v5365_v17, 16  ;;  %v3461_v29 = vld [vmem:[%s3962_s19 + $0xc0] sm:$0xe] }
 0x14a   : > { %2417 = vrot.lane.b32.xlu0 %v2395_v23, %s3913_s23  ;;  %2665 = vrot.lane.b32.xlu2 %v2647_v25, %s3915_s25  ;;  %v2727_v23 = vpack.c.b16 %v2698_v12, %v2697_v3  ;;  %v2459_v59 = vunpack.c.l.b16 %v1393_v37  ;;  %v5381_v2 = vpop.permute.xlu2 %2503  ;;  %v1231_v25 = vrot.slane %v1229_v45, 5  ;;  %v2890_v47 = vsel %vm2888_vm10, %v4817_v0, %v5263_v55 }
 0x14b   : > { %2593 = vrot.lane.b32.xlu1 %v3823_v52, %s3916_s26  ;;  %v1226_v52 = vshrl.u32 %v3428_v51, 16  ;;  %v1396_v22 = vsel %vm4192_vm5, %v1394_v27, %v1395_v53  ;;  %v1634_v41 = vsel %vm3990_vm2, %v1629_v62, %v1633_v34  ;;  %v1241_v31 = vrot.slane %v1239_v61, 4 }
 0x14c   : > { %v2686_v57 = vpop.permute.xlu0 %2685  ;;  %v2460_v32 = vunpack.c.l.b16 %v1396_v22  ;;  %v2625_v24 = vunpack.c.l.b16 %v1634_v41  ;;  %v1245_v12 = vshll.u32 %v5374_v58, 16  ;;  %v1130_v42 = vshrl.u32 %v3420_v20, 16 }
 0x14d   : > { %v3013_v21 = vsel %vm2987_vm13, %v2980_v15, %v2686_v57  ;;  %v2486_v16 = vpop.permute.xlu1 %2485  ;;  %v1639_v15 = vrot.slane %v1638_v43, 4  ;;  %v1228_v5 = vrot.slane %v1226_v52, 4  ;;  %v1133_v54 = vshll.u32 %v3420_v20, 16  ;;  %v3537_v52 = vld [vmem:[%s3962_s19 + $0x9c] sm:$0xe] }
 0x14e   : > { %v3046_v11 = vsel %vm3020_vm14, %v3013_v21, %v5211_v39  ;;  %v1235_v39 = vshll.u32 %v5365_v17, 16  ;;  %v2923_v34 = vsel %vm2921_vm11, %v2890_v47, %v2486_v16  ;;  %v1139_v40 = vshll.u32 %v5353_v18, 16 }
 0x14f   : > { %3778 = vmatmul.msk.bf16.vlgmr.msra.gmra.mxu3 %vm3093_vm15, %v3046_v11  ;;  %v1644_v3 = vsel %vm3990_vm2, %v1639_v15, %v1643_v63  ;;  %v1232_v57 = vor.u32 %v1231_v25, %v1228_v5  ;;  %v2480_v51 = vpack.c.b16 %v2460_v32, %v2459_v59  ;;  %v1247_v55 = vrot.slane %v1245_v12, 5  ;;  %v5421_v5 = vld [vmem:[%s3962_s19 + $0xa4] sm:$0x1]  ;;  %v3508_v12 = vld [vmem:[%s3962_s19 + $0xcc] sm:$0xf] }
 0x150   : > { %v2626_v7 = vunpack.c.l.b16 %v1644_v3  ;;  %v1237_v44 = vrot.slane %v1235_v39, 5  ;;  %v1132_v21 = vrot.slane %v1130_v42, 4  ;;  %v1135_v11 = vrot.slane %v1133_v54, 5 }
 0x151   : > { %v1233_v16 = vrot.slane %v1232_v57, 4  ;;  %v1149_v37 = vshll.u32 %v5357_v50, 16  ;;  %v3477_v15 = vrot.slane %v3461_v29, 9  ;;  %v1420_v59 = vrot.slane %v5365_v17, 5  ;;  %v5415_v17 = vld [vmem:[%s3962_s19 + $0xa0] sm:$0xf] }
 0x152   : > { %2585 = vrot.lane.b32.xlu0 %v3819_v10, %s3916_s26  ;;  %2753 = vrot.lane.b32.xlu2 %v2731_v38, %s3917_s27  ;;  %v1242_v0 = vor.u32 %v1241_v31, %v1237_v44  ;;  %v2651_v63 = vpack.c.b16 %v2626_v7, %v2625_v24  ;;  %v1141_v38 = vrot.slane %v1139_v40, 5  ;;  %v1136_v62 = vor.u32 %v1135_v11, %v1132_v21  ;;  %v5417_v41 = vpop.permute.xlu2 %2607  ;;  %v5438_v21 = vld [vmem:[%s3962_s19 + $0xd0] sm:$0xf]  ;;  %v3500_v11 = vld [vmem:[%s3962_s19 + $0x9c] sm:$0xf] }
 0x153   : > { %2745 = vrot.lane.b32.xlu1 %v2727_v23, %s3917_s27  ;;  %v1143_v23 = vshrl.u32 %v5353_v18, 16  ;;  %v1238_v27 = vsel %vm3990_vm2, %v1233_v16, %v1237_v44  ;;  %v1421_v61 = vsel %vm4192_vm5, %v3477_v15, %v1420_v59  ;;  %v1422_v20 = vrot.slane %v1420_v59, 4 }
 0x154   : > { %v2414_v14 = vpop.permute.xlu0 %2413  ;;  %v1243_v10 = vrot.slane %v1242_v0, 4  ;;  %v2387_v45 = vunpack.c.l.b16 %v1238_v27  ;;  %v1137_v39 = vrot.slane %v1136_v62, 4  ;;  %v1423_v32 = vrot.slane %v5374_v58, 5 }
 0x155   : > { %v5396_v53 = vpop.permute.xlu1 %2589  ;;  %v2898_v43 = vsel %vm2888_vm10, %v5102_v28, %v2414_v14  ;;  %v1145_v18 = vrot.slane %v1143_v23, 4  ;;  %v3553_v24 = vrot.slane %v3537_v52, 9  ;;  %v2004_v47 = vrot.slane %v5415_v17, 5 }
 0x156   : > { %v2931_v28 = vsel %vm2921_vm11, %v2898_v43, %v5257_v19  ;;  %v1248_v22 = vsel %vm3990_vm2, %v1243_v10, %v1247_v55  ;;  %v1151_v19 = vrot.slane %v1149_v37, 5  ;;  %v1142_v44 = vsel %vm3990_vm2, %v1137_v39, %v1141_v38 }
 0x157   : > { %v2388_v50 = vunpack.c.l.b16 %v1248_v22  ;;  %v1146_v3 = vor.u32 %v1145_v18, %v1141_v38  ;;  %v2007_v31 = vrot.slane %v5421_v5, 5  ;;  %v1424_v57 = vsel %vm4192_vm5, %v1422_v20, %v1423_v32  ;;  %v3828_v22 = vld [vmem:[%s3962_s19 + $0x9c] sm:$0xff] }
 0x158   : > { %v2467_v54 = vunpack.c.l.b16 %v1421_v61  ;;  %v2379_v40 = vunpack.c.l.b16 %v1142_v44  ;;  %v2005_v0 = vsel %vm4192_vm5, %v3553_v24, %v2004_v47  ;;  %v2006_v55 = vrot.slane %v2004_v47, 4 }
 0x159   : > { %v2404_v25 = vpack.c.b16 %v2388_v50, %v2387_v45  ;;  %v1147_v58 = vrot.slane %v1146_v3, 4  ;;  %v2468_v43 = vunpack.c.l.b16 %v1424_v57  ;;  %v1838_v16 = vshrl.u32 %v3508_v12, 16 }
 0x15a   : > { %2673 = vrot.lane.b32.xlu0 %v2651_v63, %s3915_s25  ;;  %2507 = vrot.lane.b32.xlu2 %v2480_v51, %s3914_s24  ;;  %v5444_v63 = vld [vmem:[%s3962_s19 + $0xd4] sm:$0x1]  ;;  %v2008_v38 = vsel %vm4192_vm5, %v2006_v55, %v2007_v31  ;;  %v2715_v23 = vunpack.c.l.b16 %v2005_v0  ;;  %v1841_v37 = vshll.u32 %v3508_v12, 16  ;;  %v1847_v15 = vshll.u32 %v5438_v21, 16  ;;  %v5459_v44 = vpop.permute.xlu2 %2759 }
 0x15b   : > { %2435 = vrot.lane.b32.xlu1 %v2404_v25, %s3913_s23  ;;  %v2716_v27 = vunpack.c.l.b16 %v2008_v38  ;;  %v1840_v62 = vrot.slane %v1838_v16, 4  ;;  %v1851_v59 = vshrl.u32 %v5438_v21, 16  ;;  %v1857_v18 = vshll.u32 %v5444_v63, 16 }
 0x15c   : > { %v2582_v7 = vpop.permute.xlu0 %2581  ;;  %v1843_v45 = vrot.slane %v1841_v37, 5  ;;  %v1742_v50 = vshrl.u32 %v3500_v11, 16  ;;  %v2964_v39 = vsel %vm2954_vm12, %v2931_v28, %v5396_v53  ;;  %v1849_v61 = vrot.slane %v1847_v15, 5 }
 0x15d   : > { %v2956_v42 = vsel %vm2954_vm12, %v2923_v34, %v2582_v7  ;;  %v2742_v14 = vpop.permute.xlu1 %2741  ;;  %v1152_v34 = vsel %vm3990_vm2, %v1147_v58, %v1151_v19  ;;  %v1853_v20 = vrot.slane %v1851_v59, 4  ;;  %v1745_v3 = vshll.u32 %v3500_v11, 16 }
 0x15e   : > { %v2989_v51 = vsel %vm2987_vm13, %v2956_v42, %v5300_v56  ;;  %v2380_v10 = vunpack.c.l.b16 %v1152_v34  ;;  %v3832_v56 = vld [vmem:[%s3962_s19 + $0xcc] sm:$0xff]  ;;  %v2484_v32 = vpack.c.b16 %v2468_v43, %v2467_v54  ;;  %v1844_v24 = vor.u32 %v1843_v45, %v1840_v62  ;;  %v3412_v42 = vld [vmem:[%s3962_s19 + $0x60] sm:$0xf]  ;;  %v5473_v34 = vld [vmem:[%s3962_s19 + $0x64] sm:$0xf] }
 0x15f   : > { %v3022_v29 = vsel %vm3020_vm14, %v2989_v51, %v2742_v14  ;;  %v1859_v7 = vrot.slane %v1857_v18, 5  ;;  %v1744_v25 = vrot.slane %v1742_v50, 4  ;;  %v1854_v53 = vor.u32 %v1853_v20, %v1849_v61 }
 0x160   : > { %3766 = vmatmul.msk.bf16.vlgmr.msra.gmra.mxu0 %vm3093_vm15, %v3022_v29  ;;  %v2400_v52 = vpack.c.b16 %v2380_v10, %v2379_v40  ;;  %v1747_v28 = vrot.slane %v1745_v3, 5  ;;  %v1751_v12 = vshll.u32 %v5415_v17, 16  ;;  %v2736_v14 = vpack.c.b16 %v2716_v27, %v2715_v23 }
 0x161   : > { %v1845_v57 = vrot.slane %v1844_v24, 4  ;;  %v1755_v54 = vshrl.u32 %v5415_v17, 16  ;;  %v1855_v40 = vrot.slane %v1854_v53, 4  ;;  %v1761_v55 = vshll.u32 %v5421_v5, 16  ;;  %v5493_v24 = vld [vmem:[%s3962_s19 + $0x34] sm:$0xf] }
 0x162   : > { %2427 = vrot.lane.b32.xlu0 %v2400_v52, %s3913_s23  ;;  %2611 = vrot.lane.b32.xlu2 %v3832_v56, %s3916_s26  ;;  %v1748_v51 = vor.u32 %v1747_v28, %v1744_v25  ;;  %v1753_v0 = vrot.slane %v1751_v12, 5  ;;  %v1034_v16 = vshrl.u32 %v3412_v42, 16  ;;  %v1037_v11 = vshll.u32 %v3412_v42, 16  ;;  %v5501_v42 = vld [vmem:[%s3962_s19 + $0x38] sm:$0x1] }
 0x163   : > { %2603 = vrot.lane.b32.xlu1 %v3828_v22, %s3916_s26  ;;  %v1850_v29 = vsel %vm3990_vm2, %v1845_v57, %v1849_v61  ;;  %v1757_v43 = vrot.slane %v1755_v54, 4  ;;  %v1860_v17 = vsel %vm3990_vm2, %v1855_v40, %v1859_v7  ;;  %v1763_v38 = vrot.slane %v1761_v55, 5  ;;  %v3404_v22 = vld [vmem:[%s3962_s19 + $0x30] sm:$0xf] }
 0x164   : > { %v2670_v19 = vpop.permute.xlu0 %2669  ;;  %v2643_v10 = vunpack.c.l.b16 %v1850_v29  ;;  %v1749_v56 = vrot.slane %v1748_v51, 4  ;;  %v2644_v23 = vunpack.c.l.b16 %v1860_v17  ;;  %v1036_v5 = vrot.slane %v1034_v16, 4 }
 0x165   : > { %v2997_v47 = vsel %vm2987_vm13, %v2964_v39, %v2670_v19  ;;  %v5462_v31 = vpop.permute.xlu1 %2431  ;;  %v1758_v37 = vor.u32 %v1757_v43, %v1753_v0  ;;  %v1039_v27 = vrot.slane %v1037_v11, 5  ;;  %v1043_v15 = vshll.u32 %v5473_v34, 16 }
 0x166   : > { %v3030_v58 = vsel %vm3020_vm14, %v2997_v47, %v5338_v9  ;;  %v5478_v9 = vld [vmem:[%s3962_s19 + $0x68] sm:$0x1]  ;;  %v1754_v62 = vsel %vm3990_vm2, %v1749_v56, %v1753_v0  ;;  %v1047_v59 = vshrl.u32 %v5473_v34, 16  ;;  %v2660_v18 = vpack.c.b16 %v2644_v23, %v2643_v10  ;;  %v5498_v47 = vpop.permute.xlu2 %2487  ;;  %v3453_v56 = vld [vmem:[%s3962_s19 + $0x60] sm:$0xe] }
 0x167   : > { %3770 = vmatmul.msk.bf16.vlgmr.msra.gmra.mxu1 %vm3093_vm15, %v3030_v58  ;;  %v1053_v52 = vshll.u32 %v5478_v9, 16  ;;  %v1759_v50 = vrot.slane %v1758_v37, 4  ;;  %v1040_v39 = vor.u32 %v1039_v27, %v1036_v5  ;;  %v2635_v61 = vunpack.c.l.b16 %v1754_v62 }
 0x168   : > { %v1045_v3 = vrot.slane %v1043_v15, 5  ;;  %v1049_v19 = vrot.slane %v1047_v59, 4  ;;  %v938_v25 = vshrl.u32 %v3404_v22, 16  ;;  %v941_v58 = vshll.u32 %v3404_v22, 16 }
 0x169   : > { %v1041_v7 = vrot.slane %v1040_v39, 4  ;;  %v1055_v12 = vrot.slane %v1053_v52, 5  ;;  %v947_v40 = vshll.u32 %v5493_v24, 16  ;;  %v951_v51 = vshrl.u32 %v5493_v24, 16 }
 0x16a   : > { %2515 = vrot.lane.b32.xlu0 %v2484_v32, %s3914_s24  ;;  %2763 = vrot.lane.b32.xlu2 %v2736_v14, %s3917_s27  ;;  %v1764_v32 = vsel %vm3990_vm2, %v1759_v50, %v1763_v38  ;;  %v1050_v28 = vor.u32 %v1049_v19, %v1045_v3  ;;  %v3541_v14 = vld [vmem:[%s3962_s19 + $0xcc] sm:$0xe]  ;;  %v940_v54 = vrot.slane %v938_v25, 4  ;;  %v943_v43 = vrot.slane %v941_v58, 5 }
 0x16b   : > { %2691 = vrot.lane.b32.xlu1 %v2660_v18, %s3915_s25  ;;  %v2636_v53 = vunpack.c.l.b16 %v1764_v32  ;;  %v1046_v57 = vsel %vm3990_vm2, %v1041_v7, %v1045_v3  ;;  %v949_v16 = vrot.slane %v947_v40, 5  ;;  %v953_v11 = vrot.slane %v951_v51, 4  ;;  %v3449_v3 = vld [vmem:[%s3962_s19 + $0x30] sm:$0xe] }
 0x16c   : > { %v2424_v45 = vpop.permute.xlu0 %2423  ;;  %v1051_v55 = vrot.slane %v1050_v28, 4  ;;  %v2371_v29 = vunpack.c.l.b16 %v1046_v57  ;;  %v957_v17 = vshll.u32 %v5501_v42, 16  ;;  %v3557_v10 = vrot.slane %v3541_v14, 9 }
 0x16d   : > { %v5490_v20 = vpop.permute.xlu1 %2599  ;;  %v2656_v0 = vpack.c.b16 %v2636_v53, %v2635_v61  ;;  %v944_v23 = vor.u32 %v943_v43, %v940_v54  ;;  %v2032_v37 = vrot.slane %v5438_v21, 5  ;;  %v2035_v5 = vrot.slane %v5444_v63, 5 }
 0x16e   : > { %v1056_v38 = vsel %vm3990_vm2, %v1051_v55, %v1055_v12  ;;  %v2908_v27 = vsel %vm2888_vm10, %v4954_v1, %v2424_v45  ;;  %v954_v59 = vor.u32 %v953_v11, %v949_v16  ;;  %v959_v52 = vrot.slane %v957_v17, 5  ;;  %v3484_v12 = vld [vmem:[%s3962_s19 + $0x3c] sm:$0xf]  ;;  %v5537_v58 = vpop.permute.xlu2 %2591 }
 0x16f   : > { %v2372_v15 = vunpack.c.l.b16 %v1056_v38  ;;  %v945_v22 = vrot.slane %v944_v23, 4  ;;  %v2033_v18 = vsel %vm4192_vm5, %v3557_v10, %v2032_v37  ;;  %v2034_v50 = vrot.slane %v2032_v37, 4  ;;  %v3513_v37 = vld [vmem:[%s3962_s19 + $0x44] sm:$0x1] }
 0x170   : > { %v3469_v21 = vrot.slane %v3453_v56, 9  ;;  %v2916_v63 = vsel %vm2888_vm10, %v5219_v36, %v5462_v31  ;;  %v955_v45 = vrot.slane %v954_v59, 4  ;;  %v2723_v61 = vunpack.c.l.b16 %v2033_v18  ;;  %v3485_v56 = vld [vmem:[%s3962_s19 + $0x40] sm:$0xf] }
 0x171   : > { %v2396_v1 = vpack.c.b16 %v2372_v15, %v2371_v29  ;;  %v2941_v19 = vsel %vm2921_vm11, %v2908_v27, %v5381_v2  ;;  %v950_v32 = vsel %vm3990_vm2, %v945_v22, %v949_v16  ;;  %v2036_v7 = vsel %vm4192_vm5, %v2034_v50, %v2035_v5 }
 0x172   : > { %2683 = vrot.lane.b32.xlu0 %v2656_v0, %s3915_s25  ;;  %v1364_v25 = vrot.slane %v5473_v34, 5  ;;  %v960_v36 = vsel %vm3990_vm2, %v955_v45, %v959_v52  ;;  %v2363_v31 = vunpack.c.l.b16 %v950_v32  ;;  %v2724_v53 = vunpack.c.l.b16 %v2036_v7  ;;  %v3492_v32 = vld [vmem:[%s3962_s19 + $0x6c] sm:$0xf] }
 0x173   : > { %2419 = vrot.lane.b32.xlu2 %v2396_v1, %s3913_s23  ;;  %v1367_v28 = vrot.slane %v5478_v9, 5  ;;  %v2364_v2 = vunpack.c.l.b16 %v960_v36  ;;  %v3465_v54 = vrot.slane %v3449_v3, 9  ;;  %v2974_v34 = vsel %vm2954_vm12, %v2941_v19, %v5490_v20  ;;  %v3493_v1 = vld [vmem:[%s3962_s19 + $0x70] sm:$0xf]  ;;  %v3533_v3 = vld [vmem:[%s3962_s19 + $0x6c] sm:$0xe] }
 0x174   : > { %v2512_v62 = vpop.permute.xlu0 %2511  ;;  %v1365_v14 = vsel %vm4192_vm5, %v3469_v21, %v1364_v25  ;;  %v1366_v57 = vrot.slane %v1364_v25, 4  ;;  %v2740_v40 = vpack.c.b16 %v2724_v53, %v2723_v61  ;;  %v1336_v51 = vrot.slane %v5493_v24, 5  ;;  %v3820_v24 = vld [vmem:[%s3962_s19 + $0x3c] sm:$0xff] }
 0x175   : > { %v5519_v39 = vpop.permute.xlu1 %2687  ;;  %v1339_v0 = vrot.slane %v5501_v42, 5  ;;  %v2392_v9 = vpack.c.b16 %v2364_v2, %v2363_v31  ;;  %v1550_v29 = vshrl.u32 %v3484_v12, 16  ;;  %v1553_v43 = vshll.u32 %v3484_v12, 16  ;;  %v3529_v36 = vld [vmem:[%s3962_s19 + $0x3c] sm:$0xe] }
 0x176   : > { %v1368_v55 = vsel %vm4192_vm5, %v1366_v57, %v1367_v28  ;;  %v2451_v11 = vunpack.c.l.b16 %v1365_v14  ;;  %v1337_v20 = vsel %vm4192_vm5, %v3465_v54, %v1336_v51  ;;  %v1338_v10 = vrot.slane %v1336_v51, 4  ;;  %v5570_v31 = vpop.permute.xlu2 %2743  ;;  %v3517_v2 = vld [vmem:[%s3962_s19 + $0x74] sm:$0x1] }
 0x177   : > { %v2452_v17 = vunpack.c.l.b16 %v1368_v55  ;;  %2411 = vrot.lane.b32.xlu1 %v2392_v9, %s3913_s23  ;;  %v2443_v38 = vunpack.c.l.b16 %v1337_v20  ;;  %v1552_v5 = vrot.slane %v1550_v29, 4  ;;  %v1555_v27 = vrot.slane %v1553_v43, 5 }
 0x178   : > { %v2949_v15 = vsel %vm2921_vm11, %v2916_v63, %v2512_v62  ;;  %v1340_v52 = vsel %vm4192_vm5, %v1338_v10, %v1339_v0  ;;  %v1559_v50 = vshll.u32 %v3485_v56, 16  ;;  %v1563_v21 = vshrl.u32 %v3485_v56, 16 }
 0x179   : > { %v2444_v22 = vunpack.c.l.b16 %v1340_v52  ;;  %v1556_v18 = vor.u32 %v1555_v27, %v1552_v5  ;;  %v2476_v45 = vpack.c.b16 %v2452_v17, %v2451_v11  ;;  %v1569_v61 = vshll.u32 %v3513_v37, 16 }
 0x17a   : > { %2771 = vrot.lane.b32.xlu0 %v2740_v40, %s3917_s27  ;;  %v1561_v63 = vrot.slane %v1559_v50, 5  ;;  %v1565_v19 = vrot.slane %v1563_v21, 4  ;;  %v2982_v7 = vsel %vm2954_vm12, %v2949_v15, %v5417_v41  ;;  %v1976_v25 = vrot.slane %v3493_v1, 5 }
 0x17b   : > { %2587 = vrot.lane.b32.xlu2 %v3820_v24, %s3916_s26  ;;  %v2472_v62 = vpack.c.b16 %v2444_v22, %v2443_v38  ;;  %v1571_v12 = vrot.slane %v1569_v61, 5  ;;  %v1948_v14 = vrot.slane %v3485_v56, 5  ;;  %v3015_v57 = vsel %vm2987_vm13, %v2982_v7, %v5519_v39  ;;  %v3824_v24 = vld [vmem:[%s3962_s19 + $0x6c] sm:$0xff] }
 0x17c   : > { %v2680_v16 = vpop.permute.xlu0 %2679  ;;  %v1566_v28 = vor.u32 %v1565_v19, %v1561_v63  ;;  %v1646_v40 = vshrl.u32 %v3492_v32, 16  ;;  %v3545_v9 = vrot.slane %v3529_v36, 9  ;;  %v1951_v55 = vrot.slane %v3513_v37, 5 }
 0x17d   : > { %v3007_v42 = vsel %vm2987_vm13, %v2974_v34, %v2680_v16  ;;  %v5554_v23 = vpop.permute.xlu1 %2415  ;;  %v3549_v34 = vrot.slane %v3533_v3, 9  ;;  %v1978_v43 = vrot.slane %v1976_v25, 4  ;;  %v1979_v16 = vrot.slane %v3517_v2, 5 }
 0x17e   : > { %v3040_v59 = vsel %vm3020_vm14, %v3007_v42, %v5459_v44  ;;  %v1557_v44 = vrot.slane %v1556_v18, 4  ;;  %v1567_v51 = vrot.slane %v1566_v28, 4  ;;  %v1950_v39 = vrot.slane %v1948_v14, 4 }
 0x17f   : > { %3775 = vmatmul.msk.bf16.gmra.mxu2 %vm3093_vm15, %v3040_v59  ;;  %2499 = vrot.lane.b32.xlu1 %v2476_v45, %s3914_s24  ;;  %v1648_v17 = vrot.slane %v1646_v40, 4  ;;  %v1649_v20 = vshll.u32 %v3492_v32, 16  ;;  %v1655_v10 = vshll.u32 %v3493_v1, 16  ;;  %v1659_v42 = vshrl.u32 %v3493_v1, 16 }
 0x180   : > { %v1562_v53 = vsel %vm3990_vm2, %v1557_v44, %v1561_v63  ;;  %v1572_v11 = vsel %vm3990_vm2, %v1567_v51, %v1571_v12  ;;  %v1665_v38 = vshll.u32 %v3517_v2, 16  ;;  %v1949_v5 = vsel %vm4192_vm5, %v3545_v9, %v1948_v14 }
 0x181   : > { %v2619_v29 = vunpack.c.l.b16 %v1562_v53  ;;  %v2620_v56 = vunpack.c.l.b16 %v1572_v11  ;;  %v1952_v37 = vsel %vm4192_vm5, %v1950_v39, %v1951_v55  ;;  %v1651_v27 = vrot.slane %v1649_v20, 5 }
 0x182   : > { %2491 = vrot.lane.b32.xlu0 %v2472_v62, %s3914_s24  ;;  %v1657_v15 = vrot.slane %v1655_v10, 5  ;;  %v1977_v52 = vsel %vm4192_vm5, %v3549_v34, %v1976_v25  ;;  %v1980_v22 = vsel %vm4192_vm5, %v1978_v43, %v1979_v16  ;;  %v1661_v18 = vrot.slane %v1659_v42, 4  ;;  %v2434_v62 = vpop.permute.xlu2 %2433 }
 0x183   : > { %v2648_v59 = vpack.c.b16 %v2620_v56, %v2619_v29  ;;  %v1652_v50 = vor.u32 %v1651_v27, %v1648_v17  ;;  %v2699_v1 = vunpack.c.l.b16 %v1949_v5  ;;  %v2700_v45 = vunpack.c.l.b16 %v1952_v37 }
 0x184   : > { %v2768_v54 = vpop.permute.xlu0 %2767  ;;  %v1662_v61 = vor.u32 %v1661_v18, %v1657_v15  ;;  %v1667_v3 = vrot.slane %v1665_v38, 5  ;;  %v2707_v44 = vunpack.c.l.b16 %v1977_v52  ;;  %v2708_v63 = vunpack.c.l.b16 %v1980_v22 }
 0x185   : > { %v3048_v41 = vsel %vm3020_vm14, %v3015_v57, %v2768_v54  ;;  %v2584_v0 = vpop.permute.xlu1 %2583  ;;  %v1653_v32 = vrot.slane %v1652_v50, 4  ;;  %v2728_v25 = vpack.c.b16 %v2700_v45, %v2699_v1  ;;  %v2925_v2 = vsel %vm2921_vm11, %v5227_v4, %v5498_v47 }
 0x186   : > { %3779 = vmatmul.msk.bf16.gmra.mxu3 %vm3093_vm15, %v3048_v41  ;;  %v1663_v7 = vrot.slane %v1662_v61, 4  ;;  %v2732_v28 = vpack.c.b16 %v2708_v63, %v2707_v44  ;;  %v2958_v57 = vsel %vm2954_vm12, %v2925_v2, %v2584_v0  ;;  %v2900_v4 = vsel %vm2888_vm10, %v5064_v6, %v5554_v23 }
 0x187   : > { %2667 = vrot.lane.b32.xlu1 %v2648_v59, %s3915_s25  ;;  %v1658_v60 = vsel %vm3990_vm2, %v1653_v32, %v1657_v15  ;;  %v2918_v6 = vsel %vm2888_vm10, %v5183_v8, %v2434_v62 }
 0x188   : > { %v1668_v36 = vsel %vm3990_vm2, %v1663_v7, %v1667_v3  ;;  %v2627_v53 = vunpack.c.l.b16 %v1658_v60  ;;  %v5644_v3 = vld [vmem:[%s5792_s2] ss:$0 sm:$0xff] }
 0x189   : > { %v2628_v12 = vunpack.c.l.b16 %v1668_v36 }
 0x18a   : > { %2595 = vrot.lane.b32.xlu0 %v3824_v24, %s3916_s26  ;;  %v2602_v47 = vpop.permute.xlu2 %2601 }
 0x18b   : > { %v2652_v14 = vpack.c.b16 %v2628_v12, %v2627_v53 }
 0x18c   : > { %v2496_v21 = vpop.permute.xlu0 %2495 }
 0x18d   : > { %v2672_v19 = vpop.permute.xlu1 %2671  ;;  %2675 = vrot.lane.b32.xlu2 %v2652_v14, %s3915_s25  ;;  %v2933_v41 = vsel %vm2921_vm11, %v2900_v4, %v2496_v21 }
 0x18e   : > { %v2966_v51 = vsel %vm2954_vm12, %v2933_v41, %v5537_v58 }
 0x18f   : > { %2755 = vrot.lane.b32.xlu1 %v2732_v28, %s3917_s27  ;;  %v2999_v0 = vsel %vm2987_vm13, %v2966_v51, %v2672_v19 }
 0x192   : > { %2747 = vrot.lane.b32.xlu0 %v2728_v25, %s3917_s27 }
 0x194   : > { %v2664_v54 = vpop.permute.xlu0 %2663 }
 0x195   : > { %v2991_v34 = vsel %vm2987_vm13, %v2958_v57, %v2664_v54  ;;  %v2426_v40 = vpop.permute.xlu1 %2425 }
 0x196   : > { %v3024_v26 = vsel %vm3020_vm14, %v2991_v34, %v5570_v31  ;;  %v2690_v31 = vpop.permute.xlu2 %2689  ;;  %v2910_v10 = vsel %vm2888_vm10, %v5178_v30, %v2426_v40 }
 0x197   : > { %3767 = vmatmul.msk.bf16.gmra.mxu0 %vm3093_vm15, %v3024_v26 }
 0x19c   : > { %v2752_v9 = vpop.permute.xlu0 %2751 }
 0x19d   : > { %v3032_v55 = vsel %vm3020_vm14, %v2999_v0, %v2752_v9  ;;  %v2514_v29 = vpop.permute.xlu1 %2513 }
 0x19e   : > { %3771 = vmatmul.msk.bf16.gmra.mxu1 %vm3093_vm15, %v3032_v55  ;;  %v2410_v23 = vpop.permute.xlu2 %2409  ;;  %v2951_v39 = vsel %vm2921_vm11, %v2918_v6, %v2514_v29 }
 0x19f   : > { %v2894_v52 = vsel %vm2888_vm10, %v5020_v46, %v2410_v23 }
 0x1a4   : > { %v2506_v43 = vpop.permute.xlu0 %2505 }
 0x1a5   : > { %v2682_v16 = vpop.permute.xlu1 %2681  ;;  %v2943_v24 = vsel %vm2921_vm11, %v2910_v10, %v2506_v43 }
 0x1a6   : > { %v2976_v8 = vsel %vm2954_vm12, %v2943_v24, %v2602_v47  ;;  %v2498_v5 = vpop.permute.xlu2 %2497 }
 0x1a7   : > { %v3009_v42 = vsel %vm2987_vm13, %v2976_v8, %v2682_v16 }
 0x1ac   : > { %v2610_v11 = vpop.permute.xlu0 %2609 }
 0x1ad   : > { %v2984_v58 = vsel %vm2954_vm12, %v2951_v39, %v2610_v11  ;;  %v2770_v17 = vpop.permute.xlu1 %2769 }
 0x1ae   : > { %v3017_v20 = vsel %vm2987_vm13, %v2984_v58, %v2690_v31  ;;  %v2666_v59 = vpop.permute.xlu2 %2665 }
 0x1af   : > { %v3050_v56 = vsel %vm3020_vm14, %v3017_v20, %v2770_v17 }
 0x1b0   : > { %3780 = vmatmul.msk.bf16.gmra.mxu3 %vm3093_vm15, %v3050_v56 }
 0x1b4   : > { %v2762_v38 = vpop.permute.xlu0 %2761 }
 0x1b5   : > { %v3042_v37 = vsel %vm3020_vm14, %v3009_v42, %v2762_v38  ;;  %v2490_v27 = vpop.permute.xlu1 %2489 }
 0x1b6   : > { %3776 = vmatmul.msk.bf16.gmra.mxu2 %vm3093_vm15, %v3042_v37  ;;  %v2927_v22 = vsel %vm2921_vm11, %v2894_v52, %v2490_v27  ;;  %v2754_v46 = vpop.permute.xlu2 %2753 }
 0x1bc   : > { %v2418_v15 = vpop.permute.xlu0 %2417 }
 0x1bd   : > { %v2594_v30 = vpop.permute.xlu1 %2593  ;;  %v2902_v61 = vsel %vm2888_vm10, %v4907_v48, %v2418_v15 }
 0x1be   : > { %v2935_v62 = vsel %vm2921_vm11, %v2902_v61, %v2498_v5  ;;  %v2508_v53 = vpop.permute.xlu2 %2507 }
 0x1bf   : > { %v2968_v63 = vsel %vm2954_vm12, %v2935_v62, %v2594_v30 }
 0x1c4   : > { %v2586_v18 = vpop.permute.xlu0 %2585 }
 0x1c5   : > { %v2960_v50 = vsel %vm2954_vm12, %v2927_v22, %v2586_v18  ;;  %v2746_v21 = vpop.permute.xlu1 %2745 }
 0x1c6   : > { %v2993_v1 = vsel %vm2987_vm13, %v2960_v50, %v2666_v59  ;;  %v2612_v4 = vpop.permute.xlu2 %2611 }
 0x1c7   : > { %v3026_v45 = vsel %vm3020_vm14, %v2993_v1, %v2746_v21 }
 0x1c8   : > { %3768 = vmatmul.msk.bf16.gmra.mxu0 %vm3093_vm15, %v3026_v45 }
 0x1cb   : > { %v3179_v44 = vpop.f32.mrf.mxu2 }
 0x1cc   : > { %v2674_v19 = vpop.permute.xlu0 %2673  ;;  %v3180_v32 = vadd.f32 %v5644_v3, %v3179_v44 }
 0x1cd   : > { %v3001_v7 = vsel %vm2987_vm13, %v2968_v63, %v2674_v19  ;;  %v2436_v25 = vpop.permute.xlu1 %2435 }
 0x1ce   : > { %v3034_v48 = vsel %vm3020_vm14, %v3001_v7, %v2754_v46  ;;  %v3235_v60 = vmax.f32 %v3180_v32, 0.0  ;;  %v2764_v58 = vpop.permute.xlu2 %2763  ;;  %v2920_v56 = vsel %vm2888_vm10, %v5048_v13, %v2436_v25 }
 0x1cf   : > { %3772 = vmatmul.msk.bf16.gmra.mxu1 %vm3093_vm15, %v3034_v48 }
 0x1d0   : > { %3267 = vst.msk [vmem:[%s5654_s20 + $0x80] sm:$0xff] %vm2773_vm6, %v3235_v60 }
 0x1d2   : > { %v3199_v36 = vpop.f32.mrf.mxu3 }
 0x1d3   : > { %v3200_v28 = vadd.f32 %v5644_v3, %v3199_v36  ;;  %v3181_v12 = vpop.f32.mrf.mxu2 }
 0x1d4   : > { %v3182_v2 = vadd.f32 %v5644_v3, %v3181_v12  ;;  %v2428_v57 = vpop.permute.xlu0 %2427 }
 0x1d5   : > { %v3243_v14 = vmax.f32 %v3200_v28, 0.0  ;;  %v2604_v26 = vpop.permute.xlu1 %2603  ;;  %v2912_v55 = vsel %vm2888_vm10, %v5150_v33, %v2428_v57 }
 0x1d6   : > { %v3236_v54 = vmax.f32 %v3182_v2, 0.0  ;;  %v2945_v31 = vsel %vm2921_vm11, %v2912_v55, %v2508_v53  ;;  %v2420_v30 = vpop.permute.xlu2 %2419 }
 0x1d7   : > { %3275 = vst.msk [vmem:[%s5654_s20 + $0xc0] sm:$0xff] %vm2773_vm6, %v3243_v14  ;;  %v2978_v23 = vsel %vm2954_vm12, %v2945_v31, %v2604_v26  ;;  %v2904_v1 = vsel %vm2888_vm10, %v5140_v35, %v2420_v30 }
 0x1d8   : > { %3268 = vst.msk [vmem:[%s5654_s20 + $0x88] sm:$0xff] %vm2773_vm6, %v3236_v54 }
 0x1da   : > { %v3201_v34 = vpop.f32.mrf.mxu3 }
 0x1db   : > { %v3202_v40 = vadd.f32 %v5644_v3, %v3201_v34 }
 0x1dc   : > { %v2516_v51 = vpop.permute.xlu0 %2515 }
 0x1dd   : > { %v3244_v47 = vmax.f32 %v3202_v40, 0.0  ;;  %v3139_v41 = vpop.f32.mrf.mxu0  ;;  %v2692_v43 = vpop.permute.xlu1 %2691  ;;  %v2953_v24 = vsel %vm2921_vm11, %v2920_v56, %v2516_v51 }
 0x1de   : > { %v3140_v0 = vadd.f32 %v5644_v3, %v3139_v41  ;;  %v2986_v42 = vsel %vm2954_vm12, %v2953_v24, %v2612_v4  ;;  %v2588_v22 = vpop.permute.xlu2 %2587 }
 0x1df   : > { %3276 = vst.msk [vmem:[%s5654_s20 + $0xc8] sm:$0xff] %vm2773_vm6, %v3244_v47  ;;  %v3019_v5 = vsel %vm2987_vm13, %v2986_v42, %v2692_v43 }
 0x1e0   : > { %v3219_v9 = vmax.f32 %v3140_v0, 0.0 }
 0x1e2   : > { %3251 = vst.msk [vmem:[%s5654_s20] sm:$0xff] %vm2773_vm6, %v3219_v9 }
 0x1e4   : > { %v3159_v29 = vpop.f32.mrf.mxu1  ;;  %v2684_v39 = vpop.permute.xlu0 %2683 }
 0x1e5   : > { %v3160_v16 = vadd.f32 %v5644_v3, %v3159_v29  ;;  %v3141_v6 = vpop.f32.mrf.mxu0  ;;  %v3011_v33 = vsel %vm2987_vm13, %v2978_v23, %v2684_v39 }
 0x1e6   : > { %v3142_v11 = vadd.f32 %v5644_v3, %v3141_v6  ;;  %v3044_v20 = vsel %vm3020_vm14, %v3011_v33, %v2764_v58 }
 0x1e7   : > { %v3227_v17 = vmax.f32 %v3160_v16, 0.0  ;;  %3777 = vmatmul.msk.bf16.gmra.mxu2 %vm3093_vm15, %v3044_v20  ;;  %v2676_v63 = vpop.permute.xlu2 %2675 }
 0x1e8   : > { %v3220_v10 = vmax.f32 %v3142_v11, 0.0 }
 0x1e9   : > { %3259 = vst.msk [vmem:[%s5654_s20 + $0x40] sm:$0xff] %vm2773_vm6, %v3227_v17  ;;  %v2412_v27 = vpop.permute.xlu1 %2411 }
 0x1ea   : > { %3252 = vst.msk [vmem:[%s5654_s20 + $0x8] sm:$0xff] %vm2773_vm6, %v3220_v10  ;;  %v2896_v21 = vsel %vm2888_vm10, %v4870_v49, %v2412_v27 }
 0x1ec   : > { %v3161_v8 = vpop.f32.mrf.mxu1  ;;  %v2772_v37 = vpop.permute.xlu0 %2771 }
 0x1ed   : > { %v3162_v38 = vadd.f32 %v5644_v3, %v3161_v8  ;;  %v3052_v13 = vsel %vm3020_vm14, %v3019_v5, %v2772_v37 }
 0x1ee   : > { %3781 = vmatmul.msk.bf16.gmra.mxu3 %vm3093_vm15, %v3052_v13 }
 0x1ef   : > { %v3228_v15 = vmax.f32 %v3162_v38, 0.0 }
 0x1f1   : > { %3260 = vst.msk [vmem:[%s5654_s20 + $0x48] sm:$0xff] %vm2773_vm6, %v3228_v15  ;;  %v2500_v52 = vpop.permute.xlu1 %2499 }
 0x1f2   : > { %v2937_v46 = vsel %vm2921_vm11, %v2904_v1, %v2500_v52 }
 0x1f4   : > { %v2492_v59 = vpop.permute.xlu0 %2491 }
 0x1f5   : > { %v2929_v45 = vsel %vm2921_vm11, %v2896_v21, %v2492_v59 }
 0x1f6   : > { %v2962_v19 = vsel %vm2954_vm12, %v2929_v45, %v2588_v22 }
 0x1f9   : > { %v2668_v50 = vpop.permute.xlu1 %2667 }
 0x1fa   : > { %v2995_v7 = vsel %vm2987_vm13, %v2962_v19, %v2668_v50 }
 0x1fc   : > { %v2596_v18 = vpop.permute.xlu0 %2595 }
 0x1fd   : > { %v2970_v44 = vsel %vm2954_vm12, %v2937_v46, %v2596_v18 }
 0x1fe   : > { %v3003_v35 = vsel %vm2987_vm13, %v2970_v44, %v2676_v63 }
 0x201   : > { %v2756_v48 = vpop.permute.xlu1 %2755 }
 0x202   : > { %v3184_v61 = vpop.f32.mrf.mxu2  ;;  %v3036_v25 = vsel %vm3020_vm14, %v3003_v35, %v2756_v48 }
 0x203   : > { %v3185_v62 = vadd.f32 %v5644_v3, %v3184_v61  ;;  %3773 = vmatmul.msk.bf16.gmra.mxu1 %vm3093_vm15, %v3036_v25 }
 0x204   : > { %v2748_v49 = vpop.permute.xlu0 %2747 }
 0x205   : > { %v3237_v32 = vmax.f32 %v3185_v62, 0.0  ;;  %v3028_v60 = vsel %vm3020_vm14, %v2995_v7, %v2748_v49 }
 0x206   : > { %3769 = vmatmul.msk.bf16.gmra.mxu0 %vm3093_vm15, %v3028_v60 }
 0x207   : > { %3269 = vst.msk [vmem:[%s5654_s20 + $0x90] sm:$0xff] %vm2773_vm6, %v3237_v32 }
 0x209   : > { %v3204_v36 = vpop.f32.mrf.mxu3 }
 0x20a   : > { %v3205_v53 = vadd.f32 %v5644_v3, %v3204_v36  ;;  %v3186_v28 = vpop.f32.mrf.mxu2 }
 0x20b   : > { %v3187_v12 = vadd.f32 %v5644_v3, %v3186_v28 }
 0x20c   : > { %v3245_v2 = vmax.f32 %v3205_v53, 0.0 }
 0x20d   : > { %v3238_v14 = vmax.f32 %v3187_v12, 0.0 }
 0x20e   : > { %3277 = vst.msk [vmem:[%s5654_s20 + $0xd0] sm:$0xff] %vm2773_vm6, %v3245_v2 }
 0x20f   : > { %3270 = vst.msk [vmem:[%s5654_s20 + $0x98] sm:$0xff] %vm2773_vm6, %v3238_v14 }
 0x211   : > { %v3206_v57 = vpop.f32.mrf.mxu3 }
 0x212   : > { %v3207_v54 = vadd.f32 %v5644_v3, %v3206_v57 }
 0x214   : > { %v3246_v34 = vmax.f32 %v3207_v54, 0.0  ;;  %v3144_v40 = vpop.f32.mrf.mxu0 }
 0x215   : > { %v3145_v26 = vadd.f32 %v5644_v3, %v3144_v40 }
 0x216   : > { %3278 = vst.msk [vmem:[%s5654_s20 + $0xd8] sm:$0xff] %vm2773_vm6, %v3246_v34 }
 0x217   : > { %v3221_v4 = vmax.f32 %v3145_v26, 0.0 }
 0x219   : > { %3253 = vst.msk [vmem:[%s5654_s20 + $0x10] sm:$0xff] %vm2773_vm6, %v3221_v4 }
 0x21b   : > { %v3164_v47 = vpop.f32.mrf.mxu1 }
 0x21c   : > { %v3165_v41 = vadd.f32 %v5644_v3, %v3164_v47  ;;  %v3146_v51 = vpop.f32.mrf.mxu0 }
 0x21d   : > { %v3147_v0 = vadd.f32 %v5644_v3, %v3146_v51 }
 0x21e   : > { %v3229_v9 = vmax.f32 %v3165_v41, 0.0 }
 0x21f   : > { %v3222_v55 = vmax.f32 %v3147_v0, 0.0 }
 0x220   : > { %3261 = vst.msk [vmem:[%s5654_s20 + $0x50] sm:$0xff] %vm2773_vm6, %v3229_v9 }
 0x221   : > { %3254 = vst.msk [vmem:[%s5654_s20 + $0x18] sm:$0xff] %vm2773_vm6, %v3222_v55 }
 0x223   : > { %v3166_v29 = vpop.f32.mrf.mxu1 }
 0x224   : > { %v3167_v31 = vadd.f32 %v5644_v3, %v3166_v29 }
 0x226   : > { %v3230_v43 = vmax.f32 %v3167_v31, 0.0 }
 0x228   : > { %3262 = vst.msk [vmem:[%s5654_s20 + $0x58] sm:$0xff] %vm2773_vm6, %v3230_v43 }
 0x233   : > { %v3209_v16 = vpop.f32.mrf.mxu3 }
 0x234   : > { %v3210_v6 = vadd.f32 %v5644_v3, %v3209_v16 }
 0x236   : > { %v3247_v23 = vmax.f32 %v3210_v6, 0.0 }
 0x238   : > { %3279 = vst.msk [vmem:[%s5654_s20 + $0xe0] sm:$0xff] %vm2773_vm6, %v3247_v23 }
 0x239   : > { %v3189_v39 = vpop.f32.mrf.mxu2 }
 0x23a   : > { %v3190_v11 = vadd.f32 %v5644_v3, %v3189_v39 }
 0x23b   : > { %v3211_v58 = vpop.f32.mrf.mxu3 }
 0x23c   : > { %v3239_v17 = vmax.f32 %v3190_v11, 0.0  ;;  %v3212_v33 = vadd.f32 %v5644_v3, %v3211_v58 }
 0x23e   : > { %3271 = vst.msk [vmem:[%s5654_s20 + $0xa0] sm:$0xff] %vm2773_vm6, %v3239_v17  ;;  %v3248_v20 = vmax.f32 %v3212_v33, 0.0 }
 0x240   : > { %3280 = vst.msk [vmem:[%s5654_s20 + $0xe8] sm:$0xff] %vm2773_vm6, %v3248_v20 }
 0x241   : > { %v3191_v10 = vpop.f32.mrf.mxu2 }
 0x242   : > { %v3192_v56 = vadd.f32 %v5644_v3, %v3191_v10 }
 0x244   : > { %v3240_v24 = vmax.f32 %v3192_v56, 0.0 }
 0x245   : > { %v3149_v8 = vpop.f32.mrf.mxu0 }
 0x246   : > { %3272 = vst.msk [vmem:[%s5654_s20 + $0xa8] sm:$0xff] %vm2773_vm6, %v3240_v24  ;;  %v3150_v42 = vadd.f32 %v5644_v3, %v3149_v8 }
 0x248   : > { %v3223_v38 = vmax.f32 %v3150_v42, 0.0 }
 0x24a   : > { %3255 = vst.msk [vmem:[%s5654_s20 + $0x20] sm:$0xff] %vm2773_vm6, %v3223_v38 }
 0x24c   : > { %v3169_v5 = vpop.f32.mrf.mxu1 }
 0x24d   : > { %v3170_v37 = vadd.f32 %v5644_v3, %v3169_v5  ;;  %v3151_v27 = vpop.f32.mrf.mxu0 }
 0x24e   : > { %v3152_v15 = vadd.f32 %v5644_v3, %v3151_v27 }
 0x24f   : > { %v3231_v13 = vmax.f32 %v3170_v37, 0.0 }
 0x250   : > { %v3224_v30 = vmax.f32 %v3152_v15, 0.0 }
 0x251   : > { %3263 = vst.msk [vmem:[%s5654_s20 + $0x60] sm:$0xff] %vm2773_vm6, %v3231_v13 }
 0x252   : > { %3256 = vst.msk [vmem:[%s5654_s20 + $0x28] sm:$0xff] %vm2773_vm6, %v3224_v30 }
 0x254   : > { %v3171_v59 = vpop.f32.mrf.mxu1 }
 0x255   : > { %v3172_v52 = vadd.f32 %v5644_v3, %v3171_v59 }
 0x257   : > { %v3232_v22 = vmax.f32 %v3172_v52, 0.0 }
 0x259   : > { %3264 = vst.msk [vmem:[%s5654_s20 + $0x68] sm:$0xff] %vm2773_vm6, %v3232_v22 }
 0x26a   : > { %v3194_v18 = vpop.f32.mrf.mxu2 }
 0x26b   : > { %v3195_v50 = vadd.f32 %v5644_v3, %v3194_v18 }
 0x26d   : > { %v3241_v21 = vmax.f32 %v3195_v50, 0.0 }
 0x26f   : > { %3273 = vst.msk [vmem:[%s5654_s20 + $0xb0] sm:$0xff] %vm2773_vm6, %v3241_v21 }
 0x271   : > { %v3214_v1 = vpop.f32.mrf.mxu3 }
 0x272   : > { %v3215_v45 = vadd.f32 %v5644_v3, %v3214_v1  ;;  %v3196_v61 = vpop.f32.mrf.mxu2 }
 0x273   : > { %v3197_v46 = vadd.f32 %v5644_v3, %v3196_v61 }
 0x274   : > { %v3249_v62 = vmax.f32 %v3215_v45, 0.0 }
 0x275   : > { %v3242_v44 = vmax.f32 %v3197_v46, 0.0 }
 0x276   : > { %3281 = vst.msk [vmem:[%s5654_s20 + $0xf0] sm:$0xff] %vm2773_vm6, %v3249_v62 }
 0x277   : > { %3274 = vst.msk [vmem:[%s5654_s20 + $0xb8] sm:$0xff] %vm2773_vm6, %v3242_v44 }
 0x279   : > { %v3216_v63 = vpop.f32.mrf.mxu3 }
 0x27a   : > { %v3217_v19 = vadd.f32 %v5644_v3, %v3216_v63 }
 0x27c   : > { %v3250_v32 = vmax.f32 %v3217_v19, 0.0 }
 0x27e   : > { %3282 = vst.msk [vmem:[%s5654_s20 + $0xf8] sm:$0xff] %vm2773_vm6, %v3250_v32 }
 0x280   : > { %v3174_v35 = vpop.f32.mrf.mxu1 }
 0x281   : > { %v3175_v48 = vadd.f32 %v5644_v3, %v3174_v35 }
 0x283   : > { %v3154_v7 = vpop.f32.mrf.mxu0  ;;  %v3233_v25 = vmax.f32 %v3175_v48, 0.0 }
 0x284   : > { %v3155_v49 = vadd.f32 %v5644_v3, %v3154_v7 }
 0x285   : > { %3265 = vst.msk [vmem:[%s5654_s20 + $0x70] sm:$0xff] %vm2773_vm6, %v3233_v25 }
 0x286   : > { %v3225_v60 = vmax.f32 %v3155_v49, 0.0 }
 0x288   : > { %3257 = vst.msk [vmem:[%s5654_s20 + $0x30] sm:$0xff] %vm2773_vm6, %v3225_v60  ;;  %v3176_v28 = vpop.f32.mrf.mxu1 }
 0x289   : > { %v3177_v12 = vadd.f32 %v5644_v3, %v3176_v28 }
 0x28b   : > { %v3156_v36 = vpop.f32.mrf.mxu0  ;;  %v3234_v14 = vmax.f32 %v3177_v12, 0.0 }
 0x28c   : > { %v3157_v53 = vadd.f32 %v5644_v3, %v3156_v36 }
 0x28d   : > { %3266 = vst.msk [vmem:[%s5654_s20 + $0x78] sm:$0xff] %vm2773_vm6, %v3234_v14 }
 0x28e   : > { %v3226_v2 = vmax.f32 %v3157_v53, 0.0 }
 0x290   : > { %3258 = vst.msk [vmem:[%s5654_s20 + $0x38] sm:$0xff] %vm2773_vm6, %v3226_v2 }
 0x291 PF: > { %s13_s14 = sadd.s32 1, %s3908_s14   ;;  %s5798_s12 = smov %s3904_s13 }
 0x292   : > { %p10_p5 = scmp.ge.s32.totalorder %s13_s14, 4   ;;  %s5799_s13 = smov %s5801_s15 }
 0x294   :  { %12 = sbr.rel (!%p10_p5) target bundleno = 2 (0x2), region = 65 }

</bundles_post_ra>
